<compile_context>
chip_gen: v6e
topology: v6e:2x2x1
jax: 0.10.0
libtpu: 0.0.40
codegen_flags: <defaults>
</compile_context>

<pallas_src>
import functools

import jax
import jax.numpy as jnp
from jax import lax
from jax.experimental import pallas as pl
from jax.experimental.pallas import tpu as pltpu


# ----------------------------------------------------------------------------
# Pallas kernels
# ----------------------------------------------------------------------------
def _matmul_bias_relu_kernel(x_ref, w_ref, b_ref, o_ref):
    y = jnp.dot(x_ref[...], w_ref[...], preferred_element_type=jnp.float32)
    o_ref[...] = jnp.maximum(y + b_ref[...], 0.0).astype(o_ref.dtype)


def pallas_matmul_bias_relu(x, w, b, out_dtype=jnp.bfloat16):
    """relu(x @ w + b): x (M,K) bf16, w (K,N) bf16, b (1,N) f32 -> (M,N)."""
    M, K = x.shape
    N = w.shape[1]
    # Split rows across two grid steps (-> two TensorCores on v7x) when the
    # halves stay sublane-aligned.
    gm = 2 if (M % 16 == 0 and M >= 256) else 1
    tm = M // gm
    return pl.pallas_call(
        _matmul_bias_relu_kernel,
        out_shape=jax.ShapeDtypeStruct((M, N), out_dtype),
        grid=(gm,),
        in_specs=[
            pl.BlockSpec((tm, K), lambda i: (i, 0)),
            pl.BlockSpec((K, N), lambda i: (0, 0)),
            pl.BlockSpec((1, N), lambda i: (0, 0)),
        ],
        out_specs=pl.BlockSpec((tm, N), lambda i: (i, 0)),
        compiler_params=pltpu.CompilerParams(dimension_semantics=("parallel",)),
    )(x, w, b)


def _fused_head_kernel(x_ref, w1_ref, b1_ref, w2_ref, b2_ref, q_ref, z_acc,
                       *, action_space):
    j = pl.program_id(0)

    @pl.when(j == 0)
    def _():
        z_acc[...] = jnp.zeros_like(z_acc)

    # Tile of the concatenated hidden layer: h = relu(x @ W1[:, tile] + b1)
    h = jnp.dot(x_ref[...], w1_ref[...], preferred_element_type=jnp.float32)
    h = jnp.maximum(h + b1_ref[...], 0.0)
    # Partial second-stage product with the matching rows of block-diagonal W2.
    z_acc[...] += jnp.dot(h.astype(w2_ref.dtype), w2_ref[...],
                          preferred_element_type=jnp.float32)

    @pl.when(j == pl.num_programs(0) - 1)
    def _():
        z = z_acc[...] + b2_ref[...]                 # col 0 = v, cols 1..A = a
        col = lax.broadcasted_iota(jnp.int32, z.shape, 1)
        v = jnp.sum(jnp.where(col == 0, z, 0.0), axis=1, keepdims=True)
        a_mask = jnp.logical_and(col >= 1, col <= action_space)
        a_mean = jnp.sum(jnp.where(a_mask, z, 0.0), axis=1,
                         keepdims=True) * (1.0 / action_space)
        q_ref[...] = v + z - a_mean                  # cols 1..A hold q


def pallas_fused_dueling_head(flat, w1, b1, w2, b2, action_space):
    """q = v + a - mean(a) from flat conv features, single fused kernel."""
    B, K = flat.shape
    N = w1.shape[1]          # 2 * hidden_size (1024)
    NP = w2.shape[1]         # lane-dense padded head width (128)
    tn = 256 if N % 256 == 0 else N
    q_pad = pl.pallas_call(
        functools.partial(_fused_head_kernel, action_space=action_space),
        out_shape=jax.ShapeDtypeStruct((B, NP), jnp.float32),
        grid_spec=pltpu.PrefetchScalarGridSpec(
            num_scalar_prefetch=0,
            grid=(N // tn,),
            in_specs=[
                pl.BlockSpec((B, K), lambda j: (0, 0)),
                pl.BlockSpec((K, tn), lambda j: (0, j)),
                pl.BlockSpec((1, tn), lambda j: (0, j)),
                pl.BlockSpec((tn, NP), lambda j: (j, 0)),
                pl.BlockSpec((1, NP), lambda j: (0, 0)),
            ],
            out_specs=pl.BlockSpec((B, NP), lambda j: (0, 0)),
            scratch_shapes=[pltpu.VMEM((B, NP), jnp.float32)],
        ),
        compiler_params=pltpu.CompilerParams(
            dimension_semantics=("arbitrary",)),
    )(flat, w1, b1, w2, b2)
    return q_pad[:, 1:1 + action_space]


# ----------------------------------------------------------------------------
# Glue: NHWC im2col + conv wrapper (matmul itself runs in the Pallas kernel)
# ----------------------------------------------------------------------------
def im2col_nhwc(x, kh, kw, stride):
    B, H, W, C = x.shape
    OH = (H - kh) // stride + 1
    OW = (W - kw) // stride + 1
    cols = []
    for i in range(kh):
        for j in range(kw):
            cols.append(x[:, i:i + stride * OH:stride,
                          j:j + stride * OW:stride, :])
    p = jnp.stack(cols, axis=3)                          # (B, OH, OW, KH*KW, C)
    return p.reshape(B * OH * OW, kh * kw * C), OH, OW


def conv2d_relu_nhwc(x, w_mat, b, kh, kw, stride):
    """x: (B,H,W,C) bf16, w_mat: (KH*KW*C, OC) bf16, valid padding."""
    B = x.shape[0]
    oc = w_mat.shape[1]
    patches, OH, OW = im2col_nhwc(x, kh, kw, stride)     # (B*OH*OW, KH*KW*C)
    y = pallas_matmul_bias_relu(patches, w_mat, b)       # (B*OH*OW, OC) bf16
    return y.reshape(B, OH, OW, oc)                      # stays channel-last


# ----------------------------------------------------------------------------
# Deterministic parameter initialization (mirrors the PyTorch __init__ shapes)
# ----------------------------------------------------------------------------
def _scale_noise(key, size):
    x = jax.random.normal(key, (size,), jnp.float32)
    return jnp.sign(x) * jnp.sqrt(jnp.abs(x))


def noisy_linear_params(key, in_features, out_features, std_init=0.5):
    k1, k2, k3, k4 = jax.random.split(key, 4)
    mu_range = 1.0 / (in_features ** 0.5)
    weight_mu = jax.random.uniform(k1, (out_features, in_features), jnp.float32,
                                   -mu_range, mu_range)
    weight_sigma = jnp.full((out_features, in_features),
                            std_init / in_features ** 0.5, jnp.float32)
    bias_mu = jax.random.uniform(k2, (out_features,), jnp.float32,
                                 -mu_range, mu_range)
    bias_sigma = jnp.full((out_features,), std_init / out_features ** 0.5,
                          jnp.float32)
    eps_in = _scale_noise(k3, in_features)
    eps_out = _scale_noise(k4, out_features)
    # training-mode effective parameters (nn.Module defaults to training=True)
    w = weight_mu + weight_sigma * jnp.outer(eps_out, eps_in)
    b = bias_mu + bias_sigma * eps_out
    return w.T, b                                        # (in, out), (out,) f32


def conv_params(key, oc, ic, kh, kw):
    k1, k2 = jax.random.split(key)
    fan_in = ic * kh * kw
    bound = 1.0 / fan_in ** 0.5
    w = jax.random.uniform(k1, (oc, ic, kh, kw), jnp.float32, -bound, bound)
    b = jax.random.uniform(k2, (oc,), jnp.float32, -bound, bound)
    # pack once to im2col layout (KH, KW, IC, OC) and bf16 for the MXU
    w_mat = jnp.transpose(w, (2, 3, 1, 0)).reshape(kh * kw * ic, oc)
    return w_mat.astype(jnp.bfloat16), b.reshape(1, oc).astype(jnp.float32)


def pack_head_params(hv, v, ha, a, hidden_size, action_space,
                     conv_c=64, conv_h=7, conv_w=7, n_pad=128):
    (hv_w, hv_b), (v_w, v_b), (ha_w, ha_b), (a_w, a_b) = hv, v, ha, a
    # W1: concat the two hidden weights -> (3136, 2*hidden); permute rows from
    # PyTorch's (C,H,W) flatten order to the NHWC (H,W,C) flatten order used by
    # the conv path, so the math matches x.view(-1, 3136) exactly.
    w1 = jnp.concatenate([hv_w, ha_w], axis=1)
    w1 = w1.reshape(conv_c, conv_h, conv_w, 2 * hidden_size)
    w1 = jnp.transpose(w1, (1, 2, 0, 3)).reshape(conv_c * conv_h * conv_w,
                                                 2 * hidden_size)
    b1 = jnp.concatenate([hv_b, ha_b]).reshape(1, 2 * hidden_size)
    # W2: block-diagonal, lane-padded to 128: col 0 <- value head,
    # cols 1..A <- advantage head; remaining lanes are zero.
    w2 = jnp.zeros((2 * hidden_size, n_pad), jnp.float32)
    w2 = w2.at[:hidden_size, 0:1].set(v_w)
    w2 = w2.at[hidden_size:, 1:1 + action_space].set(a_w)
    b2 = jnp.zeros((1, n_pad), jnp.float32)
    b2 = b2.at[0, 0].set(v_b[0])
    b2 = b2.at[0, 1:1 + action_space].set(a_b)
    return (w1.astype(jnp.bfloat16), b1.astype(jnp.float32),
            w2.astype(jnp.bfloat16), b2.astype(jnp.float32))


def init_ddqn_params(key, frame_stack, hidden_size, action_space, noisy_std):
    ks = jax.random.split(key, 7)
    p = {}
    p["c1_w"], p["c1_b"] = conv_params(ks[0], 32, frame_stack, 8, 8)
    p["c2_w"], p["c2_b"] = conv_params(ks[1], 64, 32, 4, 4)
    p["c3_w"], p["c3_b"] = conv_params(ks[2], 64, 64, 3, 3)
    conv_output_size = 3136
    hv = noisy_linear_params(ks[3], conv_output_size, hidden_size, noisy_std)
    v = noisy_linear_params(ks[4], hidden_size, 1, noisy_std)
    ha = noisy_linear_params(ks[5], conv_output_size, hidden_size, noisy_std)
    a = noisy_linear_params(ks[6], hidden_size, action_space, noisy_std)
    (p["head_w1"], p["head_b1"],
     p["head_w2"], p["head_b2"]) = pack_head_params(hv, v, ha, a,
                                                    hidden_size, action_space)
    return p


# ----------------------------------------------------------------------------
# DDQN forward pass
# ----------------------------------------------------------------------------
def ddqn_forward(params, x, action_space):
    # One NCHW -> NHWC transpose at the input; everything stays channel-last.
    y = jnp.transpose(x, (0, 2, 3, 1)).astype(jnp.bfloat16)
    y = conv2d_relu_nhwc(y, params["c1_w"], params["c1_b"], 8, 8, 4)
    y = conv2d_relu_nhwc(y, params["c2_w"], params["c2_b"], 4, 4, 2)
    y = conv2d_relu_nhwc(y, params["c3_w"], params["c3_b"], 3, 3, 1)  # (B,7,7,64)
    flat = y.reshape(y.shape[0], -1)            # (B, 3136) in (H, W, C) order
    return pallas_fused_dueling_head(flat,
                                     params["head_w1"], params["head_b1"],
                                     params["head_w2"], params["head_b2"],
                                     action_space)


# ----------------------------------------------------------------------------
if __name__ == "__main__":
    # args: frame_stack=4, hidden_size=512, noisy_std=0.5; action_space=6.
    # The module hardcodes conv_output_size=3136, which forces 84x84 inputs.
    FRAME_STACK = 4
    HIDDEN_SIZE = 512
    NOISY_STD = 0.5
    ACTION_SPACE = 6
    BATCH = 2

    key = jax.random.PRNGKey(0)
    k_params, k_x = jax.random.split(key)
    params = init_ddqn_params(k_params, FRAME_STACK, HIDDEN_SIZE,
                              ACTION_SPACE, NOISY_STD)
    x = jax.random.normal(k_x, (BATCH, FRAME_STACK, 84, 84), jnp.float32)

    fwd = jax.jit(functools.partial(ddqn_forward, action_space=ACTION_SPACE))
    q = jax.block_until_ready(fwd(params, x))
    assert q.shape == (BATCH, ACTION_SPACE), q.shape
    assert q.dtype == jnp.float32, q.dtype
    print("KERNEL_OK")
</pallas_src>

<mosaic_0001>
module attributes {stable_mosaic.version = 11 : i64} {
  func.func @_matmul_bias_relu_kernel(%arg0: i32, %arg1: memref<400x256xbf16, #tpu.memory_space<vmem>>, %arg2: memref<256x32xbf16, #tpu.memory_space<vmem>>, %arg3: memref<1x32xf32, #tpu.memory_space<vmem>>, %arg4: memref<400x32xbf16, #tpu.memory_space<vmem>>) attributes {dimension_semantics = [#tpu.dimension_semantics<parallel>], iteration_bounds = array<i64: 2>, scalar_prefetch = 0 : i64, scratch_operands = 0 : i64, tpu.core_type = #tpu.core_type<tc>, window_params = [{transform_indices = @transform_0, window_bounds = array<i64: 400, 256>}, {pipeline_mode = #tpu.pipeline_mode<synchronous>, transform_indices = @transform_1, window_bounds = array<i64: 256, 32>}, {pipeline_mode = #tpu.pipeline_mode<synchronous>, transform_indices = @transform_2, window_bounds = array<i64: 1, 32>}, {transform_indices = @transform_3, window_bounds = array<i64: 400, 32>}]} {
    %c0 = arith.constant 0 : index
    %c0_0 = arith.constant 0 : index
    %0 = vector.load %arg1[%c0, %c0_0] : memref<400x256xbf16, #tpu.memory_space<vmem>>, vector<400x256xbf16>
    %c0_1 = arith.constant 0 : index
    %c0_2 = arith.constant 0 : index
    %1 = vector.load %arg2[%c0_1, %c0_2] : memref<256x32xbf16, #tpu.memory_space<vmem>>, vector<256x32xbf16>
    %cst = arith.constant dense<0.000000e+00> : vector<400x32xf32>
    %2 = tpu.matmul %0, %1, %cst {dimension_numbers = #tpu.dot_dimension_numbers<[1], [0], [0], [1], [0, 0, 1, 1], [], []>} : vector<400x256xbf16>, vector<256x32xbf16>, vector<400x32xf32> -> vector<400x32xf32>
    %c0_3 = arith.constant 0 : index
    %c0_4 = arith.constant 0 : index
    %3 = vector.load %arg3[%c0_3, %c0_4] : memref<1x32xf32, #tpu.memory_space<vmem>>, vector<1x32xf32>
    %4 = vector.broadcast %3 : vector<1x32xf32> to vector<400x32xf32>
    %5 = arith.addf %2, %4 : vector<400x32xf32>
    %cst_5 = arith.constant 0.000000e+00 : f32
    %6 = vector.broadcast %cst_5 : f32 to vector<400x32xf32>
    %7 = arith.maximumf %5, %6 : vector<400x32xf32>
    %8 = arith.truncf %7 : vector<400x32xf32> to vector<400x32xbf16>
    %c0_6 = arith.constant 0 : index
    %c0_7 = arith.constant 0 : index
    %9 = vector.load %arg4[%c0_6, %c0_7] : memref<400x32xbf16, #tpu.memory_space<vmem>>, vector<400x32xbf16>
    tpu.vector_store %arg4[%c0_6, %c0_7], %8 {strides = array<i32>} : memref<400x32xbf16, #tpu.memory_space<vmem>>, vector<400x32xbf16>,
    return
  }
  func.func @transform_0(%arg0: i32) -> (i32, i32) {
    %c0_i32 = arith.constant 0 : i32
    %c0_i32_0 = arith.constant 0 : i32
    return %arg0, %c0_i32 : i32, i32
  }
  func.func @transform_1(%arg0: i32) -> (i32, i32) {
    %c0_i32 = arith.constant 0 : i32
    %c0_i32_0 = arith.constant 0 : i32
    %c0_i32_1 = arith.constant 0 : i32
    return %c0_i32, %c0_i32_0 : i32, i32
  }
  func.func @transform_2(%arg0: i32) -> (i32, i32) {
    %c0_i32 = arith.constant 0 : i32
    %c0_i32_0 = arith.constant 0 : i32
    %c0_i32_1 = arith.constant 0 : i32
    return %c0_i32, %c0_i32_0 : i32, i32
  }
  func.func @transform_3(%arg0: i32) -> (i32, i32) {
    %c0_i32 = arith.constant 0 : i32
    %c0_i32_0 = arith.constant 0 : i32
    return %arg0, %c0_i32 : i32, i32
  }
}

module attributes {stable_mosaic.version = 11 : i64} {
  func.func @_matmul_bias_relu_kernel(%arg0: i32, %arg1: memref<162x512xbf16, #tpu.memory_space<vmem>>, %arg2: memref<512x64xbf16, #tpu.memory_space<vmem>>, %arg3: memref<1x64xf32, #tpu.memory_space<vmem>>, %arg4: memref<162x64xbf16, #tpu.memory_space<vmem>>) attributes {dimension_semantics = [#tpu.dimension_semantics<parallel>], iteration_bounds = array<i64: 1>, scalar_prefetch = 0 : i64, scratch_operands = 0 : i64, tpu.core_type = #tpu.core_type<tc>, window_params = [{transform_indices = @transform_0, window_bounds = array<i64: 162, 512>}, {pipeline_mode = #tpu.pipeline_mode<synchronous>, transform_indices = @transform_1, window_bounds = array<i64: 512, 64>}, {pipeline_mode = #tpu.pipeline_mode<synchronous>, transform_indices = @transform_2, window_bounds = array<i64: 1, 64>}, {transform_indices = @transform_3, window_bounds = array<i64: 162, 64>}]} {
    %c0 = arith.constant 0 : index
    %c0_0 = arith.constant 0 : index
    %0 = vector.load %arg1[%c0, %c0_0] : memref<162x512xbf16, #tpu.memory_space<vmem>>, vector<162x512xbf16>
    %c0_1 = arith.constant 0 : index
    %c0_2 = arith.constant 0 : index
    %1 = vector.load %arg2[%c0_1, %c0_2] : memref<512x64xbf16, #tpu.memory_space<vmem>>, vector<512x64xbf16>
    %cst = arith.constant dense<0.000000e+00> : vector<162x64xf32>
    %2 = tpu.matmul %0, %1, %cst {dimension_numbers = #tpu.dot_dimension_numbers<[1], [0], [0], [1], [0, 0, 1, 1], [], []>} : vector<162x512xbf16>, vector<512x64xbf16>, vector<162x64xf32> -> vector<162x64xf32>
    %c0_3 = arith.constant 0 : index
    %c0_4 = arith.constant 0 : index
    %3 = vector.load %arg3[%c0_3, %c0_4] : memref<1x64xf32, #tpu.memory_space<vmem>>, vector<1x64xf32>
    %4 = vector.broadcast %3 : vector<1x64xf32> to vector<162x64xf32>
    %5 = arith.addf %2, %4 : vector<162x64xf32>
    %cst_5 = arith.constant 0.000000e+00 : f32
    %6 = vector.broadcast %cst_5 : f32 to vector<162x64xf32>
    %7 = arith.maximumf %5, %6 : vector<162x64xf32>
    %8 = arith.truncf %7 : vector<162x64xf32> to vector<162x64xbf16>
    %c0_6 = arith.constant 0 : index
    %c0_7 = arith.constant 0 : index
    %9 = vector.load %arg4[%c0_6, %c0_7] : memref<162x64xbf16, #tpu.memory_space<vmem>>, vector<162x64xbf16>
    tpu.vector_store %arg4[%c0_6, %c0_7], %8 {strides = array<i32>} : memref<162x64xbf16, #tpu.memory_space<vmem>>, vector<162x64xbf16>,
    return
  }
  func.func @transform_0(%arg0: i32) -> (i32, i32) {
    %c0_i32 = arith.constant 0 : i32
    %c0_i32_0 = arith.constant 0 : i32
    return %arg0, %c0_i32 : i32, i32
  }
  func.func @transform_1(%arg0: i32) -> (i32, i32) {
    %c0_i32 = arith.constant 0 : i32
    %c0_i32_0 = arith.constant 0 : i32
    %c0_i32_1 = arith.constant 0 : i32
    return %c0_i32, %c0_i32_0 : i32, i32
  }
  func.func @transform_2(%arg0: i32) -> (i32, i32) {
    %c0_i32 = arith.constant 0 : i32
    %c0_i32_0 = arith.constant 0 : i32
    %c0_i32_1 = arith.constant 0 : i32
    return %c0_i32, %c0_i32_0 : i32, i32
  }
  func.func @transform_3(%arg0: i32) -> (i32, i32) {
    %c0_i32 = arith.constant 0 : i32
    %c0_i32_0 = arith.constant 0 : i32
    return %arg0, %c0_i32 : i32, i32
  }
}

module attributes {stable_mosaic.version = 11 : i64} {
  func.func @_fused_head_kernel(%arg0: i32, %arg1: memref<2x3136xbf16, #tpu.memory_space<vmem>>, %arg2: memref<3136x256xbf16, #tpu.memory_space<vmem>>, %arg3: memref<1x256xf32, #tpu.memory_space<vmem>>, %arg4: memref<256x128xbf16, #tpu.memory_space<vmem>>, %arg5: memref<1x128xf32, #tpu.memory_space<vmem>>, %arg6: memref<2x128xf32, #tpu.memory_space<vmem>>, %arg7: memref<2x128xf32, #tpu.memory_space<vmem>>) attributes {dimension_semantics = [#tpu.dimension_semantics<arbitrary>], iteration_bounds = array<i64: 4>, scalar_prefetch = 0 : i64, scratch_operands = 1 : i64, tpu.core_type = #tpu.core_type<tc>, window_params = [{pipeline_mode = #tpu.pipeline_mode<synchronous>, transform_indices = @transform_0, window_bounds = array<i64: 2, 3136>}, {transform_indices = @transform_1, window_bounds = array<i64: 3136, 256>}, {transform_indices = @transform_2, window_bounds = array<i64: 1, 256>}, {transform_indices = @transform_3, window_bounds = array<i64: 256, 128>}, {pipeline_mode = #tpu.pipeline_mode<synchronous>, transform_indices = @transform_4, window_bounds = array<i64: 1, 128>}, {pipeline_mode = #tpu.pipeline_mode<synchronous>, transform_indices = @transform_5, window_bounds = array<i64: 2, 128>}]} {
    %c0_i32 = arith.constant 0 : i32
    %0 = arith.cmpi eq, %arg0, %c0_i32 : i32
    %1 = arith.extui %0 : i1 to i32
    %c0_i32_0 = arith.constant 0 : i32
    %2 = arith.cmpi ne, %1, %c0_i32_0 : i32
    scf.if %2 {
      %cst_15 = arith.constant 0.000000e+00 : f32
      %20 = vector.broadcast %cst_15 : f32 to vector<2x128xf32>
      %c0_16 = arith.constant 0 : index
      %c0_17 = arith.constant 0 : index
      %21 = vector.load %arg7[%c0_16, %c0_17] : memref<2x128xf32, #tpu.memory_space<vmem>>, vector<2x128xf32>
      tpu.vector_store %arg7[%c0_16, %c0_17], %20 {strides = array<i32>} : memref<2x128xf32, #tpu.memory_space<vmem>>, vector<2x128xf32>,
    } else {
    }
    %c0 = arith.constant 0 : index
    %c0_1 = arith.constant 0 : index
    %3 = vector.load %arg1[%c0, %c0_1] : memref<2x3136xbf16, #tpu.memory_space<vmem>>, vector<2x3136xbf16>
    %c0_2 = arith.constant 0 : index
    %c0_3 = arith.constant 0 : index
    %4 = vector.load %arg2[%c0_2, %c0_3] : memref<3136x256xbf16, #tpu.memory_space<vmem>>, vector<3136x256xbf16>
    %cst = arith.constant dense<0.000000e+00> : vector<2x256xf32>
    %5 = tpu.matmul %3, %4, %cst {dimension_numbers = #tpu.dot_dimension_numbers<[1], [0], [0], [1], [0, 0, 1, 1], [], []>} : vector<2x3136xbf16>, vector<3136x256xbf16>, vector<2x256xf32> -> vector<2x256xf32>
    %c0_4 = arith.constant 0 : index
    %c0_5 = arith.constant 0 : index
    %6 = vector.load %arg3[%c0_4, %c0_5] : memref<1x256xf32, #tpu.memory_space<vmem>>, vector<1x256xf32>
    %7 = vector.broadcast %6 : vector<1x256xf32> to vector<2x256xf32>
    %8 = arith.addf %5, %7 : vector<2x256xf32>
    %cst_6 = arith.constant 0.000000e+00 : f32
    %9 = vector.broadcast %cst_6 : f32 to vector<2x256xf32>
    %10 = arith.maximumf %8, %9 : vector<2x256xf32>
    %c0_7 = arith.constant 0 : index
    %c0_8 = arith.constant 0 : index
    %11 = vector.load %arg7[%c0_7, %c0_8] : memref<2x128xf32, #tpu.memory_space<vmem>>, vector<2x128xf32>
    %12 = arith.truncf %10 : vector<2x256xf32> to vector<2x256xbf16>
    %c0_9 = arith.constant 0 : index
    %c0_10 = arith.constant 0 : index
    %13 = vector.load %arg4[%c0_9, %c0_10] : memref<256x128xbf16, #tpu.memory_space<vmem>>, vector<256x128xbf16>
    %cst_11 = arith.constant dense<0.000000e+00> : vector<2x128xf32>
    %14 = tpu.matmul %12, %13, %cst_11 {dimension_numbers = #tpu.dot_dimension_numbers<[1], [0], [0], [1], [0, 0, 1, 1], [], []>} : vector<2x256xbf16>, vector<256x128xbf16>, vector<2x128xf32> -> vector<2x128xf32>
    %15 = arith.addf %11, %14 : vector<2x128xf32>
    %c0_12 = arith.constant 0 : index
    %c0_13 = arith.constant 0 : index
    %16 = vector.load %arg7[%c0_12, %c0_13] : memref<2x128xf32, #tpu.memory_space<vmem>>, vector<2x128xf32>
    tpu.vector_store %arg7[%c0_12, %c0_13], %15 {strides = array<i32>} : memref<2x128xf32, #tpu.memory_space<vmem>>, vector<2x128xf32>,
    %c3_i32 = arith.constant 3 : i32
    %17 = arith.cmpi eq, %arg0, %c3_i32 : i32
    %18 = arith.extui %17 : i1 to i32
    %c0_i32_14 = arith.constant 0 : i32
    %19 = arith.cmpi ne, %18, %c0_i32_14 : i32
    scf.if %19 {
      %c0_15 = arith.constant 0 : index
      %c0_16 = arith.constant 0 : index
      %20 = vector.load %arg7[%c0_15, %c0_16] : memref<2x128xf32, #tpu.memory_space<vmem>>, vector<2x128xf32>
      %c0_17 = arith.constant 0 : index
      %c0_18 = arith.constant 0 : index
      %21 = vector.load %arg5[%c0_17, %c0_18] : memref<1x128xf32, #tpu.memory_space<vmem>>, vector<1x128xf32>
      %22 = vector.broadcast %21 : vector<1x128xf32> to vector<2x128xf32>
      %23 = arith.addf %20, %22 : vector<2x128xf32>
      %24 = tpu.iota {dimensions = array<i32: 1>} : vector<2x128xi32>
      %c0_i32_19 = arith.constant 0 : i32
      %25 = vector.broadcast %c0_i32_19 : i32 to vector<2x128xi32>
      %26 = arith.cmpi eq, %24, %25 : vector<2x128xi32>
      %cst_20 = arith.constant 0.000000e+00 : f32
      %27 = vector.broadcast %cst_20 : f32 to vector<2x128xf32>
      %28 = arith.select %26, %23, %27 : vector<2x128xi1>, vector<2x128xf32>
      %cst_21 = arith.constant dense<0.000000e+00> : vector<2xf32>
      %29 = vector.multi_reduction <add>, %28, %cst_21 [1] : vector<2x128xf32> to vector<2xf32>
      %30 = vector.shape_cast %29 : vector<2xf32> to vector<2x1xf32>
      %c1_i32 = arith.constant 1 : i32
      %31 = vector.broadcast %c1_i32 : i32 to vector<2x128xi32>
      %32 = arith.cmpi sge, %24, %31 : vector<2x128xi32>
      %c6_i32 = arith.constant 6 : i32
      %33 = vector.broadcast %c6_i32 : i32 to vector<2x128xi32>
      %34 = arith.cmpi sle, %24, %33 : vector<2x128xi32>
      %35 = arith.andi %32, %34 : vector<2x128xi1>
      %cst_22 = arith.constant 0.000000e+00 : f32
      %36 = vector.broadcast %cst_22 : f32 to vector<2x128xf32>
      %37 = arith.select %35, %23, %36 : vector<2x128xi1>, vector<2x128xf32>
      %cst_23 = arith.constant dense<0.000000e+00> : vector<2xf32>
      %38 = vector.multi_reduction <add>, %37, %cst_23 [1] : vector<2x128xf32> to vector<2xf32>
      %39 = vector.shape_cast %38 : vector<2xf32> to vector<2x1xf32>
      %cst_24 = arith.constant 0.166666672 : f32
      %40 = vector.broadcast %cst_24 : f32 to vector<2x1xf32>
      %41 = arith.mulf %39, %40 : vector<2x1xf32>
      %42 = vector.broadcast %30 : vector<2x1xf32> to vector<2x128xf32>
      %43 = arith.addf %42, %23 : vector<2x128xf32>
      %44 = vector.broadcast %41 : vector<2x1xf32> to vector<2x128xf32>
      %45 = arith.subf %43, %44 : vector<2x128xf32>
      %c0_25 = arith.constant 0 : index
      %c0_26 = arith.constant 0 : index
      %46 = vector.load %arg6[%c0_25, %c0_26] : memref<2x128xf32, #tpu.memory_space<vmem>>, vector<2x128xf32>
      tpu.vector_store %arg6[%c0_25, %c0_26], %45 {strides = array<i32>} : memref<2x128xf32, #tpu.memory_space<vmem>>, vector<2x128xf32>,
    } else {
    }
    return
  }
  func.func @transform_0(%arg0: i32) -> (i32, i32) {
    %c0_i32 = arith.constant 0 : i32
    %c0_i32_0 = arith.constant 0 : i32
    %c0_i32_1 = arith.constant 0 : i32
    return %c0_i32, %c0_i32_0 : i32, i32
  }
  func.func @transform_1(%arg0: i32) -> (i32, i32) {
    %c0_i32 = arith.constant 0 : i32
    %c0_i32_0 = arith.constant 0 : i32
    return %c0_i32, %arg0 : i32, i32
  }
  func.func @transform_2(%arg0: i32) -> (i32, i32) {
    %c0_i32 = arith.constant 0 : i32
    %c0_i32_0 = arith.constant 0 : i32
    return %c0_i32, %arg0 : i32, i32
  }
  func.func @transform_3(%arg0: i32) -> (i32, i32) {
    %c0_i32 = arith.constant 0 : i32
    %c0_i32_0 = arith.constant 0 : i32
    return %arg0, %c0_i32 : i32, i32
  }
  func.func @transform_4(%arg0: i32) -> (i32, i32) {
    %c0_i32 = arith.constant 0 : i32
    %c0_i32_0 = arith.constant 0 : i32
    %c0_i32_1 = arith.constant 0 : i32
    return %c0_i32, %c0_i32_0 : i32, i32
  }
  func.func @transform_5(%arg0: i32) -> (i32, i32) {
    %c0_i32 = arith.constant 0 : i32
    %c0_i32_0 = arith.constant 0 : i32
    %c0_i32_1 = arith.constant 0 : i32
    return %c0_i32, %c0_i32_0 : i32, i32
  }
}

module attributes {stable_mosaic.version = 11 : i64} {
  func.func @_matmul_bias_relu_kernel(%arg0: i32, %arg1: memref<98x576xbf16, #tpu.memory_space<vmem>>, %arg2: memref<576x64xbf16, #tpu.memory_space<vmem>>, %arg3: memref<1x64xf32, #tpu.memory_space<vmem>>, %arg4: memref<98x64xbf16, #tpu.memory_space<vmem>>) attributes {dimension_semantics = [#tpu.dimension_semantics<parallel>], iteration_bounds = array<i64: 1>, scalar_prefetch = 0 : i64, scratch_operands = 0 : i64, tpu.core_type = #tpu.core_type<tc>, window_params = [{transform_indices = @transform_0, window_bounds = array<i64: 98, 576>}, {pipeline_mode = #tpu.pipeline_mode<synchronous>, transform_indices = @transform_1, window_bounds = array<i64: 576, 64>}, {pipeline_mode = #tpu.pipeline_mode<synchronous>, transform_indices = @transform_2, window_bounds = array<i64: 1, 64>}, {transform_indices = @transform_3, window_bounds = array<i64: 98, 64>}]} {
    %c0 = arith.constant 0 : index
    %c0_0 = arith.constant 0 : index
    %0 = vector.load %arg1[%c0, %c0_0] : memref<98x576xbf16, #tpu.memory_space<vmem>>, vector<98x576xbf16>
    %c0_1 = arith.constant 0 : index
    %c0_2 = arith.constant 0 : index
    %1 = vector.load %arg2[%c0_1, %c0_2] : memref<576x64xbf16, #tpu.memory_space<vmem>>, vector<576x64xbf16>
    %cst = arith.constant dense<0.000000e+00> : vector<98x64xf32>
    %2 = tpu.matmul %0, %1, %cst {dimension_numbers = #tpu.dot_dimension_numbers<[1], [0], [0], [1], [0, 0, 1, 1], [], []>} : vector<98x576xbf16>, vector<576x64xbf16>, vector<98x64xf32> -> vector<98x64xf32>
    %c0_3 = arith.constant 0 : index
    %c0_4 = arith.constant 0 : index
    %3 = vector.load %arg3[%c0_3, %c0_4] : memref<1x64xf32, #tpu.memory_space<vmem>>, vector<1x64xf32>
    %4 = vector.broadcast %3 : vector<1x64xf32> to vector<98x64xf32>
    %5 = arith.addf %2, %4 : vector<98x64xf32>
    %cst_5 = arith.constant 0.000000e+00 : f32
    %6 = vector.broadcast %cst_5 : f32 to vector<98x64xf32>
    %7 = arith.maximumf %5, %6 : vector<98x64xf32>
    %8 = arith.truncf %7 : vector<98x64xf32> to vector<98x64xbf16>
    %c0_6 = arith.constant 0 : index
    %c0_7 = arith.constant 0 : index
    %9 = vector.load %arg4[%c0_6, %c0_7] : memref<98x64xbf16, #tpu.memory_space<vmem>>, vector<98x64xbf16>
    tpu.vector_store %arg4[%c0_6, %c0_7], %8 {strides = array<i32>} : memref<98x64xbf16, #tpu.memory_space<vmem>>, vector<98x64xbf16>,
    return
  }
  func.func @transform_0(%arg0: i32) -> (i32, i32) {
    %c0_i32 = arith.constant 0 : i32
    %c0_i32_0 = arith.constant 0 : i32
    return %arg0, %c0_i32 : i32, i32
  }
  func.func @transform_1(%arg0: i32) -> (i32, i32) {
    %c0_i32 = arith.constant 0 : i32
    %c0_i32_0 = arith.constant 0 : i32
    %c0_i32_1 = arith.constant 0 : i32
    return %c0_i32, %c0_i32_0 : i32, i32
  }
  func.func @transform_2(%arg0: i32) -> (i32, i32) {
    %c0_i32 = arith.constant 0 : i32
    %c0_i32_0 = arith.constant 0 : i32
    %c0_i32_1 = arith.constant 0 : i32
    return %c0_i32, %c0_i32_0 : i32, i32
  }
  func.func @transform_3(%arg0: i32) -> (i32, i32) {
    %c0_i32 = arith.constant 0 : i32
    %c0_i32_0 = arith.constant 0 : i32
    return %arg0, %c0_i32 : i32, i32
  }
}

</mosaic_0001>

<bundles_post_ra>
// kernel: ddqn_forward.4
= control target key start
LH: loop header
LB: loop body
LE: loop exit
PB: predicated region body
PF: predicated region fallthrough
CT: control target
= control target key end

     0   :  { %s1542_s12 = smov 0   ;;  %s1852_s0 = inlined_call_operand.vmem [shape: bf16[800,256], index: 0, kind: input, shape index: {}]   ;;  %s1853_s1 = inlined_call_operand.vmem [shape: bf16[256,32], index: 1, kind: input, shape index: {}]   ;;  %s1854_s2 = inlined_call_operand.vmem [shape: f32[1,32], index: 2, kind: input, shape index: {}]   ;;  %s1855_s3 = inlined_call_operand.vmem [shape: bf16[800,32], index: 3, kind: output, shape index: {}]  }
   0x1 LB: > { %s1203_s13 = sadd.s32 4294967295, %s1519_s12   ;;  %p1207_p0 = scmp.ge.s32.totalorder %s1519_s12, 1  ;;  %s1519_s12 = sphi %s1542_s12, %s13_s12  }
   0x2   : > { %p139_p1 = scmp.lt.s32.totalorder %s1519_s12, 3 }
   0x4   : > { %p140_p2 = pnand %p1207_p0, %p139_p1 }
   0x5   : > { %s164_s16 = smul.u32 (!%p140_p2), 50, %s1203_s13 }
   0x6   : > { %143 = sbr.rel (%p140_p2) target bundleno = 376 (0x178), region = 32 }
   0x7   : > { %p165_p3 = scmp.lt.s32.totalorder (!%p140_p2), %s164_s16, 99 }
   0xb   : > { %v1422_v0 = vld [vmem:[%s1853_s1 + $0x38] sm:$0xff]   ;;  %v1521_v1 = vmov 0   ;;  %v1423_v2 = vld [vmem:[%s1853_s1 + $0x30] sm:$0xff]   ;;  %v1424_v3 = vld [vmem:[%s1853_s1 + $0x28] sm:$0xff]   ;;  %s1857_s16 = smov (!%p165_p3, %s164_s16), 99  ;;  %vm1096_vm0 = vcmask 257024  }
   0xc   : > { %613 = vmatprep.subr.bf16.mxu0 %v1521_v1  ;;  %1381 = vmatprep.subr.bf16.mxu1 %v1521_v1  ;;  %v1425_v4 = vld [vmem:[%s1853_s1 + $0x20] sm:$0xff]   ;;  %s1330_s23 = sshll.u32 %s1857_s16, 3  ;;  %v1426_v5 = vld [vmem:[%s1853_s1 + $0x18] sm:$0xff]   ;;  %v1427_v7 = vld [vmem:[%s1853_s1 + $0x10] sm:$0xff]   ;;  %s1210_s29 = sshll.u32 %s1857_s16, 2 }
   0xd   : > { %614 = vmatpush1.bf16.msra.mxu0 %v1422_v0  ;;  %1397 = vmatpush1.bf16.msra.mxu1 %v1422_v0  ;;  %s1579_s28 = scalar_lea.vmem %s1852_s0, %s1330_s23  ;;  %v1428_v9 = vld [vmem:[%s1853_s1 + $0x8] sm:$0xff]   ;;  %v1429_v10 = vld [vmem:[%s1853_s1] sm:$0xff]   ;;  %v1430_v11 = vld [vmem:[%s1853_s1 + $0x78] sm:$0xff]  }
   0xe   : > { %615 = vmatprep.subr.bf16.mxu0 %v1521_v1  ;;  %1382 = vmatprep.subr.bf16.mxu1 %v1521_v1  ;;  %v1440_v6 = vld [vmem:[%s1579_s28 + $0x4] ss:$8 sps:$4 sm:$0xff]   ;;  %v1443_v8 = vld [vmem:[%s1579_s28 + $0xd4] ss:$8 sps:$4 sm:$0xff]   ;;  %v1438_v19 = vld [vmem:[%s1579_s28] ss:$8 sps:$4 sm:$0xff]  }
   0xf   : > { %645 = vmatprep.mubr.bf16.mxu0 %v1440_v6  ;;  %749 = vmatprep.mubr.bf16.mxu1 %v1443_v8  ;;  %v1431_v12 = vld [vmem:[%s1853_s1 + $0x70] sm:$0xff]   ;;  %v1432_v13 = vld [vmem:[%s1853_s1 + $0x68] sm:$0xff]   ;;  %v1433_v14 = vld [vmem:[%s1853_s1 + $0x60] sm:$0xff]  }
  0x10   : > { %v1434_v15 = vld [vmem:[%s1853_s1 + $0x58] sm:$0xff]   ;;  %v1435_v16 = vld [vmem:[%s1853_s1 + $0x50] sm:$0xff]   ;;  %v1436_v17 = vld [vmem:[%s1853_s1 + $0x48] sm:$0xff]  }
  0x11   : > { %616 = vmatpush1.bf16.msra.mxu0 %v1423_v2  ;;  %1398 = vmatpush1.bf16.msra.mxu1 %v1423_v2  ;;  %v1437_v18 = vld [vmem:[%s1853_s1 + $0x40] sm:$0xff]   ;;  %v1441_v20 = vld [vmem:[%s1579_s28 + $0xd0] ss:$8 sps:$4 sm:$0xff]   ;;  %v1444_v21 = vld [vmem:[%s1579_s28 + $0x14] ss:$8 sps:$4 sm:$0xff]  }
  0x12   : > { %617 = vmatprep.subr.bf16.mxu0 %v1521_v1  ;;  %1383 = vmatprep.subr.bf16.mxu1 %v1521_v1  ;;  %v1447_v22 = vld [vmem:[%s1579_s28 + $0xe4] ss:$8 sps:$4 sm:$0xff]   ;;  %v1446_v23 = vld [vmem:[%s1579_s28 + $0x10] ss:$8 sps:$4 sm:$0xff]   ;;  %v1449_v24 = vld [vmem:[%s1579_s28 + $0xe0] ss:$8 sps:$4 sm:$0xff]  }
  0x13   : > { %v1450_v25 = vld [vmem:[%s1579_s28 + $0x24] ss:$8 sps:$4 sm:$0xff]   ;;  %v1453_v26 = vld [vmem:[%s1579_s28 + $0xf4] ss:$8 sps:$4 sm:$0xff]   ;;  %v1452_v27 = vld [vmem:[%s1579_s28 + $0x20] ss:$8 sps:$4 sm:$0xff]  }
  0x14   : > { %v1455_v28 = vld [vmem:[%s1579_s28 + $0xf0] ss:$8 sps:$4 sm:$0xff]   ;;  %v1456_v29 = vld [vmem:[%s1579_s28 + $0x34] ss:$8 sps:$4 sm:$0xff]   ;;  %v1459_v30 = vld [vmem:[%s1579_s28 + $0x104] ss:$8 sps:$4 sm:$0xff]  }
  0x15   : > { %618 = vmatpush1.bf16.msra.mxu0 %v1424_v3  ;;  %1399 = vmatpush1.bf16.msra.mxu1 %v1424_v3  ;;  %v1458_v31 = vld [vmem:[%s1579_s28 + $0x30] ss:$8 sps:$4 sm:$0xff]   ;;  %v1461_v32 = vld [vmem:[%s1579_s28 + $0x100] ss:$8 sps:$4 sm:$0xff]   ;;  %v1462_v33 = vld [vmem:[%s1579_s28 + $0x44] ss:$8 sps:$4 sm:$0xff]  }
  0x16   : > { %619 = vmatprep.subr.bf16.mxu0 %v1521_v1  ;;  %1384 = vmatprep.subr.bf16.mxu1 %v1521_v1  ;;  %v1465_v34 = vld [vmem:[%s1579_s28 + $0x114] ss:$8 sps:$4 sm:$0xff]   ;;  %v1464_v35 = vld [vmem:[%s1579_s28 + $0x40] ss:$8 sps:$4 sm:$0xff]   ;;  %v1467_v36 = vld [vmem:[%s1579_s28 + $0x110] ss:$8 sps:$4 sm:$0xff]  }
  0x17   : > { %v1468_v37 = vld [vmem:[%s1579_s28 + $0x54] ss:$8 sps:$4 sm:$0xff]   ;;  %v1471_v38 = vld [vmem:[%s1579_s28 + $0x124] ss:$8 sps:$4 sm:$0xff]   ;;  %v1470_v39 = vld [vmem:[%s1579_s28 + $0x50] ss:$8 sps:$4 sm:$0xff]  }
  0x18   : > { %v1473_v40 = vld [vmem:[%s1579_s28 + $0x120] ss:$8 sps:$4 sm:$0xff]   ;;  %v1474_v41 = vld [vmem:[%s1579_s28 + $0x64] ss:$8 sps:$4 sm:$0xff]   ;;  %v1477_v42 = vld [vmem:[%s1579_s28 + $0x134] ss:$8 sps:$4 sm:$0xff]  }
  0x19   : > { %620 = vmatpush1.bf16.msra.mxu0 %v1425_v4  ;;  %1400 = vmatpush1.bf16.msra.mxu1 %v1425_v4  ;;  %v1476_v43 = vld [vmem:[%s1579_s28 + $0x60] ss:$8 sps:$4 sm:$0xff]   ;;  %v1479_v44 = vld [vmem:[%s1579_s28 + $0x130] ss:$8 sps:$4 sm:$0xff]   ;;  %v1480_v45 = vld [vmem:[%s1579_s28 + $0x74] ss:$8 sps:$4 sm:$0xff]  }
  0x1a   : > { %621 = vmatprep.subr.bf16.mxu0 %v1521_v1  ;;  %1385 = vmatprep.subr.bf16.mxu1 %v1521_v1  ;;  %v1483_v46 = vld [vmem:[%s1579_s28 + $0x144] ss:$8 sps:$4 sm:$0xff]   ;;  %v1482_v47 = vld [vmem:[%s1579_s28 + $0x70] ss:$8 sps:$4 sm:$0xff]   ;;  %v1485_v48 = vld [vmem:[%s1579_s28 + $0x140] ss:$8 sps:$4 sm:$0xff]  }
  0x1b   : > { %v1486_v49 = vld [vmem:[%s1579_s28 + $0x84] ss:$8 sps:$4 sm:$0xff]   ;;  %v1489_v50 = vld [vmem:[%s1579_s28 + $0x154] ss:$8 sps:$4 sm:$0xff]   ;;  %v1488_v51 = vld [vmem:[%s1579_s28 + $0x80] ss:$8 sps:$4 sm:$0xff]  }
  0x1c   : > { %v1491_v52 = vld [vmem:[%s1579_s28 + $0x150] ss:$8 sps:$4 sm:$0xff]   ;;  %v1492_v53 = vld [vmem:[%s1579_s28 + $0x94] ss:$8 sps:$4 sm:$0xff]   ;;  %v1495_v54 = vld [vmem:[%s1579_s28 + $0x164] ss:$8 sps:$4 sm:$0xff]  }
  0x1d   : > { %622 = vmatpush1.bf16.msra.mxu0 %v1426_v5  ;;  %1401 = vmatpush1.bf16.msra.mxu1 %v1426_v5  ;;  %v1494_v55 = vld [vmem:[%s1579_s28 + $0x90] ss:$8 sps:$4 sm:$0xff]   ;;  %v1497_v56 = vld [vmem:[%s1579_s28 + $0x160] ss:$8 sps:$4 sm:$0xff]   ;;  %v1498_v57 = vld [vmem:[%s1579_s28 + $0xa4] ss:$8 sps:$4 sm:$0xff]  }
  0x1e   : > { %623 = vmatprep.subr.bf16.mxu0 %v1521_v1  ;;  %1386 = vmatprep.subr.bf16.mxu1 %v1521_v1  ;;  %v1501_v58 = vld [vmem:[%s1579_s28 + $0x174] ss:$8 sps:$4 sm:$0xff]   ;;  %v1500_v59 = vld [vmem:[%s1579_s28 + $0xa0] ss:$8 sps:$4 sm:$0xff]   ;;  %v1503_v60 = vld [vmem:[%s1579_s28 + $0x170] ss:$8 sps:$4 sm:$0xff]  }
  0x1f   : > { %v1504_v61 = vld [vmem:[%s1579_s28 + $0xb4] ss:$8 sps:$4 sm:$0xff]   ;;  %v1507_v62 = vld [vmem:[%s1579_s28 + $0x184] ss:$8 sps:$4 sm:$0xff]   ;;  %v1506_v63 = vld [vmem:[%s1579_s28 + $0xb0] ss:$8 sps:$4 sm:$0xff]  }
  0x20   : > { %v1509_v0 = vld [vmem:[%s1579_s28 + $0x180] ss:$8 sps:$4 sm:$0xff]  }
  0x21   : > { %624 = vmatpush1.bf16.msra.mxu0 %v1427_v7  ;;  %1402 = vmatpush1.bf16.msra.mxu1 %v1427_v7  ;;  %v1512_v2 = vld [vmem:[%s1579_s28 + $0xc0] ss:$8 sps:$4 sm:$0xff]  }
  0x22   : > { %625 = vmatprep.subr.bf16.mxu0 %v1521_v1  ;;  %1387 = vmatprep.subr.bf16.mxu1 %v1521_v1  ;;  %v1691_v3 = vld [vmem:[%s1854_s2] ss:$0 sm:$0xff] }
  0x25   : > { %626 = vmatpush1.bf16.msra.mxu0 %v1428_v9  ;;  %1403 = vmatpush1.bf16.msra.mxu1 %v1428_v9 }
  0x26   : > { %627 = vmatprep.subr.bf16.mxu0 %v1521_v1  ;;  %1388 = vmatprep.subr.bf16.mxu1 %v1521_v1 }
  0x29   : > { %628 = vmatpush1.bf16.msra.mxu0 %v1429_v10  ;;  %1404 = vmatpush1.bf16.msra.mxu1 %v1429_v10 }
  0x2a   : > { %629 = vmatprep.subr.bf16.mxu0 %v1521_v1  ;;  %1389 = vmatprep.subr.bf16.mxu1 %v1521_v1 }
  0x2d   : > { %630 = vmatpush2.bf16.msra.mxu0 %v1430_v11  ;;  %1405 = vmatpush2.bf16.msra.mxu1 %v1430_v11 }
  0x2e   : > { %631 = vmatprep.subr.bf16.mxu0 %v1521_v1  ;;  %1390 = vmatprep.subr.bf16.mxu1 %v1521_v1 }
  0x31   : > { %632 = vmatpush2.bf16.msra.mxu0 %v1431_v12  ;;  %1406 = vmatpush2.bf16.msra.mxu1 %v1431_v12 }
  0x32   : > { %633 = vmatprep.subr.bf16.mxu0 %v1521_v1  ;;  %1391 = vmatprep.subr.bf16.mxu1 %v1521_v1 }
  0x35   : > { %634 = vmatpush2.bf16.msra.mxu0 %v1432_v13  ;;  %1407 = vmatpush2.bf16.msra.mxu1 %v1432_v13 }
  0x36   : > { %635 = vmatprep.subr.bf16.mxu0 %v1521_v1  ;;  %1392 = vmatprep.subr.bf16.mxu1 %v1521_v1 }
  0x39   : > { %636 = vmatpush2.bf16.msra.mxu0 %v1433_v14  ;;  %1408 = vmatpush2.bf16.msra.mxu1 %v1433_v14 }
  0x3a   : > { %637 = vmatprep.subr.bf16.mxu0 %v1521_v1  ;;  %1393 = vmatprep.subr.bf16.mxu1 %v1521_v1 }
  0x3d   : > { %638 = vmatpush2.bf16.msra.mxu0 %v1434_v15  ;;  %1409 = vmatpush2.bf16.msra.mxu1 %v1434_v15 }
  0x3e   : > { %639 = vmatprep.subr.bf16.mxu0 %v1521_v1  ;;  %1394 = vmatprep.subr.bf16.mxu1 %v1521_v1 }
  0x41   : > { %640 = vmatpush2.bf16.msra.mxu0 %v1435_v16  ;;  %1410 = vmatpush2.bf16.msra.mxu1 %v1435_v16 }
  0x42   : > { %641 = vmatprep.subr.bf16.mxu0 %v1521_v1  ;;  %1395 = vmatprep.subr.bf16.mxu1 %v1521_v1 }
  0x45   : > { %642 = vmatpush2.bf16.msra.mxu0 %v1436_v17  ;;  %1411 = vmatpush2.bf16.msra.mxu1 %v1436_v17 }
  0x46   : > { %643 = vmatprep.subr.bf16.mxu0 %v1521_v1  ;;  %1396 = vmatprep.subr.bf16.mxu1 %v1521_v1  ;;  %v1510_v1 = vld [vmem:[%s1579_s28 + $0xc4] ss:$8 sps:$4 sm:$0xff]   ;;  %s1699_s28 = scalar_lea.vmem %s1855_s3, %s1210_s29 }
  0x49   : > { %644 = vmatpush2.bf16.msra.mxu0 %v1437_v18  ;;  %1412 = vmatpush2.bf16.msra.mxu1 %v1437_v18 }
  0x4c   : > { %646 = vmatmul.mubr.bf16.vlgmr.msra.gmra.mxu0 %v1438_v19  ;;  %750 = vmatmul.mubr.bf16.vlgmr.msra.gmra.mxu1 %v1441_v20 }
  0x4d   : > { %653 = vmatprep.mubr.bf16.mxu0 %v1444_v21  ;;  %757 = vmatprep.mubr.bf16.mxu1 %v1447_v22 }
  0x54   : > { %654 = vmatmul.mubr.bf16.gmra.mxu0 %v1446_v23  ;;  %758 = vmatmul.mubr.bf16.gmra.mxu1 %v1449_v24 }
  0x55   : > { %661 = vmatprep.mubr.bf16.mxu0 %v1450_v25  ;;  %765 = vmatprep.mubr.bf16.mxu1 %v1453_v26 }
  0x5c   : > { %662 = vmatmul.mubr.bf16.gmra.mxu0 %v1452_v27  ;;  %766 = vmatmul.mubr.bf16.gmra.mxu1 %v1455_v28 }
  0x5d   : > { %669 = vmatprep.mubr.bf16.mxu0 %v1456_v29  ;;  %773 = vmatprep.mubr.bf16.mxu1 %v1459_v30 }
  0x64   : > { %670 = vmatmul.mubr.bf16.gmra.mxu0 %v1458_v31  ;;  %774 = vmatmul.mubr.bf16.gmra.mxu1 %v1461_v32 }
  0x65   : > { %677 = vmatprep.mubr.bf16.mxu0 %v1462_v33  ;;  %781 = vmatprep.mubr.bf16.mxu1 %v1465_v34 }
  0x6c   : > { %678 = vmatmul.mubr.bf16.gmra.mxu0 %v1464_v35  ;;  %782 = vmatmul.mubr.bf16.gmra.mxu1 %v1467_v36 }
  0x6d   : > { %685 = vmatprep.mubr.bf16.mxu0 %v1468_v37  ;;  %789 = vmatprep.mubr.bf16.mxu1 %v1471_v38 }
  0x74   : > { %686 = vmatmul.mubr.bf16.gmra.mxu0 %v1470_v39  ;;  %790 = vmatmul.mubr.bf16.gmra.mxu1 %v1473_v40 }
  0x75   : > { %693 = vmatprep.mubr.bf16.mxu0 %v1474_v41  ;;  %797 = vmatprep.mubr.bf16.mxu1 %v1477_v42 }
  0x7c   : > { %694 = vmatmul.mubr.bf16.gmra.mxu0 %v1476_v43  ;;  %798 = vmatmul.mubr.bf16.gmra.mxu1 %v1479_v44 }
  0x7d   : > { %701 = vmatprep.mubr.bf16.mxu0 %v1480_v45  ;;  %805 = vmatprep.mubr.bf16.mxu1 %v1483_v46 }
  0x84   : > { %702 = vmatmul.mubr.bf16.gmra.mxu0 %v1482_v47  ;;  %806 = vmatmul.mubr.bf16.gmra.mxu1 %v1485_v48 }
  0x85   : > { %709 = vmatprep.mubr.bf16.mxu0 %v1486_v49  ;;  %813 = vmatprep.mubr.bf16.mxu1 %v1489_v50 }
  0x8c   : > { %710 = vmatmul.mubr.bf16.gmra.mxu0 %v1488_v51  ;;  %814 = vmatmul.mubr.bf16.gmra.mxu1 %v1491_v52 }
  0x8d   : > { %717 = vmatprep.mubr.bf16.mxu0 %v1492_v53  ;;  %821 = vmatprep.mubr.bf16.mxu1 %v1495_v54 }
  0x94   : > { %718 = vmatmul.mubr.bf16.gmra.mxu0 %v1494_v55  ;;  %822 = vmatmul.mubr.bf16.gmra.mxu1 %v1497_v56 }
  0x95   : > { %725 = vmatprep.mubr.bf16.mxu0 %v1498_v57  ;;  %829 = vmatprep.mubr.bf16.mxu1 %v1501_v58 }
  0x9c   : > { %726 = vmatmul.mubr.bf16.gmra.mxu0 %v1500_v59  ;;  %830 = vmatmul.mubr.bf16.gmra.mxu1 %v1503_v60 }
  0x9d   : > { %733 = vmatprep.mubr.bf16.mxu0 %v1504_v61  ;;  %837 = vmatprep.mubr.bf16.mxu1 %v1507_v62 }
  0xa4   : > { %734 = vmatmul.mubr.bf16.gmra.mxu0 %v1506_v63  ;;  %838 = vmatmul.mubr.bf16.gmra.mxu1 %v1509_v0 }
  0xa5   : > { %741 = vmatprep.mubr.bf16.mxu0 %v1510_v1 }
  0xac   : > { %742 = vmatmul.mubr.bf16.gmra.mxu0 %v1512_v2 }
 0x10c   : > { %v647_v4 = vpop.f32.mrf.mxu0  ;;  %v751_v5 = vpop.f32.mrf.mxu1 }
 0x10d   : > { %v648_v6 = vadd.f32 %v1691_v3, %v647_v4  ;;  %v752_v7 = vadd.f32 %v1691_v3, %v751_v5 }
 0x10e   : > { %v649_v8 = vpop.f32.mrf.mxu0  ;;  %v753_v9 = vpop.f32.mrf.mxu1 }
 0x10f   : > { %v846_v10 = vmax.f32 %v648_v6, 0.0  ;;  %v872_v11 = vmax.f32 %v752_v7, 0.0 }
 0x110   : > { %v650_v12 = vpop.f32.mrf.mxu0  ;;  %v754_v13 = vpop.f32.mrf.mxu1 }
 0x111   : > { %v1331_v14 = vpack.c.bf16 %v846_v10, %v846_v10  ;;  %v1357_v15 = vpack.c.bf16 %v872_v11, %v872_v11  ;;  %v651_v16 = vadd.f32 %v1691_v3, %v650_v12  ;;  %v755_v17 = vadd.f32 %v1691_v3, %v754_v13 }
 0x112   : > { %v652_v18 = vpop.f32.mrf.mxu0  ;;  %v756_v19 = vpop.f32.mrf.mxu1 }
 0x113   : > { %1097 = vst.msk [vmem:[%s1699_s28] sm:$0xf] %vm1096_vm0, %v1331_v14  ;;  %1123 = vst.msk [vmem:[%s1699_s28 + $0x68] sm:$0xf] %vm1096_vm0, %v1357_v15  ;;  %v847_v20 = vmax.f32 %v651_v16, 0.0  ;;  %v873_v21 = vmax.f32 %v755_v17, 0.0 }
 0x114   : > { %v655_v22 = vpop.f32.mrf.mxu0  ;;  %v759_v23 = vpop.f32.mrf.mxu1 }
 0x115   : > { %v1332_v24 = vpack.c.bf16 %v847_v20, %v847_v20  ;;  %v1358_v25 = vpack.c.bf16 %v873_v21, %v873_v21  ;;  %v656_v26 = vadd.f32 %v1691_v3, %v655_v22  ;;  %v760_v27 = vadd.f32 %v1691_v3, %v759_v23 }
 0x116   : > { %v657_v28 = vpop.f32.mrf.mxu0  ;;  %v761_v29 = vpop.f32.mrf.mxu1 }
 0x117   : > { %1098 = vst.msk [vmem:[%s1699_s28 + $0x4] sm:$0xf] %vm1096_vm0, %v1332_v24  ;;  %1124 = vst.msk [vmem:[%s1699_s28 + $0x6c] sm:$0xf] %vm1096_vm0, %v1358_v25  ;;  %v848_v30 = vmax.f32 %v656_v26, 0.0  ;;  %v874_v31 = vmax.f32 %v760_v27, 0.0 }
 0x118   : > { %v658_v32 = vpop.f32.mrf.mxu0  ;;  %v762_v33 = vpop.f32.mrf.mxu1 }
 0x119   : > { %v1333_v34 = vpack.c.bf16 %v848_v30, %v848_v30  ;;  %v1359_v35 = vpack.c.bf16 %v874_v31, %v874_v31  ;;  %v659_v36 = vadd.f32 %v1691_v3, %v658_v32  ;;  %v763_v37 = vadd.f32 %v1691_v3, %v762_v33 }
 0x11a   : > { %v660_v38 = vpop.f32.mrf.mxu0  ;;  %v764_v39 = vpop.f32.mrf.mxu1 }
 0x11b   : > { %1099 = vst.msk [vmem:[%s1699_s28 + $0x8] sm:$0xf] %vm1096_vm0, %v1333_v34  ;;  %1125 = vst.msk [vmem:[%s1699_s28 + $0x70] sm:$0xf] %vm1096_vm0, %v1359_v35  ;;  %v849_v40 = vmax.f32 %v659_v36, 0.0  ;;  %v875_v41 = vmax.f32 %v763_v37, 0.0 }
 0x11c   : > { %v663_v42 = vpop.f32.mrf.mxu0  ;;  %v767_v43 = vpop.f32.mrf.mxu1 }
 0x11d   : > { %v1334_v44 = vpack.c.bf16 %v849_v40, %v849_v40  ;;  %v1360_v45 = vpack.c.bf16 %v875_v41, %v875_v41  ;;  %v664_v46 = vadd.f32 %v1691_v3, %v663_v42  ;;  %v768_v47 = vadd.f32 %v1691_v3, %v767_v43 }
 0x11e   : > { %v665_v48 = vpop.f32.mrf.mxu0  ;;  %v769_v49 = vpop.f32.mrf.mxu1 }
 0x11f   : > { %1100 = vst.msk [vmem:[%s1699_s28 + $0xc] sm:$0xf] %vm1096_vm0, %v1334_v44  ;;  %1126 = vst.msk [vmem:[%s1699_s28 + $0x74] sm:$0xf] %vm1096_vm0, %v1360_v45  ;;  %v850_v50 = vmax.f32 %v664_v46, 0.0  ;;  %v876_v51 = vmax.f32 %v768_v47, 0.0 }
 0x120   : > { %v666_v52 = vpop.f32.mrf.mxu0  ;;  %v770_v53 = vpop.f32.mrf.mxu1 }
 0x121   : > { %v1335_v54 = vpack.c.bf16 %v850_v50, %v850_v50  ;;  %v1361_v55 = vpack.c.bf16 %v876_v51, %v876_v51  ;;  %v667_v56 = vadd.f32 %v1691_v3, %v666_v52  ;;  %v771_v57 = vadd.f32 %v1691_v3, %v770_v53 }
 0x122   : > { %v668_v58 = vpop.f32.mrf.mxu0  ;;  %v772_v59 = vpop.f32.mrf.mxu1 }
 0x123   : > { %1101 = vst.msk [vmem:[%s1699_s28 + $0x10] sm:$0xf] %vm1096_vm0, %v1335_v54  ;;  %1127 = vst.msk [vmem:[%s1699_s28 + $0x78] sm:$0xf] %vm1096_vm0, %v1361_v55  ;;  %v851_v60 = vmax.f32 %v667_v56, 0.0  ;;  %v877_v61 = vmax.f32 %v771_v57, 0.0 }
 0x124   : > { %v671_v62 = vpop.f32.mrf.mxu0  ;;  %v775_v63 = vpop.f32.mrf.mxu1 }
 0x125   : > { %v1336_v0 = vpack.c.bf16 %v851_v60, %v851_v60  ;;  %v1362_v1 = vpack.c.bf16 %v877_v61, %v877_v61  ;;  %v672_v2 = vadd.f32 %v1691_v3, %v671_v62  ;;  %v776_v4 = vadd.f32 %v1691_v3, %v775_v63 }
 0x126   : > { %v673_v5 = vpop.f32.mrf.mxu0  ;;  %v777_v6 = vpop.f32.mrf.mxu1 }
 0x127   : > { %1102 = vst.msk [vmem:[%s1699_s28 + $0x14] sm:$0xf] %vm1096_vm0, %v1336_v0  ;;  %1128 = vst.msk [vmem:[%s1699_s28 + $0x7c] sm:$0xf] %vm1096_vm0, %v1362_v1  ;;  %v852_v7 = vmax.f32 %v672_v2, 0.0  ;;  %v878_v8 = vmax.f32 %v776_v4, 0.0 }
 0x128   : > { %v674_v9 = vpop.f32.mrf.mxu0  ;;  %v778_v10 = vpop.f32.mrf.mxu1 }
 0x129   : > { %v1337_v11 = vpack.c.bf16 %v852_v7, %v852_v7  ;;  %v1363_v12 = vpack.c.bf16 %v878_v8, %v878_v8  ;;  %v675_v13 = vadd.f32 %v1691_v3, %v674_v9  ;;  %v779_v14 = vadd.f32 %v1691_v3, %v778_v10 }
 0x12a   : > { %v676_v15 = vpop.f32.mrf.mxu0  ;;  %v780_v16 = vpop.f32.mrf.mxu1 }
 0x12b   : > { %1103 = vst.msk [vmem:[%s1699_s28 + $0x18] sm:$0xf] %vm1096_vm0, %v1337_v11  ;;  %1129 = vst.msk [vmem:[%s1699_s28 + $0x80] sm:$0xf] %vm1096_vm0, %v1363_v12  ;;  %v853_v17 = vmax.f32 %v675_v13, 0.0  ;;  %v879_v18 = vmax.f32 %v779_v14, 0.0 }
 0x12c   : > { %v679_v19 = vpop.f32.mrf.mxu0  ;;  %v783_v20 = vpop.f32.mrf.mxu1 }
 0x12d   : > { %v1338_v21 = vpack.c.bf16 %v853_v17, %v853_v17  ;;  %v1364_v22 = vpack.c.bf16 %v879_v18, %v879_v18  ;;  %v680_v23 = vadd.f32 %v1691_v3, %v679_v19  ;;  %v784_v24 = vadd.f32 %v1691_v3, %v783_v20 }
 0x12e   : > { %v681_v25 = vpop.f32.mrf.mxu0  ;;  %v785_v26 = vpop.f32.mrf.mxu1 }
 0x12f   : > { %1104 = vst.msk [vmem:[%s1699_s28 + $0x1c] sm:$0xf] %vm1096_vm0, %v1338_v21  ;;  %1130 = vst.msk [vmem:[%s1699_s28 + $0x84] sm:$0xf] %vm1096_vm0, %v1364_v22  ;;  %v854_v27 = vmax.f32 %v680_v23, 0.0  ;;  %v880_v28 = vmax.f32 %v784_v24, 0.0 }
 0x130   : > { %v682_v29 = vpop.f32.mrf.mxu0  ;;  %v786_v30 = vpop.f32.mrf.mxu1 }
 0x131   : > { %v1339_v31 = vpack.c.bf16 %v854_v27, %v854_v27  ;;  %v1365_v32 = vpack.c.bf16 %v880_v28, %v880_v28  ;;  %v683_v33 = vadd.f32 %v1691_v3, %v682_v29  ;;  %v787_v34 = vadd.f32 %v1691_v3, %v786_v30 }
 0x132   : > { %v684_v35 = vpop.f32.mrf.mxu0  ;;  %v788_v36 = vpop.f32.mrf.mxu1 }
 0x133   : > { %1105 = vst.msk [vmem:[%s1699_s28 + $0x20] sm:$0xf] %vm1096_vm0, %v1339_v31  ;;  %1131 = vst.msk [vmem:[%s1699_s28 + $0x88] sm:$0xf] %vm1096_vm0, %v1365_v32  ;;  %v855_v37 = vmax.f32 %v683_v33, 0.0  ;;  %v881_v38 = vmax.f32 %v787_v34, 0.0 }
 0x134   : > { %v687_v39 = vpop.f32.mrf.mxu0  ;;  %v791_v40 = vpop.f32.mrf.mxu1 }
 0x135   : > { %v1340_v41 = vpack.c.bf16 %v855_v37, %v855_v37  ;;  %v1366_v42 = vpack.c.bf16 %v881_v38, %v881_v38  ;;  %v688_v43 = vadd.f32 %v1691_v3, %v687_v39  ;;  %v792_v44 = vadd.f32 %v1691_v3, %v791_v40 }
 0x136   : > { %v689_v45 = vpop.f32.mrf.mxu0  ;;  %v793_v46 = vpop.f32.mrf.mxu1 }
 0x137   : > { %1106 = vst.msk [vmem:[%s1699_s28 + $0x24] sm:$0xf] %vm1096_vm0, %v1340_v41  ;;  %1132 = vst.msk [vmem:[%s1699_s28 + $0x8c] sm:$0xf] %vm1096_vm0, %v1366_v42  ;;  %v856_v47 = vmax.f32 %v688_v43, 0.0  ;;  %v882_v48 = vmax.f32 %v792_v44, 0.0 }
 0x138   : > { %v690_v49 = vpop.f32.mrf.mxu0  ;;  %v794_v50 = vpop.f32.mrf.mxu1 }
 0x139   : > { %v1341_v51 = vpack.c.bf16 %v856_v47, %v856_v47  ;;  %v1367_v52 = vpack.c.bf16 %v882_v48, %v882_v48  ;;  %v691_v53 = vadd.f32 %v1691_v3, %v690_v49  ;;  %v795_v54 = vadd.f32 %v1691_v3, %v794_v50 }
 0x13a   : > { %v692_v55 = vpop.f32.mrf.mxu0  ;;  %v796_v56 = vpop.f32.mrf.mxu1 }
 0x13b   : > { %1107 = vst.msk [vmem:[%s1699_s28 + $0x28] sm:$0xf] %vm1096_vm0, %v1341_v51  ;;  %1133 = vst.msk [vmem:[%s1699_s28 + $0x90] sm:$0xf] %vm1096_vm0, %v1367_v52  ;;  %v857_v57 = vmax.f32 %v691_v53, 0.0  ;;  %v883_v58 = vmax.f32 %v795_v54, 0.0 }
 0x13c   : > { %v695_v59 = vpop.f32.mrf.mxu0  ;;  %v799_v60 = vpop.f32.mrf.mxu1 }
 0x13d   : > { %v1342_v61 = vpack.c.bf16 %v857_v57, %v857_v57  ;;  %v1368_v62 = vpack.c.bf16 %v883_v58, %v883_v58  ;;  %v696_v63 = vadd.f32 %v1691_v3, %v695_v59  ;;  %v800_v0 = vadd.f32 %v1691_v3, %v799_v60 }
 0x13e   : > { %v697_v1 = vpop.f32.mrf.mxu0  ;;  %v801_v2 = vpop.f32.mrf.mxu1 }
 0x13f   : > { %1108 = vst.msk [vmem:[%s1699_s28 + $0x2c] sm:$0xf] %vm1096_vm0, %v1342_v61  ;;  %1134 = vst.msk [vmem:[%s1699_s28 + $0x94] sm:$0xf] %vm1096_vm0, %v1368_v62  ;;  %v858_v4 = vmax.f32 %v696_v63, 0.0  ;;  %v884_v5 = vmax.f32 %v800_v0, 0.0 }
 0x140   : > { %v698_v6 = vpop.f32.mrf.mxu0  ;;  %v802_v7 = vpop.f32.mrf.mxu1 }
 0x141   : > { %v1343_v8 = vpack.c.bf16 %v858_v4, %v858_v4  ;;  %v1369_v9 = vpack.c.bf16 %v884_v5, %v884_v5  ;;  %v699_v10 = vadd.f32 %v1691_v3, %v698_v6  ;;  %v803_v11 = vadd.f32 %v1691_v3, %v802_v7 }
 0x142   : > { %v700_v12 = vpop.f32.mrf.mxu0  ;;  %v804_v13 = vpop.f32.mrf.mxu1 }
 0x143   : > { %1109 = vst.msk [vmem:[%s1699_s28 + $0x30] sm:$0xf] %vm1096_vm0, %v1343_v8  ;;  %1135 = vst.msk [vmem:[%s1699_s28 + $0x98] sm:$0xf] %vm1096_vm0, %v1369_v9  ;;  %v859_v14 = vmax.f32 %v699_v10, 0.0  ;;  %v885_v15 = vmax.f32 %v803_v11, 0.0 }
 0x144   : > { %v703_v16 = vpop.f32.mrf.mxu0  ;;  %v807_v17 = vpop.f32.mrf.mxu1 }
 0x145   : > { %v1344_v18 = vpack.c.bf16 %v859_v14, %v859_v14  ;;  %v1370_v19 = vpack.c.bf16 %v885_v15, %v885_v15  ;;  %v704_v20 = vadd.f32 %v1691_v3, %v703_v16  ;;  %v808_v21 = vadd.f32 %v1691_v3, %v807_v17 }
 0x146   : > { %v705_v22 = vpop.f32.mrf.mxu0  ;;  %v809_v23 = vpop.f32.mrf.mxu1 }
 0x147   : > { %1110 = vst.msk [vmem:[%s1699_s28 + $0x34] sm:$0xf] %vm1096_vm0, %v1344_v18  ;;  %1136 = vst.msk [vmem:[%s1699_s28 + $0x9c] sm:$0xf] %vm1096_vm0, %v1370_v19  ;;  %v860_v24 = vmax.f32 %v704_v20, 0.0  ;;  %v886_v25 = vmax.f32 %v808_v21, 0.0 }
 0x148   : > { %v706_v26 = vpop.f32.mrf.mxu0  ;;  %v810_v27 = vpop.f32.mrf.mxu1 }
 0x149   : > { %v1345_v28 = vpack.c.bf16 %v860_v24, %v860_v24  ;;  %v1371_v29 = vpack.c.bf16 %v886_v25, %v886_v25  ;;  %v707_v30 = vadd.f32 %v1691_v3, %v706_v26  ;;  %v811_v31 = vadd.f32 %v1691_v3, %v810_v27 }
 0x14a   : > { %v708_v32 = vpop.f32.mrf.mxu0  ;;  %v812_v33 = vpop.f32.mrf.mxu1 }
 0x14b   : > { %1111 = vst.msk [vmem:[%s1699_s28 + $0x38] sm:$0xf] %vm1096_vm0, %v1345_v28  ;;  %1137 = vst.msk [vmem:[%s1699_s28 + $0xa0] sm:$0xf] %vm1096_vm0, %v1371_v29  ;;  %v861_v34 = vmax.f32 %v707_v30, 0.0  ;;  %v887_v35 = vmax.f32 %v811_v31, 0.0 }
 0x14c   : > { %v711_v36 = vpop.f32.mrf.mxu0  ;;  %v815_v37 = vpop.f32.mrf.mxu1 }
 0x14d   : > { %v1346_v38 = vpack.c.bf16 %v861_v34, %v861_v34  ;;  %v1372_v39 = vpack.c.bf16 %v887_v35, %v887_v35  ;;  %v712_v40 = vadd.f32 %v1691_v3, %v711_v36  ;;  %v816_v41 = vadd.f32 %v1691_v3, %v815_v37 }
 0x14e   : > { %v713_v42 = vpop.f32.mrf.mxu0  ;;  %v817_v43 = vpop.f32.mrf.mxu1 }
 0x14f   : > { %1112 = vst.msk [vmem:[%s1699_s28 + $0x3c] sm:$0xf] %vm1096_vm0, %v1346_v38  ;;  %1138 = vst.msk [vmem:[%s1699_s28 + $0xa4] sm:$0xf] %vm1096_vm0, %v1372_v39  ;;  %v862_v44 = vmax.f32 %v712_v40, 0.0  ;;  %v888_v45 = vmax.f32 %v816_v41, 0.0 }
 0x150   : > { %v714_v46 = vpop.f32.mrf.mxu0  ;;  %v818_v47 = vpop.f32.mrf.mxu1 }
 0x151   : > { %v1347_v48 = vpack.c.bf16 %v862_v44, %v862_v44  ;;  %v1373_v49 = vpack.c.bf16 %v888_v45, %v888_v45  ;;  %v715_v50 = vadd.f32 %v1691_v3, %v714_v46  ;;  %v819_v51 = vadd.f32 %v1691_v3, %v818_v47 }
 0x152   : > { %v716_v52 = vpop.f32.mrf.mxu0  ;;  %v820_v53 = vpop.f32.mrf.mxu1 }
 0x153   : > { %1113 = vst.msk [vmem:[%s1699_s28 + $0x40] sm:$0xf] %vm1096_vm0, %v1347_v48  ;;  %1139 = vst.msk [vmem:[%s1699_s28 + $0xa8] sm:$0xf] %vm1096_vm0, %v1373_v49  ;;  %v863_v54 = vmax.f32 %v715_v50, 0.0  ;;  %v889_v55 = vmax.f32 %v819_v51, 0.0 }
 0x154   : > { %v719_v56 = vpop.f32.mrf.mxu0  ;;  %v823_v57 = vpop.f32.mrf.mxu1 }
 0x155   : > { %v1348_v58 = vpack.c.bf16 %v863_v54, %v863_v54  ;;  %v1374_v59 = vpack.c.bf16 %v889_v55, %v889_v55  ;;  %v720_v60 = vadd.f32 %v1691_v3, %v719_v56  ;;  %v824_v61 = vadd.f32 %v1691_v3, %v823_v57 }
 0x156   : > { %v721_v62 = vpop.f32.mrf.mxu0  ;;  %v825_v63 = vpop.f32.mrf.mxu1 }
 0x157   : > { %1114 = vst.msk [vmem:[%s1699_s28 + $0x44] sm:$0xf] %vm1096_vm0, %v1348_v58  ;;  %1140 = vst.msk [vmem:[%s1699_s28 + $0xac] sm:$0xf] %vm1096_vm0, %v1374_v59  ;;  %v864_v0 = vmax.f32 %v720_v60, 0.0  ;;  %v890_v1 = vmax.f32 %v824_v61, 0.0 }
 0x158   : > { %v722_v2 = vpop.f32.mrf.mxu0  ;;  %v826_v4 = vpop.f32.mrf.mxu1 }
 0x159   : > { %v1349_v5 = vpack.c.bf16 %v864_v0, %v864_v0  ;;  %v1375_v6 = vpack.c.bf16 %v890_v1, %v890_v1  ;;  %v723_v7 = vadd.f32 %v1691_v3, %v722_v2  ;;  %v827_v8 = vadd.f32 %v1691_v3, %v826_v4 }
 0x15a   : > { %v724_v9 = vpop.f32.mrf.mxu0  ;;  %v828_v10 = vpop.f32.mrf.mxu1 }
 0x15b   : > { %1115 = vst.msk [vmem:[%s1699_s28 + $0x48] sm:$0xf] %vm1096_vm0, %v1349_v5  ;;  %1141 = vst.msk [vmem:[%s1699_s28 + $0xb0] sm:$0xf] %vm1096_vm0, %v1375_v6  ;;  %v865_v11 = vmax.f32 %v723_v7, 0.0  ;;  %v891_v12 = vmax.f32 %v827_v8, 0.0 }
 0x15c   : > { %v727_v13 = vpop.f32.mrf.mxu0  ;;  %v831_v14 = vpop.f32.mrf.mxu1 }
 0x15d   : > { %v1350_v15 = vpack.c.bf16 %v865_v11, %v865_v11  ;;  %v1376_v16 = vpack.c.bf16 %v891_v12, %v891_v12  ;;  %v728_v17 = vadd.f32 %v1691_v3, %v727_v13  ;;  %v832_v18 = vadd.f32 %v1691_v3, %v831_v14 }
 0x15e   : > { %v729_v19 = vpop.f32.mrf.mxu0  ;;  %v833_v20 = vpop.f32.mrf.mxu1 }
 0x15f   : > { %1116 = vst.msk [vmem:[%s1699_s28 + $0x4c] sm:$0xf] %vm1096_vm0, %v1350_v15  ;;  %1142 = vst.msk [vmem:[%s1699_s28 + $0xb4] sm:$0xf] %vm1096_vm0, %v1376_v16  ;;  %v866_v21 = vmax.f32 %v728_v17, 0.0  ;;  %v892_v22 = vmax.f32 %v832_v18, 0.0 }
 0x160   : > { %v730_v23 = vpop.f32.mrf.mxu0  ;;  %v834_v24 = vpop.f32.mrf.mxu1 }
 0x161   : > { %v1351_v25 = vpack.c.bf16 %v866_v21, %v866_v21  ;;  %v1377_v26 = vpack.c.bf16 %v892_v22, %v892_v22  ;;  %v731_v27 = vadd.f32 %v1691_v3, %v730_v23  ;;  %v835_v28 = vadd.f32 %v1691_v3, %v834_v24 }
 0x162   : > { %v732_v29 = vpop.f32.mrf.mxu0  ;;  %v836_v30 = vpop.f32.mrf.mxu1 }
 0x163   : > { %1117 = vst.msk [vmem:[%s1699_s28 + $0x50] sm:$0xf] %vm1096_vm0, %v1351_v25  ;;  %1143 = vst.msk [vmem:[%s1699_s28 + $0xb8] sm:$0xf] %vm1096_vm0, %v1377_v26  ;;  %v867_v31 = vmax.f32 %v731_v27, 0.0  ;;  %v893_v32 = vmax.f32 %v835_v28, 0.0 }
 0x164   : > { %v735_v33 = vpop.f32.mrf.mxu0  ;;  %v839_v34 = vpop.f32.mrf.mxu1 }
 0x165   : > { %v1352_v35 = vpack.c.bf16 %v867_v31, %v867_v31  ;;  %v1378_v36 = vpack.c.bf16 %v893_v32, %v893_v32  ;;  %v736_v37 = vadd.f32 %v1691_v3, %v735_v33  ;;  %v840_v38 = vadd.f32 %v1691_v3, %v839_v34 }
 0x166   : > { %v737_v39 = vpop.f32.mrf.mxu0  ;;  %v841_v40 = vpop.f32.mrf.mxu1 }
 0x167   : > { %1118 = vst.msk [vmem:[%s1699_s28 + $0x54] sm:$0xf] %vm1096_vm0, %v1352_v35  ;;  %1144 = vst.msk [vmem:[%s1699_s28 + $0xbc] sm:$0xf] %vm1096_vm0, %v1378_v36  ;;  %v868_v41 = vmax.f32 %v736_v37, 0.0  ;;  %v894_v42 = vmax.f32 %v840_v38, 0.0 }
 0x168   : > { %v738_v43 = vpop.f32.mrf.mxu0  ;;  %v842_v44 = vpop.f32.mrf.mxu1 }
 0x169   : > { %v1353_v45 = vpack.c.bf16 %v868_v41, %v868_v41  ;;  %v1379_v46 = vpack.c.bf16 %v894_v42, %v894_v42  ;;  %v739_v47 = vadd.f32 %v1691_v3, %v738_v43  ;;  %v843_v48 = vadd.f32 %v1691_v3, %v842_v44 }
 0x16a   : > { %v740_v49 = vpop.f32.mrf.mxu0  ;;  %v844_v50 = vpop.f32.mrf.mxu1 }
 0x16b   : > { %1119 = vst.msk [vmem:[%s1699_s28 + $0x58] sm:$0xf] %vm1096_vm0, %v1353_v45  ;;  %1145 = vst.msk [vmem:[%s1699_s28 + $0xc0] sm:$0xf] %vm1096_vm0, %v1379_v46  ;;  %v869_v51 = vmax.f32 %v739_v47, 0.0  ;;  %v895_v52 = vmax.f32 %v843_v48, 0.0 }
 0x16c   : > { %v743_v53 = vpop.f32.mrf.mxu0 }
 0x16d   : > { %v1354_v54 = vpack.c.bf16 %v869_v51, %v869_v51  ;;  %v1380_v55 = vpack.c.bf16 %v895_v52, %v895_v52  ;;  %v744_v56 = vadd.f32 %v1691_v3, %v743_v53 }
 0x16e   : > { %v745_v57 = vpop.f32.mrf.mxu0 }
 0x16f   : > { %1120 = vst.msk [vmem:[%s1699_s28 + $0x5c] sm:$0xf] %vm1096_vm0, %v1354_v54  ;;  %1146 = vst.msk [vmem:[%s1699_s28 + $0xc4] sm:$0xf] %vm1096_vm0, %v1380_v55  ;;  %v870_v58 = vmax.f32 %v744_v56, 0.0 }
 0x170   : > { %v746_v59 = vpop.f32.mrf.mxu0 }
 0x171   : > { %v1355_v60 = vpack.c.bf16 %v870_v58, %v870_v58  ;;  %v747_v61 = vadd.f32 %v1691_v3, %v746_v59 }
 0x172   : > { %v748_v62 = vpop.f32.mrf.mxu0 }
 0x173   : > { %1121 = vst.msk [vmem:[%s1699_s28 + $0x60] sm:$0xf] %vm1096_vm0, %v1355_v60  ;;  %v871_v63 = vmax.f32 %v747_v61, 0.0 }
 0x175   : > { %v1356_v0 = vpack.c.bf16 %v871_v63, %v871_v63 }
 0x177   : > { %1122 = vst.msk [vmem:[%s1699_s28 + $0x64] sm:$0xf] %vm1096_vm0, %v1356_v0 }
 0x178 PF: > { %s13_s12 = sadd.s32 1, %s1519_s12  }
 0x179   : > { %p10_p4 = scmp.ge.s32.totalorder %s13_s12, 4  }
 0x17b   :  { %12 = sbr.rel (!%p10_p4) target bundleno = 1 (0x1), region = 62 }

// kernel: ddqn_forward.5
= control target key start
LH: loop header
LB: loop body
LE: loop exit
PB: predicated region body
PF: predicated region fallthrough
CT: control target
= control target key end

     0   :  { %vm880_vm0 = vcmask 519168   ;;  %vm901_vm1 = vcmask 516096   ;;  %s1637_s1 = inlined_call_operand.vmem [shape: bf16[512,64], index: 1, kind: input, shape index: {}]   ;;  %s1638_s0 = inlined_call_operand.vmem [shape: bf16[162,512], index: 0, kind: input, shape index: {}]   ;;  %s1639_s2 = inlined_call_operand.vmem [shape: f32[1,64], index: 2, kind: input, shape index: {}]   ;;  %s1640_s3 = inlined_call_operand.vmem [shape: bf16[162,64], index: 3, kind: output, shape index: {}]  }
   0x1   :  { %v1190_v0 = vld [vmem:[%s1637_s1 + $0x78] sm:$0xff]   ;;  %v1194_v4 = vld [vmem:[%s1637_s1 + $0x70] sm:$0xff]   ;;  %v1198_v8 = vld [vmem:[%s1637_s1 + $0x68] sm:$0xff]  }
   0x2   :  { %v1191_v1 = vld [vmem:[%s1637_s1 + $0xf8] sm:$0xff]   ;;  %1026 = vmatprep.subr.bf16.mxu0 %v1190_v0  ;;  %v1195_v5 = vld [vmem:[%s1637_s1 + $0xf0] sm:$0xff]   ;;  %v1199_v9 = vld [vmem:[%s1637_s1 + $0xe8] sm:$0xff]  }
   0x3   :  { %v1192_v2 = vld [vmem:[%s1637_s1 + $0x38] sm:$0xff]   ;;  %1108 = vmatprep.subr.bf16.mxu1 %v1191_v1  ;;  %v1196_v6 = vld [vmem:[%s1637_s1 + $0x30] sm:$0xff]   ;;  %v1200_v10 = vld [vmem:[%s1637_s1 + $0x28] sm:$0xff]  }
   0x4   :  { %v1193_v3 = vld [vmem:[%s1637_s1 + $0xb8] sm:$0xff]   ;;  %1027 = vmatpush3.bf16.msra.mxu0 %v1192_v2  ;;  %v1197_v7 = vld [vmem:[%s1637_s1 + $0xb0] sm:$0xff]   ;;  %v1201_v11 = vld [vmem:[%s1637_s1 + $0xa8] sm:$0xff]  }
   0x5   :  { %1109 = vmatpush3.bf16.msra.mxu1 %v1193_v3  ;;  %1028 = vmatprep.subr.bf16.mxu0 %v1194_v4  ;;  %v1202_v12 = vld [vmem:[%s1637_s1 + $0x60] sm:$0xff]   ;;  %v1206_v16 = vld [vmem:[%s1637_s1 + $0x58] sm:$0xff]   ;;  %v1210_v20 = vld [vmem:[%s1637_s1 + $0x50] sm:$0xff]  }
   0x6   :  { %1110 = vmatprep.subr.bf16.mxu1 %v1195_v5  ;;  %v1203_v13 = vld [vmem:[%s1637_s1 + $0xe0] sm:$0xff]   ;;  %v1207_v17 = vld [vmem:[%s1637_s1 + $0xd8] sm:$0xff]   ;;  %v1211_v21 = vld [vmem:[%s1637_s1 + $0xd0] sm:$0xff]  }
   0x7   :  { %v1204_v14 = vld [vmem:[%s1637_s1 + $0x20] sm:$0xff]   ;;  %v1208_v18 = vld [vmem:[%s1637_s1 + $0x18] sm:$0xff]   ;;  %v1212_v22 = vld [vmem:[%s1637_s1 + $0x10] sm:$0xff]  }
   0x8   :  { %1029 = vmatpush3.bf16.msra.mxu0 %v1196_v6  ;;  %v1205_v15 = vld [vmem:[%s1637_s1 + $0xa0] sm:$0xff]   ;;  %v1209_v19 = vld [vmem:[%s1637_s1 + $0x98] sm:$0xff]   ;;  %v1213_v23 = vld [vmem:[%s1637_s1 + $0x90] sm:$0xff]  }
   0x9   :  { %1111 = vmatpush3.bf16.msra.mxu1 %v1197_v7  ;;  %1030 = vmatprep.subr.bf16.mxu0 %v1198_v8  ;;  %v1214_v24 = vld [vmem:[%s1637_s1 + $0x48] sm:$0xff]   ;;  %v1218_v28 = vld [vmem:[%s1637_s1 + $0x40] sm:$0xff]  }
   0xa   :  { %1112 = vmatprep.subr.bf16.mxu1 %v1199_v9  ;;  %v1215_v25 = vld [vmem:[%s1637_s1 + $0xc8] sm:$0xff]   ;;  %v1219_v29 = vld [vmem:[%s1637_s1 + $0xc0] sm:$0xff]  }
   0xb   :  { %v1216_v26 = vld [vmem:[%s1637_s1 + $0x8] sm:$0xff]   ;;  %v1220_v30 = vld [vmem:[%s1637_s1] sm:$0xff]  }
   0xc   :  { %1031 = vmatpush3.bf16.msra.mxu0 %v1200_v10  ;;  %v1217_v27 = vld [vmem:[%s1637_s1 + $0x88] sm:$0xff]   ;;  %v1221_v31 = vld [vmem:[%s1637_s1 + $0x80] sm:$0xff]  }
   0xd   :  { %1113 = vmatpush3.bf16.msra.mxu1 %v1201_v11  ;;  %1032 = vmatprep.subr.bf16.mxu0 %v1202_v12  ;;  %v1222_v32 = vld [vmem:[%s1638_s0] ss:$16 sps:$4 sm:$0xff]   ;;  %v1224_v33 = vld [vmem:[%s1638_s0 + $0x4] ss:$16 sps:$4 sm:$0xff]   ;;  %v1225_v34 = vld [vmem:[%s1638_s0 + $0x8] ss:$16 sps:$4 sm:$0xff]  }
   0xe   :  { %1114 = vmatprep.subr.bf16.mxu1 %v1203_v13  ;;  %v1227_v35 = vld [vmem:[%s1638_s0 + $0xc] ss:$16 sps:$4 sm:$0xff]   ;;  %566 = vmatprep.mubr.bf16.mxu0 %v1224_v33  ;;  %v1228_v36 = vld [vmem:[%s1638_s0 + $0x24] ss:$16 sps:$4 sm:$0xff]   ;;  %v1232_v38 = vld [vmem:[%s1638_s0 + $0x20] ss:$16 sps:$4 sm:$0xff]  }
   0xf   :  { %686 = vmatprep.mubr.bf16.mxu1 %v1227_v35  ;;  %v1230_v37 = vld [vmem:[%s1638_s0 + $0x2c] ss:$16 sps:$4 sm:$0xff]   ;;  %v1233_v39 = vld [vmem:[%s1638_s0 + $0x28] ss:$16 sps:$4 sm:$0xff]   ;;  %v1234_v40 = vld [vmem:[%s1638_s0 + $0x44] ss:$16 sps:$4 sm:$0xff]  }
  0x10   :  { %1033 = vmatpush3.bf16.msra.mxu0 %v1204_v14  ;;  %v1236_v41 = vld [vmem:[%s1638_s0 + $0x4c] ss:$16 sps:$4 sm:$0xff]   ;;  %v1238_v42 = vld [vmem:[%s1638_s0 + $0x40] ss:$16 sps:$4 sm:$0xff]   ;;  %v1239_v43 = vld [vmem:[%s1638_s0 + $0x48] ss:$16 sps:$4 sm:$0xff]  }
  0x11   :  { %1115 = vmatpush3.bf16.msra.mxu1 %v1205_v15  ;;  %1034 = vmatprep.subr.bf16.mxu0 %v1206_v16  ;;  %v1240_v44 = vld [vmem:[%s1638_s0 + $0x64] ss:$16 sps:$4 sm:$0xff]   ;;  %v1242_v45 = vld [vmem:[%s1638_s0 + $0x6c] ss:$16 sps:$4 sm:$0xff]   ;;  %v1244_v46 = vld [vmem:[%s1638_s0 + $0x60] ss:$16 sps:$4 sm:$0xff]  }
  0x12   :  { %1116 = vmatprep.subr.bf16.mxu1 %v1207_v17  ;;  %v1245_v47 = vld [vmem:[%s1638_s0 + $0x68] ss:$16 sps:$4 sm:$0xff]   ;;  %v1246_v48 = vld [vmem:[%s1638_s0 + $0x84] ss:$16 sps:$4 sm:$0xff]   ;;  %v1248_v49 = vld [vmem:[%s1638_s0 + $0x8c] ss:$16 sps:$4 sm:$0xff]  }
  0x13   :  { %v1250_v50 = vld [vmem:[%s1638_s0 + $0x80] ss:$16 sps:$4 sm:$0xff]   ;;  %v1251_v51 = vld [vmem:[%s1638_s0 + $0x88] ss:$16 sps:$4 sm:$0xff]   ;;  %v1252_v52 = vld [vmem:[%s1638_s0 + $0xa4] ss:$16 sps:$4 sm:$0xff]  }
  0x14   :  { %1035 = vmatpush3.bf16.msra.mxu0 %v1208_v18  ;;  %v1254_v53 = vld [vmem:[%s1638_s0 + $0xac] ss:$16 sps:$4 sm:$0xff]   ;;  %v1256_v54 = vld [vmem:[%s1638_s0 + $0xa0] ss:$16 sps:$4 sm:$0xff]   ;;  %v1257_v55 = vld [vmem:[%s1638_s0 + $0xa8] ss:$16 sps:$4 sm:$0xff]  }
  0x15   :  { %1117 = vmatpush3.bf16.msra.mxu1 %v1209_v19  ;;  %1036 = vmatprep.subr.bf16.mxu0 %v1210_v20  ;;  %v1258_v56 = vld [vmem:[%s1638_s0 + $0xc4] ss:$16 sps:$4 sm:$0xff]   ;;  %v1260_v57 = vld [vmem:[%s1638_s0 + $0xcc] ss:$16 sps:$4 sm:$0xff]   ;;  %v1262_v58 = vld [vmem:[%s1638_s0 + $0xc0] ss:$16 sps:$4 sm:$0xff]  }
  0x16   :  { %1118 = vmatprep.subr.bf16.mxu1 %v1211_v21  ;;  %v1263_v59 = vld [vmem:[%s1638_s0 + $0xc8] ss:$16 sps:$4 sm:$0xff]   ;;  %v1264_v60 = vld [vmem:[%s1638_s0 + $0xe4] ss:$16 sps:$4 sm:$0xff]   ;;  %v1266_v61 = vld [vmem:[%s1638_s0 + $0xec] ss:$16 sps:$4 sm:$0xff]  }
  0x17   :  { %v1268_v62 = vld [vmem:[%s1638_s0 + $0xe0] ss:$16 sps:$4 sm:$0xff]   ;;  %v1269_v63 = vld [vmem:[%s1638_s0 + $0xe8] ss:$16 sps:$4 sm:$0xff]   ;;  %v1270_v0 = vld [vmem:[%s1638_s0 + $0x104] ss:$16 sps:$4 sm:$0xff]  }
  0x18   :  { %1037 = vmatpush3.bf16.msra.mxu0 %v1212_v22  ;;  %v1272_v1 = vld [vmem:[%s1638_s0 + $0x10c] ss:$16 sps:$4 sm:$0xff]   ;;  %v1274_v2 = vld [vmem:[%s1638_s0 + $0x100] ss:$16 sps:$4 sm:$0xff]   ;;  %v1275_v3 = vld [vmem:[%s1638_s0 + $0x108] ss:$16 sps:$4 sm:$0xff]  }
  0x19   :  { %1119 = vmatpush3.bf16.msra.mxu1 %v1213_v23  ;;  %1038 = vmatprep.subr.bf16.mxu0 %v1214_v24  ;;  %v1276_v4 = vld [vmem:[%s1638_s0 + $0x124] ss:$16 sps:$4 sm:$0xff]   ;;  %v1278_v5 = vld [vmem:[%s1638_s0 + $0x12c] ss:$16 sps:$4 sm:$0xff]   ;;  %v1280_v8 = vld [vmem:[%s1638_s0 + $0x120] ss:$16 sps:$4 sm:$0xff]  }
  0x1a   :  { %1120 = vmatprep.subr.bf16.mxu1 %v1215_v25  ;;  %v55_v6 = vld [vmem:[%s1638_s0 + $0x140] sm:$0x11]  ;;  %v56_v7 = vld [vmem:[%s1638_s0 + $0x148] sm:$0x11] }
  0x1b   :  { %v1281_v9 = vld [vmem:[%s1638_s0 + $0x128] ss:$16 sps:$4 sm:$0xff]   ;;  %v949_v10 = vcombine.high %v55_v6, %v55_v6  ;;  %v951_v11 = vcombine.high %v56_v7, %v56_v7  ;;  %v948_v12 = vcombine.low %v55_v6, %v55_v6  ;;  %v950_v13 = vcombine.low %v56_v7, %v56_v7  ;;  %v1531_v16 = vld [vmem:[%s1639_s2] ss:$0 sm:$0xff] }
  0x1c   :  { %1039 = vmatpush3.bf16.msra.mxu0 %v1216_v26 }
  0x1d   :  { %1121 = vmatpush3.bf16.msra.mxu1 %v1217_v27  ;;  %1040 = vmatprep.subr.bf16.mxu0 %v1218_v28 }
  0x1e   :  { %1122 = vmatprep.subr.bf16.mxu1 %v1219_v29 }
  0x20   :  { %1041 = vmatpush3.bf16.msra.mxu0 %v1220_v30 }
  0x21   :  { %1123 = vmatpush3.bf16.msra.mxu1 %v1221_v31 }
  0x23   :  { %567 = vmatmul.mubr.bf16.vlgmr.msra.gmra.mxu0 %v1222_v32 }
  0x24   :  { %687 = vmatmul.mubr.bf16.vlgmr.msra.gmra.mxu1 %v1225_v34  ;;  %574 = vmatprep.mubr.bf16.mxu0 %v1228_v36 }
  0x25   :  { %694 = vmatprep.mubr.bf16.mxu1 %v1230_v37 }
  0x2b   :  { %575 = vmatmul.mubr.bf16.gmra.mxu0 %v1232_v38 }
  0x2c   :  { %695 = vmatmul.mubr.bf16.gmra.mxu1 %v1233_v39  ;;  %582 = vmatprep.mubr.bf16.mxu0 %v1234_v40 }
  0x2d   :  { %702 = vmatprep.mubr.bf16.mxu1 %v1236_v41 }
  0x33   :  { %583 = vmatmul.mubr.bf16.gmra.mxu0 %v1238_v42 }
  0x34   :  { %703 = vmatmul.mubr.bf16.gmra.mxu1 %v1239_v43  ;;  %590 = vmatprep.mubr.bf16.mxu0 %v1240_v44 }
  0x35   :  { %710 = vmatprep.mubr.bf16.mxu1 %v1242_v45 }
  0x3b   :  { %591 = vmatmul.mubr.bf16.gmra.mxu0 %v1244_v46 }
  0x3c   :  { %711 = vmatmul.mubr.bf16.gmra.mxu1 %v1245_v47  ;;  %598 = vmatprep.mubr.bf16.mxu0 %v1246_v48 }
  0x3d   :  { %718 = vmatprep.mubr.bf16.mxu1 %v1248_v49 }
  0x43   :  { %599 = vmatmul.mubr.bf16.gmra.mxu0 %v1250_v50 }
  0x44   :  { %719 = vmatmul.mubr.bf16.gmra.mxu1 %v1251_v51  ;;  %606 = vmatprep.mubr.bf16.mxu0 %v1252_v52 }
  0x45   :  { %726 = vmatprep.mubr.bf16.mxu1 %v1254_v53 }
  0x4b   :  { %607 = vmatmul.mubr.bf16.gmra.mxu0 %v1256_v54 }
  0x4c   :  { %727 = vmatmul.mubr.bf16.gmra.mxu1 %v1257_v55  ;;  %614 = vmatprep.mubr.bf16.mxu0 %v1258_v56 }
  0x4d   :  { %734 = vmatprep.mubr.bf16.mxu1 %v1260_v57 }
  0x53   :  { %615 = vmatmul.mubr.bf16.gmra.mxu0 %v1262_v58 }
  0x54   :  { %735 = vmatmul.mubr.bf16.gmra.mxu1 %v1263_v59  ;;  %622 = vmatprep.mubr.bf16.mxu0 %v1264_v60 }
  0x55   :  { %742 = vmatprep.mubr.bf16.mxu1 %v1266_v61 }
  0x5b   :  { %623 = vmatmul.mubr.bf16.gmra.mxu0 %v1268_v62 }
  0x5c   :  { %743 = vmatmul.mubr.bf16.gmra.mxu1 %v1269_v63  ;;  %630 = vmatprep.mubr.bf16.mxu0 %v1270_v0 }
  0x5d   :  { %750 = vmatprep.mubr.bf16.mxu1 %v1272_v1 }
  0x63   :  { %631 = vmatmul.mubr.bf16.gmra.mxu0 %v1274_v2 }
  0x64   :  { %751 = vmatmul.mubr.bf16.gmra.mxu1 %v1275_v3  ;;  %638 = vmatprep.mubr.bf16.mxu0 %v1276_v4 }
  0x65   :  { %758 = vmatprep.mubr.bf16.mxu1 %v1278_v5 }
  0x6b   :  { %639 = vmatmul.mubr.bf16.gmra.mxu0 %v1280_v8 }
  0x6c   :  { %759 = vmatmul.mubr.bf16.gmra.mxu1 %v1281_v9  ;;  %646 = vmatprep.mubr.bf16.mxu0 %v949_v10 }
  0x6d   :  { %766 = vmatprep.mubr.bf16.mxu1 %v951_v11 }
  0x73   :  { %647 = vmatmul.mubr.bf16.gmra.mxu0 %v948_v12 }
  0x74   :  { %767 = vmatmul.mubr.bf16.gmra.mxu1 %v950_v13 }
  0xe3   :  { %v1042_v14 = vpop.f32.mrf.mxu0 }
  0xe4   :  { %v1124_v15 = vpop.f32.mrf.mxu1 }
  0xe5   :  { %v1043_v17 = vpop.f32.mrf.mxu0 }
  0xe6   :  { %v1044_v18 = vadd.f32 %v1043_v17, %v1042_v14  ;;  %v1125_v19 = vpop.f32.mrf.mxu1 }
  0xe7   :  { %v1045_v20 = vpop.f32.mrf.mxu0  ;;  %v1126_v22 = vadd.f32 %v1125_v19, %v1124_v15 }
  0xe8   :  { %v569_v21 = vadd.f32 %v1044_v18, %v1531_v16  ;;  %v1127_v23 = vpop.f32.mrf.mxu1 }
  0xe9   :  { %v1046_v24 = vpop.f32.mrf.mxu0 }
  0xea   :  { %v689_v25 = vadd.f32 %v1126_v22, %v569_v21  ;;  %v1047_v26 = vadd.f32 %v1046_v24, %v1045_v20  ;;  %v1128_v27 = vpop.f32.mrf.mxu1 }
  0xeb   :  { %v1048_v28 = vpop.f32.mrf.mxu0  ;;  %v1129_v31 = vadd.f32 %v1128_v27, %v1127_v23 }
  0xec   :  { %v774_v29 = vmax.f32 %v689_v25, 0.0  ;;  %v572_v30 = vadd.f32 %v1047_v26, %v1531_v16  ;;  %v1130_v32 = vpop.f32.mrf.mxu1 }
  0xed   :  { %v1049_v33 = vpop.f32.mrf.mxu0 }
  0xee   :  { %v1005_v34 = vpack.c.bf16 %v774_v29, %v774_v29  ;;  %v692_v35 = vadd.f32 %v1129_v31, %v572_v30  ;;  %v1050_v36 = vadd.f32 %v1049_v33, %v1048_v28  ;;  %v1131_v37 = vpop.f32.mrf.mxu1 }
  0xef   :  { %v1051_v38 = vpop.f32.mrf.mxu0  ;;  %v1132_v41 = vadd.f32 %v1131_v37, %v1130_v32 }
  0xf0   :  { %881 = vst.msk [vmem:[%s1640_s3] sm:$0xf] %vm880_vm0, %v1005_v34  ;;  %v775_v39 = vmax.f32 %v692_v35, 0.0  ;;  %v577_v40 = vadd.f32 %v1050_v36, %v1531_v16  ;;  %v1133_v42 = vpop.f32.mrf.mxu1 }
  0xf1   :  { %v1052_v43 = vpop.f32.mrf.mxu0 }
  0xf2   :  { %v1006_v44 = vpack.c.bf16 %v775_v39, %v775_v39  ;;  %v697_v45 = vadd.f32 %v1132_v41, %v577_v40  ;;  %v1053_v46 = vadd.f32 %v1052_v43, %v1051_v38  ;;  %v1134_v47 = vpop.f32.mrf.mxu1 }
  0xf3   :  { %v1054_v48 = vpop.f32.mrf.mxu0  ;;  %v1135_v51 = vadd.f32 %v1134_v47, %v1133_v42 }
  0xf4   :  { %882 = vst.msk [vmem:[%s1640_s3 + $0x4] sm:$0xf] %vm880_vm0, %v1006_v44  ;;  %v776_v49 = vmax.f32 %v697_v45, 0.0  ;;  %v580_v50 = vadd.f32 %v1053_v46, %v1531_v16  ;;  %v1136_v52 = vpop.f32.mrf.mxu1 }
  0xf5   :  { %v1055_v53 = vpop.f32.mrf.mxu0 }
  0xf6   :  { %v1007_v54 = vpack.c.bf16 %v776_v49, %v776_v49  ;;  %v700_v55 = vadd.f32 %v1135_v51, %v580_v50  ;;  %v1056_v56 = vadd.f32 %v1055_v53, %v1054_v48  ;;  %v1137_v57 = vpop.f32.mrf.mxu1 }
  0xf7   :  { %v1057_v58 = vpop.f32.mrf.mxu0  ;;  %v1138_v61 = vadd.f32 %v1137_v57, %v1136_v52 }
  0xf8   :  { %883 = vst.msk [vmem:[%s1640_s3 + $0x8] sm:$0xf] %vm880_vm0, %v1007_v54  ;;  %v777_v59 = vmax.f32 %v700_v55, 0.0  ;;  %v585_v60 = vadd.f32 %v1056_v56, %v1531_v16  ;;  %v1139_v62 = vpop.f32.mrf.mxu1 }
  0xf9   :  { %v1058_v63 = vpop.f32.mrf.mxu0 }
  0xfa   :  { %v1008_v0 = vpack.c.bf16 %v777_v59, %v777_v59  ;;  %v705_v1 = vadd.f32 %v1138_v61, %v585_v60  ;;  %v1059_v2 = vadd.f32 %v1058_v63, %v1057_v58  ;;  %v1140_v3 = vpop.f32.mrf.mxu1 }
  0xfb   :  { %v1060_v4 = vpop.f32.mrf.mxu0  ;;  %v1141_v7 = vadd.f32 %v1140_v3, %v1139_v62 }
  0xfc   :  { %884 = vst.msk [vmem:[%s1640_s3 + $0xc] sm:$0xf] %vm880_vm0, %v1008_v0  ;;  %v778_v5 = vmax.f32 %v705_v1, 0.0  ;;  %v588_v6 = vadd.f32 %v1059_v2, %v1531_v16  ;;  %v1142_v8 = vpop.f32.mrf.mxu1 }
  0xfd   :  { %v1061_v9 = vpop.f32.mrf.mxu0 }
  0xfe   :  { %v1009_v10 = vpack.c.bf16 %v778_v5, %v778_v5  ;;  %v708_v11 = vadd.f32 %v1141_v7, %v588_v6  ;;  %v1062_v12 = vadd.f32 %v1061_v9, %v1060_v4  ;;  %v1143_v13 = vpop.f32.mrf.mxu1 }
  0xff   :  { %v1063_v14 = vpop.f32.mrf.mxu0  ;;  %v1144_v18 = vadd.f32 %v1143_v13, %v1142_v8 }
 0x100   :  { %885 = vst.msk [vmem:[%s1640_s3 + $0x10] sm:$0xf] %vm880_vm0, %v1009_v10  ;;  %v779_v15 = vmax.f32 %v708_v11, 0.0  ;;  %v593_v17 = vadd.f32 %v1062_v12, %v1531_v16  ;;  %v1145_v19 = vpop.f32.mrf.mxu1 }
 0x101   :  { %v1064_v20 = vpop.f32.mrf.mxu0 }
 0x102   :  { %v1010_v21 = vpack.c.bf16 %v779_v15, %v779_v15  ;;  %v713_v22 = vadd.f32 %v1144_v18, %v593_v17  ;;  %v1065_v23 = vadd.f32 %v1064_v20, %v1063_v14  ;;  %v1146_v24 = vpop.f32.mrf.mxu1 }
 0x103   :  { %v1066_v25 = vpop.f32.mrf.mxu0  ;;  %v1147_v28 = vadd.f32 %v1146_v24, %v1145_v19 }
 0x104   :  { %886 = vst.msk [vmem:[%s1640_s3 + $0x14] sm:$0xf] %vm880_vm0, %v1010_v21  ;;  %v780_v26 = vmax.f32 %v713_v22, 0.0  ;;  %v596_v27 = vadd.f32 %v1065_v23, %v1531_v16  ;;  %v1148_v29 = vpop.f32.mrf.mxu1 }
 0x105   :  { %v1067_v30 = vpop.f32.mrf.mxu0 }
 0x106   :  { %v1011_v31 = vpack.c.bf16 %v780_v26, %v780_v26  ;;  %v716_v32 = vadd.f32 %v1147_v28, %v596_v27  ;;  %v1068_v33 = vadd.f32 %v1067_v30, %v1066_v25  ;;  %v1149_v34 = vpop.f32.mrf.mxu1 }
 0x107   :  { %v1069_v35 = vpop.f32.mrf.mxu0  ;;  %v1150_v38 = vadd.f32 %v1149_v34, %v1148_v29 }
 0x108   :  { %887 = vst.msk [vmem:[%s1640_s3 + $0x18] sm:$0xf] %vm880_vm0, %v1011_v31  ;;  %v781_v36 = vmax.f32 %v716_v32, 0.0  ;;  %v601_v37 = vadd.f32 %v1068_v33, %v1531_v16  ;;  %v1151_v39 = vpop.f32.mrf.mxu1 }
 0x109   :  { %v1070_v40 = vpop.f32.mrf.mxu0 }
 0x10a   :  { %v1012_v41 = vpack.c.bf16 %v781_v36, %v781_v36  ;;  %v721_v42 = vadd.f32 %v1150_v38, %v601_v37  ;;  %v1071_v43 = vadd.f32 %v1070_v40, %v1069_v35  ;;  %v1152_v44 = vpop.f32.mrf.mxu1 }
 0x10b   :  { %v1072_v45 = vpop.f32.mrf.mxu0  ;;  %v1153_v48 = vadd.f32 %v1152_v44, %v1151_v39 }
 0x10c   :  { %888 = vst.msk [vmem:[%s1640_s3 + $0x1c] sm:$0xf] %vm880_vm0, %v1012_v41  ;;  %v782_v46 = vmax.f32 %v721_v42, 0.0  ;;  %v604_v47 = vadd.f32 %v1071_v43, %v1531_v16  ;;  %v1154_v49 = vpop.f32.mrf.mxu1 }
 0x10d   :  { %v1073_v50 = vpop.f32.mrf.mxu0 }
 0x10e   :  { %v1013_v51 = vpack.c.bf16 %v782_v46, %v782_v46  ;;  %v724_v52 = vadd.f32 %v1153_v48, %v604_v47  ;;  %v1074_v53 = vadd.f32 %v1073_v50, %v1072_v45  ;;  %v1155_v54 = vpop.f32.mrf.mxu1 }
 0x10f   :  { %v1075_v55 = vpop.f32.mrf.mxu0  ;;  %v1156_v58 = vadd.f32 %v1155_v54, %v1154_v49 }
 0x110   :  { %889 = vst.msk [vmem:[%s1640_s3 + $0x20] sm:$0xf] %vm880_vm0, %v1013_v51  ;;  %v783_v56 = vmax.f32 %v724_v52, 0.0  ;;  %v609_v57 = vadd.f32 %v1074_v53, %v1531_v16  ;;  %v1157_v59 = vpop.f32.mrf.mxu1 }
 0x111   :  { %v1076_v60 = vpop.f32.mrf.mxu0 }
 0x112   :  { %v1014_v61 = vpack.c.bf16 %v783_v56, %v783_v56  ;;  %v729_v62 = vadd.f32 %v1156_v58, %v609_v57  ;;  %v1077_v63 = vadd.f32 %v1076_v60, %v1075_v55  ;;  %v1158_v0 = vpop.f32.mrf.mxu1 }
 0x113   :  { %v1078_v1 = vpop.f32.mrf.mxu0  ;;  %v1159_v4 = vadd.f32 %v1158_v0, %v1157_v59 }
 0x114   :  { %890 = vst.msk [vmem:[%s1640_s3 + $0x24] sm:$0xf] %vm880_vm0, %v1014_v61  ;;  %v784_v2 = vmax.f32 %v729_v62, 0.0  ;;  %v612_v3 = vadd.f32 %v1077_v63, %v1531_v16  ;;  %v1160_v5 = vpop.f32.mrf.mxu1 }
 0x115   :  { %v1079_v6 = vpop.f32.mrf.mxu0 }
 0x116   :  { %v1015_v7 = vpack.c.bf16 %v784_v2, %v784_v2  ;;  %v732_v8 = vadd.f32 %v1159_v4, %v612_v3  ;;  %v1080_v9 = vadd.f32 %v1079_v6, %v1078_v1  ;;  %v1161_v10 = vpop.f32.mrf.mxu1 }
 0x117   :  { %v1081_v11 = vpop.f32.mrf.mxu0  ;;  %v1162_v14 = vadd.f32 %v1161_v10, %v1160_v5 }
 0x118   :  { %891 = vst.msk [vmem:[%s1640_s3 + $0x28] sm:$0xf] %vm880_vm0, %v1015_v7  ;;  %v785_v12 = vmax.f32 %v732_v8, 0.0  ;;  %v617_v13 = vadd.f32 %v1080_v9, %v1531_v16  ;;  %v1163_v15 = vpop.f32.mrf.mxu1 }
 0x119   :  { %v1082_v17 = vpop.f32.mrf.mxu0 }
 0x11a   :  { %v1016_v18 = vpack.c.bf16 %v785_v12, %v785_v12  ;;  %v737_v19 = vadd.f32 %v1162_v14, %v617_v13  ;;  %v1083_v20 = vadd.f32 %v1082_v17, %v1081_v11  ;;  %v1164_v21 = vpop.f32.mrf.mxu1 }
 0x11b   :  { %v1084_v22 = vpop.f32.mrf.mxu0  ;;  %v1165_v25 = vadd.f32 %v1164_v21, %v1163_v15 }
 0x11c   :  { %892 = vst.msk [vmem:[%s1640_s3 + $0x2c] sm:$0xf] %vm880_vm0, %v1016_v18  ;;  %v786_v23 = vmax.f32 %v737_v19, 0.0  ;;  %v620_v24 = vadd.f32 %v1083_v20, %v1531_v16  ;;  %v1166_v26 = vpop.f32.mrf.mxu1 }
 0x11d   :  { %v1085_v27 = vpop.f32.mrf.mxu0 }
 0x11e   :  { %v1017_v28 = vpack.c.bf16 %v786_v23, %v786_v23  ;;  %v740_v29 = vadd.f32 %v1165_v25, %v620_v24  ;;  %v1086_v30 = vadd.f32 %v1085_v27, %v1084_v22  ;;  %v1167_v31 = vpop.f32.mrf.mxu1 }
 0x11f   :  { %v1087_v32 = vpop.f32.mrf.mxu0  ;;  %v1168_v35 = vadd.f32 %v1167_v31, %v1166_v26 }
 0x120   :  { %893 = vst.msk [vmem:[%s1640_s3 + $0x30] sm:$0xf] %vm880_vm0, %v1017_v28  ;;  %v787_v33 = vmax.f32 %v740_v29, 0.0  ;;  %v625_v34 = vadd.f32 %v1086_v30, %v1531_v16  ;;  %v1169_v36 = vpop.f32.mrf.mxu1 }
 0x121   :  { %v1088_v37 = vpop.f32.mrf.mxu0 }
 0x122   :  { %v1018_v38 = vpack.c.bf16 %v787_v33, %v787_v33  ;;  %v745_v39 = vadd.f32 %v1168_v35, %v625_v34  ;;  %v1089_v40 = vadd.f32 %v1088_v37, %v1087_v32  ;;  %v1170_v41 = vpop.f32.mrf.mxu1 }
 0x123   :  { %v1090_v42 = vpop.f32.mrf.mxu0  ;;  %v1171_v45 = vadd.f32 %v1170_v41, %v1169_v36 }
 0x124   :  { %894 = vst.msk [vmem:[%s1640_s3 + $0x34] sm:$0xf] %vm880_vm0, %v1018_v38  ;;  %v788_v43 = vmax.f32 %v745_v39, 0.0  ;;  %v628_v44 = vadd.f32 %v1089_v40, %v1531_v16  ;;  %v1172_v46 = vpop.f32.mrf.mxu1 }
 0x125   :  { %v1091_v47 = vpop.f32.mrf.mxu0 }
 0x126   :  { %v1019_v48 = vpack.c.bf16 %v788_v43, %v788_v43  ;;  %v748_v49 = vadd.f32 %v1171_v45, %v628_v44  ;;  %v1092_v50 = vadd.f32 %v1091_v47, %v1090_v42  ;;  %v1173_v51 = vpop.f32.mrf.mxu1 }
 0x127   :  { %v1093_v52 = vpop.f32.mrf.mxu0  ;;  %v1174_v55 = vadd.f32 %v1173_v51, %v1172_v46 }
 0x128   :  { %895 = vst.msk [vmem:[%s1640_s3 + $0x38] sm:$0xf] %vm880_vm0, %v1019_v48  ;;  %v789_v53 = vmax.f32 %v748_v49, 0.0  ;;  %v633_v54 = vadd.f32 %v1092_v50, %v1531_v16  ;;  %v1175_v56 = vpop.f32.mrf.mxu1 }
 0x129   :  { %v1094_v57 = vpop.f32.mrf.mxu0 }
 0x12a   :  { %v1020_v58 = vpack.c.bf16 %v789_v53, %v789_v53  ;;  %v753_v59 = vadd.f32 %v1174_v55, %v633_v54  ;;  %v1095_v60 = vadd.f32 %v1094_v57, %v1093_v52  ;;  %v1176_v61 = vpop.f32.mrf.mxu1 }
 0x12b   :  { %v1096_v62 = vpop.f32.mrf.mxu0  ;;  %v1177_v1 = vadd.f32 %v1176_v61, %v1175_v56 }
 0x12c   :  { %896 = vst.msk [vmem:[%s1640_s3 + $0x3c] sm:$0xf] %vm880_vm0, %v1020_v58  ;;  %v790_v63 = vmax.f32 %v753_v59, 0.0  ;;  %v636_v0 = vadd.f32 %v1095_v60, %v1531_v16  ;;  %v1178_v2 = vpop.f32.mrf.mxu1 }
 0x12d   :  { %v1097_v3 = vpop.f32.mrf.mxu0 }
 0x12e   :  { %v1021_v4 = vpack.c.bf16 %v790_v63, %v790_v63  ;;  %v756_v5 = vadd.f32 %v1177_v1, %v636_v0  ;;  %v1098_v6 = vadd.f32 %v1097_v3, %v1096_v62  ;;  %v1179_v7 = vpop.f32.mrf.mxu1 }
 0x12f   :  { %v1099_v8 = vpop.f32.mrf.mxu0  ;;  %v1180_v11 = vadd.f32 %v1179_v7, %v1178_v2 }
 0x130   :  { %897 = vst.msk [vmem:[%s1640_s3 + $0x40] sm:$0xf] %vm880_vm0, %v1021_v4  ;;  %v791_v9 = vmax.f32 %v756_v5, 0.0  ;;  %v641_v10 = vadd.f32 %v1098_v6, %v1531_v16  ;;  %v1181_v12 = vpop.f32.mrf.mxu1 }
 0x131   :  { %v1100_v13 = vpop.f32.mrf.mxu0 }
 0x132   :  { %v1022_v14 = vpack.c.bf16 %v791_v9, %v791_v9  ;;  %v761_v15 = vadd.f32 %v1180_v11, %v641_v10  ;;  %v1101_v17 = vadd.f32 %v1100_v13, %v1099_v8  ;;  %v1182_v18 = vpop.f32.mrf.mxu1 }
 0x133   :  { %v1102_v19 = vpop.f32.mrf.mxu0  ;;  %v1183_v22 = vadd.f32 %v1182_v18, %v1181_v12 }
 0x134   :  { %898 = vst.msk [vmem:[%s1640_s3 + $0x44] sm:$0xf] %vm880_vm0, %v1022_v14  ;;  %v792_v20 = vmax.f32 %v761_v15, 0.0  ;;  %v644_v21 = vadd.f32 %v1101_v17, %v1531_v16  ;;  %v1184_v23 = vpop.f32.mrf.mxu1 }
 0x135   :  { %v1103_v24 = vpop.f32.mrf.mxu0 }
 0x136   :  { %v1023_v25 = vpack.c.bf16 %v792_v20, %v792_v20  ;;  %v764_v26 = vadd.f32 %v1183_v22, %v644_v21  ;;  %v1104_v27 = vadd.f32 %v1103_v24, %v1102_v19  ;;  %v1185_v28 = vpop.f32.mrf.mxu1 }
 0x137   :  { %v1105_v29 = vpop.f32.mrf.mxu0  ;;  %v1186_v32 = vadd.f32 %v1185_v28, %v1184_v23 }
 0x138   :  { %899 = vst.msk [vmem:[%s1640_s3 + $0x48] sm:$0xf] %vm880_vm0, %v1023_v25  ;;  %v793_v30 = vmax.f32 %v764_v26, 0.0  ;;  %v649_v31 = vadd.f32 %v1104_v27, %v1531_v16  ;;  %v1187_v33 = vpop.f32.mrf.mxu1 }
 0x139   :  { %v1106_v34 = vpop.f32.mrf.mxu0 }
 0x13a   :  { %v1024_v35 = vpack.c.bf16 %v793_v30, %v793_v30  ;;  %v769_v36 = vadd.f32 %v1186_v32, %v649_v31  ;;  %v1188_v37 = vpop.f32.mrf.mxu1 }
 0x13c   :  { %900 = vst.msk [vmem:[%s1640_s3 + $0x4c] sm:$0xf] %vm880_vm0, %v1024_v35  ;;  %v794_v38 = vmax.f32 %v769_v36, 0.0 }
 0x13e   :  { %v1025_v39 = vpack.c.bf16 %v794_v38, %v794_v38 }
 0x140   :  { %902 = vst.msk [vmem:[%s1640_s3 + $0x50] sm:$0x1] %vm901_vm1, %v1025_v39 }

// kernel: ddqn_forward.6
= control target key start
LH: loop header
LB: loop body
LE: loop exit
PB: predicated region body
PF: predicated region fallthrough
CT: control target
= control target key end

     0   :  { %v1248_v34 = vmov 0.0   ;;  %vm1249_vm0 = vmmov 0   ;;  %vm516_vm1 = vcmask 523264   ;;  %vm868_vm2 = vcmask 519168   ;;  %s1647_s1 = inlined_call_operand.vmem [shape: bf16[576,64], index: 1, kind: input, shape index: {}]   ;;  %s1648_s0 = inlined_call_operand.vmem [shape: bf16[98,576], index: 0, kind: input, shape index: {}]   ;;  %s1649_s2 = inlined_call_operand.vmem [shape: f32[1,64], index: 2, kind: input, shape index: {}]   ;;  %s1650_s3 = inlined_call_operand.vmem [shape: bf16[98,64], index: 3, kind: output, shape index: {}]  }
   0x1   :  { %v1165_v0 = vld [vmem:[%s1647_s1 + $0x78] sm:$0xff]   ;;  %v1169_v4 = vld [vmem:[%s1647_s1 + $0x70] sm:$0xff]   ;;  %v1173_v8 = vld [vmem:[%s1647_s1 + $0x68] sm:$0xff]   ;;  %vm881_vm3 = vcmask 516096  }
   0x2   :  { %v1166_v1 = vld [vmem:[%s1647_s1 + $0xf8] sm:$0xff]   ;;  %992 = vmatprep.subr.bf16.mxu0 %v1165_v0  ;;  %v1170_v5 = vld [vmem:[%s1647_s1 + $0xf0] sm:$0xff]   ;;  %v1174_v9 = vld [vmem:[%s1647_s1 + $0xe8] sm:$0xff]  }
   0x3   :  { %v1167_v2 = vld [vmem:[%s1647_s1 + $0x38] sm:$0xff]   ;;  %1050 = vmatprep.subr.bf16.mxu1 %v1166_v1  ;;  %v1171_v6 = vld [vmem:[%s1647_s1 + $0x30] sm:$0xff]   ;;  %v1175_v10 = vld [vmem:[%s1647_s1 + $0x28] sm:$0xff]  }
   0x4   :  { %v1168_v3 = vld [vmem:[%s1647_s1 + $0xb8] sm:$0xff]   ;;  %993 = vmatpush3.bf16.msra.mxu0 %v1167_v2  ;;  %v1172_v7 = vld [vmem:[%s1647_s1 + $0xb0] sm:$0xff]   ;;  %v1176_v11 = vld [vmem:[%s1647_s1 + $0xa8] sm:$0xff]  }
   0x5   :  { %1051 = vmatpush3.bf16.msra.mxu1 %v1168_v3  ;;  %994 = vmatprep.subr.bf16.mxu0 %v1169_v4  ;;  %v1177_v12 = vld [vmem:[%s1647_s1 + $0x60] sm:$0xff]   ;;  %v1181_v16 = vld [vmem:[%s1647_s1 + $0x58] sm:$0xff]   ;;  %v1185_v20 = vld [vmem:[%s1647_s1 + $0x50] sm:$0xff]  }
   0x6   :  { %1052 = vmatprep.subr.bf16.mxu1 %v1170_v5  ;;  %v1178_v13 = vld [vmem:[%s1647_s1 + $0xe0] sm:$0xff]   ;;  %v1182_v17 = vld [vmem:[%s1647_s1 + $0xd8] sm:$0xff]   ;;  %v1186_v21 = vld [vmem:[%s1647_s1 + $0xd0] sm:$0xff]  }
   0x7   :  { %v1179_v14 = vld [vmem:[%s1647_s1 + $0x20] sm:$0xff]   ;;  %v1183_v18 = vld [vmem:[%s1647_s1 + $0x18] sm:$0xff]   ;;  %v1187_v22 = vld [vmem:[%s1647_s1 + $0x10] sm:$0xff]  }
   0x8   :  { %995 = vmatpush3.bf16.msra.mxu0 %v1171_v6  ;;  %v1180_v15 = vld [vmem:[%s1647_s1 + $0xa0] sm:$0xff]   ;;  %v1184_v19 = vld [vmem:[%s1647_s1 + $0x98] sm:$0xff]   ;;  %v1188_v23 = vld [vmem:[%s1647_s1 + $0x90] sm:$0xff]  }
   0x9   :  { %1053 = vmatpush3.bf16.msra.mxu1 %v1172_v7  ;;  %996 = vmatprep.subr.bf16.mxu0 %v1173_v8  ;;  %v1189_v24 = vld [vmem:[%s1647_s1 + $0x48] sm:$0xff]   ;;  %v1193_v28 = vld [vmem:[%s1647_s1 + $0x40] sm:$0xff]   ;;  %v1203_v37 = vld [vmem:[%s1647_s1 + $0x118] sm:$0xff]  }
   0xa   :  { %1054 = vmatprep.subr.bf16.mxu1 %v1174_v9  ;;  %v1190_v25 = vld [vmem:[%s1647_s1 + $0xc8] sm:$0xff]   ;;  %v1194_v29 = vld [vmem:[%s1647_s1 + $0xc0] sm:$0xff]   ;;  %v1214_v43 = vld [vmem:[%s1647_s1 + $0x110] sm:$0xff]  }
   0xb   :  { %v1191_v26 = vld [vmem:[%s1647_s1 + $0x8] sm:$0xff]   ;;  %v1195_v30 = vld [vmem:[%s1647_s1] sm:$0xff]   ;;  %v1212_v44 = vld [vmem:[%s1648_s0 + $0x5c] ss:$20 sps:$4 sm:$0xff]  }
   0xc   :  { %997 = vmatpush3.bf16.msra.mxu0 %v1175_v10  ;;  %v1192_v27 = vld [vmem:[%s1647_s1 + $0x88] sm:$0xff]   ;;  %v1196_v31 = vld [vmem:[%s1647_s1 + $0x80] sm:$0xff]   ;;  %v1217_v48 = vld [vmem:[%s1648_s0 + $0x7c] ss:$20 sps:$4 sm:$0xff]  }
   0xd   :  { %1055 = vmatpush3.bf16.msra.mxu1 %v1176_v11  ;;  %998 = vmatprep.subr.bf16.mxu0 %v1177_v12  ;;  %v1197_v32 = vld [vmem:[%s1648_s0] ss:$20 sps:$4 sm:$0xff]   ;;  %v1199_v33 = vld [vmem:[%s1648_s0 + $0x4] ss:$20 sps:$4 sm:$0xff]   ;;  %v1200_v35 = vld [vmem:[%s1648_s0 + $0x8] ss:$20 sps:$4 sm:$0xff]  }
   0xe   :  { %1056 = vmatprep.subr.bf16.mxu1 %v1178_v13  ;;  %v1202_v36 = vld [vmem:[%s1648_s0 + $0xc] ss:$20 sps:$4 sm:$0xff]   ;;  %570 = vmatprep.mubr.bf16.mxu0 %v1199_v33  ;;  %v1206_v39 = vld [vmem:[%s1648_s0 + $0x34] ss:$20 sps:$4 sm:$0xff]   ;;  %v1209_v41 = vld [vmem:[%s1648_s0 + $0x30] ss:$20 sps:$4 sm:$0xff]  }
   0xf   :  { %658 = vmatprep.mubr.bf16.mxu1 %v1202_v36  ;;  %v1204_v38 = vld [vmem:[%s1648_s0 + $0x2c] ss:$20 sps:$4 sm:$0xff]   ;;  %v1208_v40 = vld [vmem:[%s1648_s0 + $0x28] ss:$20 sps:$4 sm:$0xff]   ;;  %v1215_v46 = vld [vmem:[%s1648_s0 + $0x50] ss:$20 sps:$4 sm:$0xff]  }
  0x10   :  { %999 = vmatpush3.bf16.msra.mxu0 %v1179_v14  ;;  %v1210_v42 = vld [vmem:[%s1648_s0 + $0x54] ss:$20 sps:$4 sm:$0xff]   ;;  %v1216_v47 = vld [vmem:[%s1648_s0 + $0x58] ss:$20 sps:$4 sm:$0xff]   ;;  %v1236_v50 = vld [vmem:[%s1647_s1 + $0x100] sm:$0xff]  }
  0x11   :  { %1057 = vmatpush3.bf16.msra.mxu1 %v1180_v15  ;;  %1000 = vmatprep.subr.bf16.mxu0 %v1181_v16  ;;  %v1223_v45 = vld [vmem:[%s1647_s1 + $0x108] sm:$0xff]   ;;  %v1219_v49 = vld [vmem:[%s1648_s0 + $0x84] ss:$20 sps:$4 sm:$0xff]   ;;  %v1222_v52 = vld [vmem:[%s1648_s0 + $0x80] ss:$20 sps:$4 sm:$0xff]  }
  0x12   :  { %1058 = vmatprep.subr.bf16.mxu1 %v1182_v17  ;;  %v1221_v51 = vld [vmem:[%s1648_s0 + $0x78] ss:$20 sps:$4 sm:$0xff]   ;;  %v1228_v55 = vld [vmem:[%s1648_s0 + $0xa0] ss:$20 sps:$4 sm:$0xff]   ;;  %v1229_v56 = vld [vmem:[%s1648_s0 + $0xa8] ss:$20 sps:$4 sm:$0xff]  }
  0x13   :  { %v1224_v53 = vld [vmem:[%s1648_s0 + $0xa4] ss:$20 sps:$4 sm:$0xff]   ;;  %v1226_v54 = vld [vmem:[%s1648_s0 + $0xac] ss:$20 sps:$4 sm:$0xff]   ;;  %v1232_v58 = vld [vmem:[%s1648_s0 + $0xd4] ss:$20 sps:$4 sm:$0xff]  }
  0x14   :  { %1001 = vmatpush3.bf16.msra.mxu0 %v1183_v18  ;;  %v1230_v57 = vld [vmem:[%s1648_s0 + $0xcc] ss:$20 sps:$4 sm:$0xff]   ;;  %v51_v59 = vld [vmem:[%s1648_s0 + $0xf0] sm:$0x11]  ;;  %v52_v60 = vld [vmem:[%s1648_s0 + $0xf8] sm:$0x11] }
  0x15   :  { %1059 = vmatpush3.bf16.msra.mxu1 %v1184_v19  ;;  %1002 = vmatprep.subr.bf16.mxu0 %v1185_v20  ;;  %v1234_v61 = vld [vmem:[%s1648_s0 + $0xc8] ss:$20 sps:$4 sm:$0xff]   ;;  %v1235_v62 = vld [vmem:[%s1648_s0 + $0xd0] ss:$20 sps:$4 sm:$0xff]   ;;  %v919_v63 = vcombine.high %v51_v59, %v51_v59  ;;  %v921_v0 = vcombine.high %v52_v60, %v52_v60  ;;  %v918_v1 = vcombine.low %v51_v59, %v51_v59  ;;  %v1243_v5 = vld [vmem:[%s1648_s0 + $0x38] ss:$20 sps:$4 sm:$0xff]  }
  0x16   :  { %1060 = vmatprep.subr.bf16.mxu1 %v1186_v21  ;;  %v920_v2 = vcombine.low %v52_v60, %v52_v60  ;;  %v1241_v3 = vld [vmem:[%s1648_s0 + $0x10] ss:$20 sps:$4 sm:$0xff]   ;;  %v1244_v6 = vld [vmem:[%s1648_s0 + $0xd8] ss:$20 sps:$4 sm:$0xff]   ;;  %v1245_v7 = vld [vmem:[%s1648_s0 + $0x60] ss:$20 sps:$4 sm:$0xff]  }
  0x17   :  { %v1242_v4 = vld [vmem:[%s1648_s0 + $0xb0] ss:$20 sps:$4 sm:$0xff]   ;;  %v1246_v8 = vld [vmem:[%s1648_s0 + $0x100] ss:$0 sps:$4 sm:$0x11]  }
  0x18   :  { %1003 = vmatpush3.bf16.msra.mxu0 %v1187_v22  ;;  %v1247_v9 = vld [vmem:[%s1648_s0 + $0x88] ss:$20 sps:$4 sm:$0xff]   ;;  %v1553_v59 = vld [vmem:[%s1649_s2] ss:$0 sm:$0xff] }
  0x19   :  { %1061 = vmatpush3.bf16.msra.mxu1 %v1188_v23  ;;  %1004 = vmatprep.subr.bf16.mxu0 %v1189_v24 }
  0x1a   :  { %1062 = vmatprep.subr.bf16.mxu1 %v1190_v25 }
  0x1c   :  { %1005 = vmatpush3.bf16.msra.mxu0 %v1191_v26 }
  0x1d   :  { %1063 = vmatpush3.bf16.msra.mxu1 %v1192_v27  ;;  %1006 = vmatprep.subr.bf16.mxu0 %v1193_v28 }
  0x1e   :  { %1064 = vmatprep.subr.bf16.mxu1 %v1194_v29 }
  0x20   :  { %1007 = vmatpush3.bf16.msra.mxu0 %v1195_v30 }
  0x21   :  { %1065 = vmatpush3.bf16.msra.mxu1 %v1196_v31  ;;  %1119 = vmatprep.subr.bf16.mxu0 %v1248_v34 }
  0x22   :  { %1155 = vmatprep.subr.bf16.mxu1 %v1248_v34 }
  0x23   :  { %571 = vmatmul.mubr.bf16.vlgmr.msra.gmra.mxu0 %v1197_v32 }
  0x24   :  { %659 = vmatmul.mubr.bf16.vlgmr.msra.gmra.mxu1 %v1200_v35  ;;  %1120 = vmatpush3.bf16.msra.mxu0 %v1203_v37 }
  0x25   :  { %578 = vmatprep.mubr.bf16.mxu0 %v1204_v38  ;;  %1159 = vmatpush3.bf16.msra.mxu1 %v1203_v37 }
  0x26   :  { %666 = vmatprep.mubr.bf16.mxu1 %v1206_v39  ;;  %1121 = vmatprep.subr.bf16.mxu0 %v1248_v34 }
  0x27   :  { %1156 = vmatprep.subr.bf16.mxu1 %v1248_v34 }
  0x28   :  { %1122 = vmatpush3.bf16.msra.mxu0 %v1214_v43 }
  0x29   :  { %1160 = vmatpush3.bf16.msra.mxu1 %v1214_v43  ;;  %1123 = vmatprep.subr.bf16.mxu0 %v1248_v34 }
  0x2a   :  { %1157 = vmatprep.subr.bf16.mxu1 %v1248_v34 }
  0x2b   :  { %579 = vmatmul.mubr.bf16.gmra.mxu0 %v1208_v40 }
  0x2c   :  { %667 = vmatmul.mubr.bf16.gmra.mxu1 %v1209_v41  ;;  %586 = vmatprep.mubr.bf16.mxu0 %v1210_v42 }
  0x2d   :  { %674 = vmatprep.mubr.bf16.mxu1 %v1212_v44  ;;  %1124 = vmatpush3.bf16.msra.mxu0 %v1223_v45 }
  0x2e   :  { %1161 = vmatpush3.bf16.msra.mxu1 %v1223_v45  ;;  %1125 = vmatprep.subr.bf16.mxu0 %v1248_v34 }
  0x2f   :  { %1158 = vmatprep.subr.bf16.mxu1 %v1248_v34 }
  0x31   :  { %1126 = vmatpush3.bf16.msra.mxu0 %v1236_v50 }
  0x32   :  { %1162 = vmatpush3.bf16.msra.mxu1 %v1236_v50 }
  0x33   :  { %587 = vmatmul.mubr.bf16.gmra.mxu0 %v1215_v46 }
  0x34   :  { %675 = vmatmul.mubr.bf16.gmra.mxu1 %v1216_v47  ;;  %594 = vmatprep.mubr.bf16.mxu0 %v1217_v48 }
  0x35   :  { %682 = vmatprep.mubr.bf16.mxu1 %v1219_v49 }
  0x3b   :  { %595 = vmatmul.mubr.bf16.gmra.mxu0 %v1221_v51 }
  0x3c   :  { %683 = vmatmul.mubr.bf16.gmra.mxu1 %v1222_v52  ;;  %602 = vmatprep.mubr.bf16.mxu0 %v1224_v53 }
  0x3d   :  { %690 = vmatprep.mubr.bf16.mxu1 %v1226_v54 }
  0x43   :  { %603 = vmatmul.mubr.bf16.gmra.mxu0 %v1228_v55 }
  0x44   :  { %691 = vmatmul.mubr.bf16.gmra.mxu1 %v1229_v56  ;;  %610 = vmatprep.mubr.bf16.mxu0 %v1230_v57 }
  0x45   :  { %698 = vmatprep.mubr.bf16.mxu1 %v1232_v58 }
  0x4b   :  { %611 = vmatmul.mubr.bf16.gmra.mxu0 %v1234_v61 }
  0x4c   :  { %699 = vmatmul.mubr.bf16.gmra.mxu1 %v1235_v62  ;;  %618 = vmatprep.mubr.bf16.mxu0 %v919_v63 }
  0x4d   :  { %706 = vmatprep.mubr.bf16.mxu1 %v921_v0 }
  0x53   :  { %619 = vmatmul.mubr.bf16.gmra.mxu0 %v918_v1 }
  0x54   :  { %707 = vmatmul.mubr.bf16.gmra.mxu1 %v920_v2  ;;  %1127 = vmatprep.mubr.msk.bf16.mxu0 %vm1249_vm0, %v1248_v34 }
  0x55   :  { %1143 = vmatprep.mubr.msk.bf16.mxu1 %vm1249_vm0, %v1248_v34 }
  0x5b   :  { %1128 = vmatmul.mubr.msk.bf16.vlgmr.msra.gmra.mxu0 %vm516_vm1, %v1241_v3 }
  0x5c   :  { %1144 = vmatmul.mubr.msk.bf16.vlgmr.msra.gmra.mxu1 %vm516_vm1, %v1242_v4  ;;  %1131 = vmatprep.mubr.msk.bf16.mxu0 %vm1249_vm0, %v1248_v34 }
  0x5d   :  { %1147 = vmatprep.mubr.msk.bf16.mxu1 %vm1249_vm0, %v1248_v34 }
  0x63   :  { %1132 = vmatmul.mubr.msk.bf16.gmra.mxu0 %vm516_vm1, %v1243_v5 }
  0x64   :  { %1148 = vmatmul.mubr.msk.bf16.gmra.mxu1 %vm516_vm1, %v1244_v6  ;;  %1135 = vmatprep.mubr.msk.bf16.mxu0 %vm1249_vm0, %v1248_v34 }
  0x65   :  { %1151 = vmatprep.mubr.msk.bf16.mxu1 %vm1249_vm0, %v1248_v34 }
  0x6b   :  { %1136 = vmatmul.mubr.msk.bf16.gmra.mxu0 %vm516_vm1, %v1245_v7 }
  0x6c   :  { %1152 = vmatmul.mubr.msk.bf16.gmra.mxu1 %vm516_vm1, %v1246_v8  ;;  %1139 = vmatprep.mubr.msk.bf16.mxu0 %vm1249_vm0, %v1248_v34 }
  0x73   :  { %1140 = vmatmul.mubr.msk.bf16.gmra.mxu0 %vm516_vm1, %v1247_v9 }
  0xe3   :  { %v1008_v10 = vpop.f32.mrf.mxu0 }
  0xe4   :  { %v1066_v11 = vpop.f32.mrf.mxu1 }
  0xe5   :  { %v1009_v12 = vpop.f32.mrf.mxu0 }
  0xe6   :  { %v1067_v13 = vpop.f32.mrf.mxu1  ;;  %v1010_v57 = vadd.f32 %v1009_v12, %v1008_v10 }
  0xe7   :  { %v1011_v14 = vpop.f32.mrf.mxu0  ;;  %v1068_v2 = vadd.f32 %v1067_v13, %v1066_v11 }
  0xe8   :  { %v1069_v15 = vpop.f32.mrf.mxu1  ;;  %v573_v1 = vadd.f32 %v1010_v57, %v1553_v59 }
  0xe9   :  { %v1012_v16 = vpop.f32.mrf.mxu0 }
  0xea   :  { %v1070_v17 = vpop.f32.mrf.mxu1  ;;  %v1013_v63 = vadd.f32 %v1012_v16, %v1011_v14  ;;  %v661_v14 = vadd.f32 %v1068_v2, %v573_v1 }
  0xeb   :  { %v1014_v18 = vpop.f32.mrf.mxu0  ;;  %v1071_v10 = vadd.f32 %v1070_v17, %v1069_v15 }
  0xec   :  { %v1506_v19 = vpop.f32.mrf.mxu1  ;;  %v576_v9 = vadd.f32 %v1013_v63, %v1553_v59 }
  0xed   :  { %v1015_v20 = vpop.f32.mrf.mxu0 }
  0xee   :  { %v1508_v21 = vpop.f32.mrf.mxu1  ;;  %v1016_v12 = vadd.f32 %v1015_v20, %v1014_v18  ;;  %v664_v15 = vadd.f32 %v1071_v10, %v576_v9 }
  0xef   :  { %v1510_v22 = vpop.f32.mrf.mxu0 }
  0xf0   :  { %v1512_v23 = vpop.f32.mrf.mxu1 }
  0xf1   :  { %v1514_v24 = vpop.f32.mrf.mxu0 }
  0xf2   :  { %v1516_v25 = vpop.f32.mrf.mxu1  ;;  %v1019_v17 = vadd.f32 %v1514_v24, %v1510_v22 }
  0xf3   :  { %v1518_v26 = vpop.f32.mrf.mxu0 }
  0xf4   :  { %v1520_v27 = vpop.f32.mrf.mxu1  ;;  %v584_v24 = vadd.f32 %v1019_v17, %v1553_v59 }
  0xf5   :  { %v1522_v28 = vpop.f32.mrf.mxu0 }
  0xf6   :  { %v1524_v29 = vpop.f32.mrf.mxu1 }
  0xf7   :  { %v1526_v30 = vpop.f32.mrf.mxu0 }
  0xf8   :  { %v1528_v31 = vpop.f32.mrf.mxu1 }
  0xf9   :  { %v1530_v32 = vpop.f32.mrf.mxu0 }
  0xfa   :  { %v1532_v33 = vpop.f32.mrf.mxu1 }
  0xfb   :  { %v1534_v34 = vpop.f32.mrf.mxu0 }
  0xfc   :  { %v1536_v35 = vpop.f32.mrf.mxu1 }
  0xfd   :  { %v1538_v36 = vpop.f32.mrf.mxu0 }
  0xfe   :  { %v1540_v37 = vpop.f32.mrf.mxu1 }
  0xff   :  { %v1542_v38 = vpop.f32.mrf.mxu0 }
 0x100   :  { %v1544_v39 = vpop.f32.mrf.mxu1 }
 0x101   :  { %1651 = vst [vmem:[#allocation2_spill] sm:$0xff] %v1544_v39  ;;  %v1546_v40 = vpop.f32.mrf.mxu0 }
 0x102   :  { %1652 = vst [vmem:[#allocation3_spill] sm:$0xff] %v1546_v40  ;;  %v1548_v41 = vpop.f32.mrf.mxu1 }
 0x103   :  { %1653 = vst [vmem:[#allocation4_spill] sm:$0xff] %v1548_v41  ;;  %v1032_v42 = vpop.f32.mrf.mxu0 }
 0x104   :  { %v1090_v43 = vpop.f32.mrf.mxu1 }
 0x105   :  { %v1033_v44 = vpop.f32.mrf.mxu0 }
 0x106   :  { %v1091_v45 = vpop.f32.mrf.mxu1  ;;  %v1034_v60 = vadd.f32 %v1033_v44, %v1032_v42 }
 0x107   :  { %v1035_v46 = vpop.f32.mrf.mxu0  ;;  %v1092_v5 = vadd.f32 %v1091_v45, %v1090_v43  ;;  %v581_v43 = vadd.f32 %v1016_v12, %v1553_v59  ;;  %v1074_v45 = vadd.f32 %v1508_v21, %v1506_v19  ;;  %v1077_v19 = vadd.f32 %v1516_v25, %v1512_v23 }
 0x108   :  { %v1093_v47 = vpop.f32.mrf.mxu1  ;;  %v605_v4 = vadd.f32 %v1034_v60, %v1553_v59 }
 0x109   :  { %v1036_v48 = vpop.f32.mrf.mxu0  ;;  %v669_v22 = vadd.f32 %v1074_v45, %v581_v43 }
 0x10a   :  { %v1094_v49 = vpop.f32.mrf.mxu1  ;;  %v1037_v6 = vadd.f32 %v1036_v48, %v1035_v46  ;;  %v693_v13 = vadd.f32 %v1092_v5, %v605_v4 }
 0x10b   :  { %v1038_v50 = vpop.f32.mrf.mxu0  ;;  %v1095_v57 = vadd.f32 %v1094_v49, %v1093_v47 }
 0x10c   :  { %v1096_v51 = vpop.f32.mrf.mxu1  ;;  %v608_v16 = vadd.f32 %v1037_v6, %v1553_v59 }
 0x10d   :  { %v1039_v52 = vpop.f32.mrf.mxu0 }
 0x10e   :  { %v1097_v53 = vpop.f32.mrf.mxu1  ;;  %v1040_v44 = vadd.f32 %v1039_v52, %v1038_v50  ;;  %v696_v60 = vadd.f32 %v1095_v57, %v608_v16 }
 0x10f   :  { %v1041_v54 = vpop.f32.mrf.mxu0  ;;  %v1098_v20 = vadd.f32 %v1097_v53, %v1096_v51 }
 0x110   :  { %v1099_v55 = vpop.f32.mrf.mxu1  ;;  %v613_v18 = vadd.f32 %v1040_v44, %v1553_v59 }
 0x111   :  { %v1042_v56 = vpop.f32.mrf.mxu0 }
 0x112   :  { %v1100_v58 = vpop.f32.mrf.mxu1  ;;  %v1043_v49 = vadd.f32 %v1042_v56, %v1041_v54  ;;  %v701_v54 = vadd.f32 %v1098_v20, %v613_v18 }
 0x113   :  { %v1044_v61 = vpop.f32.mrf.mxu0  ;;  %v1101_v23 = vadd.f32 %v1100_v58, %v1099_v55  ;;  %v1080_v55 = vadd.f32 %v1524_v29, %v1520_v27 }
 0x114   :  { %v1555_v62 = vpop.f32.mrf.mxu1  ;;  %v616_v56 = vadd.f32 %v1043_v49, %v1553_v59 }
 0x115   :  { %v1045_v0 = vpop.f32.mrf.mxu0 }
 0x116   :  { %v1558_v3 = vpop.f32.mrf.mxu1  ;;  %v1046_v25 = vadd.f32 %v1045_v0, %v1044_v61  ;;  %v672_v0 = vadd.f32 %v1077_v19, %v584_v24  ;;  %v704_v29 = vadd.f32 %v1101_v23, %v616_v56  ;;  %v1655_v24 = vld [vmem:[#allocation2_spill] sm:$0xff] }
 0x117   :  { %v1047_v7 = vpop.f32.mrf.mxu0 }
 0x118   :  { %v1105_v8 = vpop.f32.mrf.mxu1  ;;  %v621_v44 = vadd.f32 %v1046_v25, %v1553_v59 }
 0x119   :  { %v1048_v42 = vpop.f32.mrf.mxu0  ;;  %v1025_v8 = vadd.f32 %v1530_v32, %v1526_v30  ;;  %v1104_v30 = vadd.f32 %v1558_v3, %v1555_v62  ;;  %v1028_v62 = vadd.f32 %v1538_v36, %v1534_v34 }
 0x11a   :  { %v1106_v41 = vpop.f32.mrf.mxu1 }
 0x11b   :  { %v748_v11 = vpop.f32.mrf.mxu0  ;;  %v709_v17 = vadd.f32 %v1104_v30, %v621_v44 }
 0x11c   :  { %v749_v39 = vadd.f32 %v748_v11, %v661_v14  ;;  %v780_v40 = vpop.f32.mrf.mxu1  ;;  %v592_v11 = vadd.f32 %v1025_v8, %v1553_v59 }
 0x11d   :  { %v781_v46 = vadd.f32 %v780_v40, %v693_v13  ;;  %v1129_v48 = vpop.f32.mrf.mxu0  ;;  %v1083_v13 = vadd.f32 %v1532_v33, %v1528_v31 }
 0x11e   :  { %v802_v41 = vmax.f32 %v749_v39, 0.0  ;;  %v1145_v47 = vpop.f32.mrf.mxu1  ;;  %v1022_v39 = vadd.f32 %v1522_v28, %v1518_v26 }
 0x11f   :  { %v810_v50 = vmax.f32 %v781_v46, 0.0  ;;  %v751_v52 = vpop.f32.mrf.mxu0  ;;  %v680_v49 = vadd.f32 %v1083_v13, %v592_v11 }
 0x120   :  { %v979_v63 = vpack.c.bf16 %v802_v41, %v802_v41  ;;  %v752_v1 = vadd.f32 %v751_v52, %v664_v15  ;;  %v783_v2 = vpop.f32.mrf.mxu1  ;;  %v589_v42 = vadd.f32 %v1022_v39, %v1553_v59  ;;  %v1086_v52 = vadd.f32 %v1540_v37, %v1536_v35  ;;  %v1656_v39 = vld [vmem:[#allocation4_spill] sm:$0xff] }
 0x121   :  { %v987_v21 = vpack.c.bf16 %v810_v50, %v810_v50  ;;  %v784_v40 = vadd.f32 %v783_v2, %v696_v60  ;;  %v1130_v4 = vpop.f32.mrf.mxu0  ;;  %v597_v50 = vadd.f32 %v1028_v62, %v1553_v59  ;;  %v1654_v60 = vld [vmem:[#allocation3_spill] sm:$0xff] }
 0x122   :  { %869 = vst.msk [vmem:[%s1650_s3] sm:$0xf] %vm868_vm2, %v979_v63  ;;  %v803_v51 = vmax.f32 %v752_v1, 0.0  ;;  %v1146_v53 = vpop.f32.mrf.mxu1  ;;  %v677_v15 = vadd.f32 %v1080_v55, %v589_v42  ;;  %v1031_v63 = vadd.f32 %v1654_v60, %v1542_v38 }
 0x123   :  { %877 = vst.msk [vmem:[%s1650_s3 + $0x20] sm:$0xf] %vm868_vm2, %v987_v21  ;;  %v811_v5 = vmax.f32 %v784_v40, 0.0  ;;  %v756_v6 = vpop.f32.mrf.mxu0 }
 0x124   :  { %v980_v26 = vpack.c.bf16 %v803_v51, %v803_v51  ;;  %v757_v28 = vadd.f32 %v756_v6, %v669_v22  ;;  %v788_v7 = vpop.f32.mrf.mxu1  ;;  %v600_v22 = vadd.f32 %v1031_v63, %v1553_v59  ;;  %v1089_v51 = vadd.f32 %v1656_v39, %v1655_v24 }
 0x125   :  { %v988_v9 = vpack.c.bf16 %v811_v5, %v811_v5  ;;  %v789_v10 = vadd.f32 %v788_v7, %v701_v54  ;;  %v1133_v12 = vpop.f32.mrf.mxu0  ;;  %v685_v54 = vadd.f32 %v1086_v52, %v597_v50 }
 0x126   :  { %870 = vst.msk [vmem:[%s1650_s3 + $0x4] sm:$0xf] %vm868_vm2, %v980_v26  ;;  %v804_v58 = vmax.f32 %v757_v28, 0.0  ;;  %v1149_v61 = vpop.f32.mrf.mxu1  ;;  %v688_v26 = vadd.f32 %v1089_v51, %v600_v22 }
 0x127   :  { %878 = vst.msk [vmem:[%s1650_s3 + $0x24] sm:$0xf] %vm868_vm2, %v988_v9  ;;  %v812_v32 = vmax.f32 %v789_v10, 0.0  ;;  %v759_v27 = vpop.f32.mrf.mxu0 }
 0x128   :  { %v981_v14 = vpack.c.bf16 %v804_v58, %v804_v58  ;;  %v760_v16 = vadd.f32 %v759_v27, %v672_v0  ;;  %v791_v57 = vpop.f32.mrf.mxu1 }
 0x129   :  { %v989_v43 = vpack.c.bf16 %v812_v32, %v812_v32  ;;  %v792_v45 = vadd.f32 %v791_v57, %v704_v29  ;;  %v1134_v46 = vpop.f32.mrf.mxu0 }
 0x12a   :  { %871 = vst.msk [vmem:[%s1650_s3 + $0x8] sm:$0xf] %vm868_vm2, %v981_v14  ;;  %v805_v3 = vmax.f32 %v760_v16, 0.0  ;;  %v1150_v48 = vpop.f32.mrf.mxu1 }
 0x12b   :  { %879 = vst.msk [vmem:[%s1650_s3 + $0x28] sm:$0xf] %vm868_vm2, %v989_v43  ;;  %v813_v31 = vmax.f32 %v792_v45, 0.0  ;;  %v764_v33 = vpop.f32.mrf.mxu0 }
 0x12c   :  { %v982_v18 = vpack.c.bf16 %v805_v3, %v805_v3  ;;  %v765_v20 = vadd.f32 %v764_v33, %v677_v15  ;;  %v796_v41 = vpop.f32.mrf.mxu1 }
 0x12d   :  { %v990_v34 = vpack.c.bf16 %v813_v31, %v813_v31  ;;  %v797_v36 = vadd.f32 %v796_v41, %v709_v17  ;;  %v1137_v47 = vpop.f32.mrf.mxu0 }
 0x12e   :  { %872 = vst.msk [vmem:[%s1650_s3 + $0xc] sm:$0xf] %vm868_vm2, %v982_v18  ;;  %v806_v1 = vmax.f32 %v765_v20, 0.0  ;;  %v1153_v2 = vpop.f32.mrf.mxu1 }
 0x12f   :  { %880 = vst.msk [vmem:[%s1650_s3 + $0x2c] sm:$0xf] %vm868_vm2, %v990_v34  ;;  %v814_v19 = vmax.f32 %v797_v36, 0.0  ;;  %v767_v21 = vpop.f32.mrf.mxu0 }
 0x130   :  { %v983_v40 = vpack.c.bf16 %v806_v1, %v806_v1  ;;  %v768_v35 = vadd.f32 %v767_v21, %v680_v49  ;;  %v799_v37 = vpop.f32.mrf.mxu1 }
 0x131   :  { %v991_v4 = vpack.c.bf16 %v814_v19, %v814_v19  ;;  %v1138_v38 = vpop.f32.mrf.mxu0 }
 0x132   :  { %873 = vst.msk [vmem:[%s1650_s3 + $0x10] sm:$0xf] %vm868_vm2, %v983_v40  ;;  %v807_v53 = vmax.f32 %v768_v35, 0.0  ;;  %v1154_v56 = vpop.f32.mrf.mxu1 }
 0x133   :  { %882 = vst.msk [vmem:[%s1650_s3 + $0x30] sm:$0x1] %vm881_vm3, %v991_v4  ;;  %v772_v23 = vpop.f32.mrf.mxu0 }
 0x134   :  { %v984_v25 = vpack.c.bf16 %v807_v53, %v807_v53  ;;  %v773_v5 = vadd.f32 %v772_v23, %v685_v54 }
 0x135   :  { %v1141_v6 = vpop.f32.mrf.mxu0 }
 0x136   :  { %874 = vst.msk [vmem:[%s1650_s3 + $0x14] sm:$0xf] %vm868_vm2, %v984_v25  ;;  %v808_v59 = vmax.f32 %v773_v5, 0.0 }
 0x137   :  { %v775_v28 = vpop.f32.mrf.mxu0 }
 0x138   :  { %v985_v7 = vpack.c.bf16 %v808_v59, %v808_v59  ;;  %v776_v8 = vadd.f32 %v775_v28, %v688_v26 }
 0x139   :  { %v1142_v9 = vpop.f32.mrf.mxu0 }
 0x13a   :  { %875 = vst.msk [vmem:[%s1650_s3 + $0x18] sm:$0xf] %vm868_vm2, %v985_v7  ;;  %v809_v10 = vmax.f32 %v776_v8, 0.0 }
 0x13c   :  { %v986_v12 = vpack.c.bf16 %v809_v10, %v809_v10 }
 0x13e   :  { %876 = vst.msk [vmem:[%s1650_s3 + $0x1c] sm:$0xf] %vm868_vm2, %v986_v12 }

// kernel: ddqn_forward.7
= control target key start
LH: loop header
LB: loop body
LE: loop exit
PB: predicated region body
PF: predicated region fallthrough
CT: control target
= control target key end

     0   :  { %s6354_s18 = smov 0   ;;  %s6356_s19 = smov 0   ;;  %s7714_s0 = inlined_call_operand.vmem [shape: bf16[2,3136], index: 0, kind: input, shape index: {}]   ;;  %s7715_s1 = inlined_call_operand.vmem [shape: bf16[3136,1024], index: 1, kind: input, shape index: {}]   ;;  %s7716_s2 = inlined_call_operand.vmem [shape: f32[1,1024], index: 2, kind: input, shape index: {}]   ;;  %s7717_s3 = inlined_call_operand.vmem [shape: bf16[1024,128], index: 3, kind: input, shape index: {}]   ;;  %s7718_s4 = inlined_call_operand.vmem [shape: f32[1,128], index: 4, kind: input, shape index: {}]   ;;  %s7719_s5 = inlined_call_operand.vmem [shape: f32[2,128], index: 5, kind: output, shape index: {}]  }
   0x1   :  { %s6358_s20 = smov 0  }
   0x2 LB: > { %s6370_s21 = sadd.s32 4294967295, %s6319_s20   ;;  %s6373_s22 = sadd.s32 1, %s6319_s20   ;;  %s6319_s20 = sphi %s6358_s20, %s7722_s20   ;;  %s6315_s19 = sphi %s6356_s19, %s7721_s19   ;;  %s6311_s18 = sphi %s6354_s18, %s7720_s18  }
   0x3   : > { %s40_s23 = ssub.s32 %s6319_s20, %s6373_s22  ;;  %s43_s24 = sadd.s32 1, %s6315_s19 }
   0x4   : > { %p41_p0 = scmp.eq.s32.totalorder %s40_s23, 0  ;;  %p50_p1 = scmp.ne.s32.totalorder %s6315_s19, %s6311_s18 }
   0x5   : > { %p51_p2 = scmp.eq.s32.totalorder %s6319_s20, 0  ;;  %p5216_p4 = scmp.ge.s32.totalorder %s6319_s20, 4 }
   0x6   : > { %s6382_s25 = scalar_select %p41_p0, %s6315_s19, %s43_s24  }
   0x7   : > { %p52_p3 = por %p51_p2, %p50_p1  ;;  %176 = sbr.rel (%p5216_p4) target bundleno = 408 (0x198), region = 24 }
   0xc   : > { %179 = sbr.rel (!%p52_p3) target bundleno = 408 (0x198), region = 28  ;;  %s181_s26 = sand.u32 (%p52_p3), 1, %s6315_s19  }
   0xd   : > { %s5638_s27 = sshll.u32 (%p52_p3), %s6319_s20, 3  ;;  %s5661_s28 = smul.u32 (%p52_p3), 3136, %s181_s26 }
   0xe   : > { %s6390_s6 = scalar_lea.vmem (%p52_p3), %s7715_s1, %s5638_s27 }
   0xf   : > { %v997_v0 = vld [vmem:[%s6390_s6] sm:$0xff] (%p52_p3)  ;;  %s6398_s7 = scalar_lea.vmem (%p52_p3), [#allocation3], %s5661_s28 }
  0x10   : > { %v999_v1 = vld [vmem:[%s6390_s6 + $0x20] sm:$0xff] (%p52_p3)  ;;  %998 = vst [vmem:[%s6398_s7] sm:$0xff] (%p52_p3), %v997_v0 }
  0x11   : > { %v1001_v2 = vld [vmem:[%s6390_s6 + $0x40] sm:$0xff]  ;;  %1000 = vst [vmem:[%s6398_s7 + $0x8] sm:$0xff] %v999_v1 }
  0x12   : > { %v1003_v3 = vld [vmem:[%s6390_s6 + $0x60] sm:$0xff]  ;;  %1002 = vst [vmem:[%s6398_s7 + $0x10] sm:$0xff] %v1001_v2 }
  0x13   : > { %v1005_v4 = vld [vmem:[%s6390_s6 + $0x80] sm:$0xff]  ;;  %1004 = vst [vmem:[%s6398_s7 + $0x18] sm:$0xff] %v1003_v3 }
  0x14   : > { %v1007_v5 = vld [vmem:[%s6390_s6 + $0xa0] sm:$0xff]  ;;  %1006 = vst [vmem:[%s6398_s7 + $0x20] sm:$0xff] %v1005_v4 }
  0x15   : > { %1008 = vst [vmem:[%s6398_s7 + $0x28] sm:$0xff] %v1007_v5  ;;  %v1009_v6 = vld [vmem:[%s6390_s6 + $0xc0] sm:$0xff] }
  0x16   : > { %v1011_v7 = vld [vmem:[%s6390_s6 + $0xe0] sm:$0xff]  ;;  %1010 = vst [vmem:[%s6398_s7 + $0x30] sm:$0xff] %v1009_v6 }
  0x17   : > { %v1013_v8 = vld [vmem:[%s6390_s6 + $0x100] sm:$0xff]  ;;  %1012 = vst [vmem:[%s6398_s7 + $0x38] sm:$0xff] %v1011_v7 }
  0x18   : > { %1014 = vst [vmem:[%s6398_s7 + $0x40] sm:$0xff] %v1013_v8  ;;  %v1015_v9 = vld [vmem:[%s6390_s6 + $0x120] sm:$0xff] }
  0x19   : > { %v1017_v10 = vld [vmem:[%s6390_s6 + $0x140] sm:$0xff]  ;;  %1016 = vst [vmem:[%s6398_s7 + $0x48] sm:$0xff] %v1015_v9 }
  0x1a   : > { %v1019_v11 = vld [vmem:[%s6390_s6 + $0x160] sm:$0xff]  ;;  %1018 = vst [vmem:[%s6398_s7 + $0x50] sm:$0xff] %v1017_v10 }
  0x1b   : > { %1020 = vst [vmem:[%s6398_s7 + $0x58] sm:$0xff] %v1019_v11  ;;  %v1021_v12 = vld [vmem:[%s6390_s6 + $0x180] sm:$0xff] }
  0x1c   : > { %v1023_v13 = vld [vmem:[%s6390_s6 + $0x1a0] sm:$0xff]  ;;  %1022 = vst [vmem:[%s6398_s7 + $0x60] sm:$0xff] %v1021_v12 }
  0x1d   : > { %v1025_v14 = vld [vmem:[%s6390_s6 + $0x1c0] sm:$0xff]  ;;  %1024 = vst [vmem:[%s6398_s7 + $0x68] sm:$0xff] %v1023_v13 }
  0x1e   : > { %1026 = vst [vmem:[%s6398_s7 + $0x70] sm:$0xff] %v1025_v14  ;;  %v1027_v15 = vld [vmem:[%s6390_s6 + $0x1e0] sm:$0xff] }
  0x1f   : > { %v1029_v16 = vld [vmem:[%s6390_s6 + $0x200] sm:$0xff]  ;;  %1028 = vst [vmem:[%s6398_s7 + $0x78] sm:$0xff] %v1027_v15 }
  0x20   : > { %v1031_v17 = vld [vmem:[%s6390_s6 + $0x220] sm:$0xff]  ;;  %1030 = vst [vmem:[%s6398_s7 + $0x80] sm:$0xff] %v1029_v16 }
  0x21   : > { %1032 = vst [vmem:[%s6398_s7 + $0x88] sm:$0xff] %v1031_v17  ;;  %v1033_v18 = vld [vmem:[%s6390_s6 + $0x240] sm:$0xff] }
  0x22   : > { %v1035_v19 = vld [vmem:[%s6390_s6 + $0x260] sm:$0xff]  ;;  %1034 = vst [vmem:[%s6398_s7 + $0x90] sm:$0xff] %v1033_v18 }
  0x23   : > { %v1037_v20 = vld [vmem:[%s6390_s6 + $0x280] sm:$0xff]  ;;  %1036 = vst [vmem:[%s6398_s7 + $0x98] sm:$0xff] %v1035_v19 }
  0x24   : > { %1038 = vst [vmem:[%s6398_s7 + $0xa0] sm:$0xff] %v1037_v20  ;;  %v1039_v21 = vld [vmem:[%s6390_s6 + $0x2a0] sm:$0xff] }
  0x25   : > { %v1041_v22 = vld [vmem:[%s6390_s6 + $0x2c0] sm:$0xff]  ;;  %1040 = vst [vmem:[%s6398_s7 + $0xa8] sm:$0xff] %v1039_v21 }
  0x26   : > { %v1043_v23 = vld [vmem:[%s6390_s6 + $0x2e0] sm:$0xff]  ;;  %1042 = vst [vmem:[%s6398_s7 + $0xb0] sm:$0xff] %v1041_v22 }
  0x27   : > { %1044 = vst [vmem:[%s6398_s7 + $0xb8] sm:$0xff] %v1043_v23  ;;  %v1045_v24 = vld [vmem:[%s6390_s6 + $0x300] sm:$0xff] }
  0x28   : > { %v1047_v25 = vld [vmem:[%s6390_s6 + $0x320] sm:$0xff]  ;;  %1046 = vst [vmem:[%s6398_s7 + $0xc0] sm:$0xff] %v1045_v24 }
  0x29   : > { %v1049_v26 = vld [vmem:[%s6390_s6 + $0x340] sm:$0xff]  ;;  %1048 = vst [vmem:[%s6398_s7 + $0xc8] sm:$0xff] %v1047_v25 }
  0x2a   : > { %1050 = vst [vmem:[%s6398_s7 + $0xd0] sm:$0xff] %v1049_v26  ;;  %v1051_v27 = vld [vmem:[%s6390_s6 + $0x360] sm:$0xff] }
  0x2b   : > { %v1053_v28 = vld [vmem:[%s6390_s6 + $0x380] sm:$0xff]  ;;  %1052 = vst [vmem:[%s6398_s7 + $0xd8] sm:$0xff] %v1051_v27 }
  0x2c   : > { %v1055_v29 = vld [vmem:[%s6390_s6 + $0x3a0] sm:$0xff]  ;;  %1054 = vst [vmem:[%s6398_s7 + $0xe0] sm:$0xff] %v1053_v28 }
  0x2d   : > { %1056 = vst [vmem:[%s6398_s7 + $0xe8] sm:$0xff] %v1055_v29  ;;  %v1057_v30 = vld [vmem:[%s6390_s6 + $0x3c0] sm:$0xff] }
  0x2e   : > { %v1059_v31 = vld [vmem:[%s6390_s6 + $0x3e0] sm:$0xff]  ;;  %1058 = vst [vmem:[%s6398_s7 + $0xf0] sm:$0xff] %v1057_v30 }
  0x2f   : > { %v1061_v32 = vld [vmem:[%s6390_s6 + $0x400] sm:$0xff]  ;;  %1060 = vst [vmem:[%s6398_s7 + $0xf8] sm:$0xff] %v1059_v31 }
  0x30   : > { %1062 = vst [vmem:[%s6398_s7 + $0x100] sm:$0xff] %v1061_v32  ;;  %v1063_v33 = vld [vmem:[%s6390_s6 + $0x420] sm:$0xff] }
  0x31   : > { %v1065_v34 = vld [vmem:[%s6390_s6 + $0x440] sm:$0xff]  ;;  %1064 = vst [vmem:[%s6398_s7 + $0x108] sm:$0xff] %v1063_v33 }
  0x32   : > { %v1067_v35 = vld [vmem:[%s6390_s6 + $0x460] sm:$0xff]  ;;  %1066 = vst [vmem:[%s6398_s7 + $0x110] sm:$0xff] %v1065_v34 }
  0x33   : > { %1068 = vst [vmem:[%s6398_s7 + $0x118] sm:$0xff] %v1067_v35  ;;  %v1069_v36 = vld [vmem:[%s6390_s6 + $0x480] sm:$0xff] }
  0x34   : > { %v1071_v37 = vld [vmem:[%s6390_s6 + $0x4a0] sm:$0xff]  ;;  %1070 = vst [vmem:[%s6398_s7 + $0x120] sm:$0xff] %v1069_v36 }
  0x35   : > { %v1073_v38 = vld [vmem:[%s6390_s6 + $0x4c0] sm:$0xff]  ;;  %1072 = vst [vmem:[%s6398_s7 + $0x128] sm:$0xff] %v1071_v37 }
  0x36   : > { %1074 = vst [vmem:[%s6398_s7 + $0x130] sm:$0xff] %v1073_v38  ;;  %v1075_v39 = vld [vmem:[%s6390_s6 + $0x4e0] sm:$0xff] }
  0x37   : > { %v1077_v40 = vld [vmem:[%s6390_s6 + $0x500] sm:$0xff]  ;;  %1076 = vst [vmem:[%s6398_s7 + $0x138] sm:$0xff] %v1075_v39 }
  0x38   : > { %v1079_v41 = vld [vmem:[%s6390_s6 + $0x520] sm:$0xff]  ;;  %1078 = vst [vmem:[%s6398_s7 + $0x140] sm:$0xff] %v1077_v40 }
  0x39   : > { %1080 = vst [vmem:[%s6398_s7 + $0x148] sm:$0xff] %v1079_v41  ;;  %v1081_v42 = vld [vmem:[%s6390_s6 + $0x540] sm:$0xff] }
  0x3a   : > { %v1083_v43 = vld [vmem:[%s6390_s6 + $0x560] sm:$0xff]  ;;  %1082 = vst [vmem:[%s6398_s7 + $0x150] sm:$0xff] %v1081_v42 }
  0x3b   : > { %v1085_v44 = vld [vmem:[%s6390_s6 + $0x580] sm:$0xff]  ;;  %1084 = vst [vmem:[%s6398_s7 + $0x158] sm:$0xff] %v1083_v43 }
  0x3c   : > { %1086 = vst [vmem:[%s6398_s7 + $0x160] sm:$0xff] %v1085_v44  ;;  %v1087_v45 = vld [vmem:[%s6390_s6 + $0x5a0] sm:$0xff] }
  0x3d   : > { %v1089_v46 = vld [vmem:[%s6390_s6 + $0x5c0] sm:$0xff]  ;;  %1088 = vst [vmem:[%s6398_s7 + $0x168] sm:$0xff] %v1087_v45 }
  0x3e   : > { %v1091_v47 = vld [vmem:[%s6390_s6 + $0x5e0] sm:$0xff]  ;;  %1090 = vst [vmem:[%s6398_s7 + $0x170] sm:$0xff] %v1089_v46 }
  0x3f   : > { %1092 = vst [vmem:[%s6398_s7 + $0x178] sm:$0xff] %v1091_v47  ;;  %v1093_v48 = vld [vmem:[%s6390_s6 + $0x600] sm:$0xff] }
  0x40   : > { %v1095_v49 = vld [vmem:[%s6390_s6 + $0x620] sm:$0xff]  ;;  %1094 = vst [vmem:[%s6398_s7 + $0x180] sm:$0xff] %v1093_v48 }
  0x41   : > { %v1097_v50 = vld [vmem:[%s6390_s6 + $0x640] sm:$0xff]  ;;  %1096 = vst [vmem:[%s6398_s7 + $0x188] sm:$0xff] %v1095_v49 }
  0x42   : > { %1098 = vst [vmem:[%s6398_s7 + $0x190] sm:$0xff] %v1097_v50  ;;  %v1099_v51 = vld [vmem:[%s6390_s6 + $0x660] sm:$0xff] }
  0x43   : > { %v1101_v52 = vld [vmem:[%s6390_s6 + $0x680] sm:$0xff]  ;;  %1100 = vst [vmem:[%s6398_s7 + $0x198] sm:$0xff] %v1099_v51 }
  0x44   : > { %v1103_v53 = vld [vmem:[%s6390_s6 + $0x6a0] sm:$0xff]  ;;  %1102 = vst [vmem:[%s6398_s7 + $0x1a0] sm:$0xff] %v1101_v52 }
  0x45   : > { %1104 = vst [vmem:[%s6398_s7 + $0x1a8] sm:$0xff] %v1103_v53  ;;  %v1105_v54 = vld [vmem:[%s6390_s6 + $0x6c0] sm:$0xff] }
  0x46   : > { %v1107_v55 = vld [vmem:[%s6390_s6 + $0x6e0] sm:$0xff]  ;;  %1106 = vst [vmem:[%s6398_s7 + $0x1b0] sm:$0xff] %v1105_v54 }
  0x47   : > { %v1109_v56 = vld [vmem:[%s6390_s6 + $0x700] sm:$0xff]  ;;  %1108 = vst [vmem:[%s6398_s7 + $0x1b8] sm:$0xff] %v1107_v55 }
  0x48   : > { %1110 = vst [vmem:[%s6398_s7 + $0x1c0] sm:$0xff] %v1109_v56  ;;  %v1111_v57 = vld [vmem:[%s6390_s6 + $0x720] sm:$0xff] }
  0x49   : > { %v1113_v58 = vld [vmem:[%s6390_s6 + $0x740] sm:$0xff]  ;;  %1112 = vst [vmem:[%s6398_s7 + $0x1c8] sm:$0xff] %v1111_v57 }
  0x4a   : > { %v1115_v59 = vld [vmem:[%s6390_s6 + $0x760] sm:$0xff]  ;;  %1114 = vst [vmem:[%s6398_s7 + $0x1d0] sm:$0xff] %v1113_v58 }
  0x4b   : > { %1116 = vst [vmem:[%s6398_s7 + $0x1d8] sm:$0xff] %v1115_v59  ;;  %v1117_v60 = vld [vmem:[%s6390_s6 + $0x780] sm:$0xff] }
  0x4c   : > { %v1119_v61 = vld [vmem:[%s6390_s6 + $0x7a0] sm:$0xff]  ;;  %1118 = vst [vmem:[%s6398_s7 + $0x1e0] sm:$0xff] %v1117_v60 }
  0x4d   : > { %v1121_v62 = vld [vmem:[%s6390_s6 + $0x7c0] sm:$0xff]  ;;  %1120 = vst [vmem:[%s6398_s7 + $0x1e8] sm:$0xff] %v1119_v61 }
  0x4e   : > { %1122 = vst [vmem:[%s6398_s7 + $0x1f0] sm:$0xff] %v1121_v62  ;;  %v1123_v63 = vld [vmem:[%s6390_s6 + $0x7e0] sm:$0xff] }
  0x4f   : > { %v1125_v0 = vld [vmem:[%s6390_s6 + $0x800] sm:$0xff]  ;;  %1124 = vst [vmem:[%s6398_s7 + $0x1f8] sm:$0xff] %v1123_v63 }
  0x50   : > { %v1127_v1 = vld [vmem:[%s6390_s6 + $0x820] sm:$0xff]  ;;  %1126 = vst [vmem:[%s6398_s7 + $0x200] sm:$0xff] %v1125_v0 }
  0x51   : > { %1128 = vst [vmem:[%s6398_s7 + $0x208] sm:$0xff] %v1127_v1  ;;  %v1129_v2 = vld [vmem:[%s6390_s6 + $0x840] sm:$0xff] }
  0x52   : > { %v1131_v3 = vld [vmem:[%s6390_s6 + $0x860] sm:$0xff]  ;;  %1130 = vst [vmem:[%s6398_s7 + $0x210] sm:$0xff] %v1129_v2 }
  0x53   : > { %v1133_v4 = vld [vmem:[%s6390_s6 + $0x880] sm:$0xff]  ;;  %1132 = vst [vmem:[%s6398_s7 + $0x218] sm:$0xff] %v1131_v3 }
  0x54   : > { %1134 = vst [vmem:[%s6398_s7 + $0x220] sm:$0xff] %v1133_v4  ;;  %v1135_v5 = vld [vmem:[%s6390_s6 + $0x8a0] sm:$0xff] }
  0x55   : > { %v1137_v6 = vld [vmem:[%s6390_s6 + $0x8c0] sm:$0xff]  ;;  %1136 = vst [vmem:[%s6398_s7 + $0x228] sm:$0xff] %v1135_v5 }
  0x56   : > { %v1139_v7 = vld [vmem:[%s6390_s6 + $0x8e0] sm:$0xff]  ;;  %1138 = vst [vmem:[%s6398_s7 + $0x230] sm:$0xff] %v1137_v6 }
  0x57   : > { %1140 = vst [vmem:[%s6398_s7 + $0x238] sm:$0xff] %v1139_v7  ;;  %v1141_v8 = vld [vmem:[%s6390_s6 + $0x900] sm:$0xff] }
  0x58   : > { %v1143_v9 = vld [vmem:[%s6390_s6 + $0x920] sm:$0xff]  ;;  %1142 = vst [vmem:[%s6398_s7 + $0x240] sm:$0xff] %v1141_v8 }
  0x59   : > { %v1145_v10 = vld [vmem:[%s6390_s6 + $0x940] sm:$0xff]  ;;  %1144 = vst [vmem:[%s6398_s7 + $0x248] sm:$0xff] %v1143_v9 }
  0x5a   : > { %1146 = vst [vmem:[%s6398_s7 + $0x250] sm:$0xff] %v1145_v10  ;;  %v1147_v11 = vld [vmem:[%s6390_s6 + $0x960] sm:$0xff] }
  0x5b   : > { %v1149_v12 = vld [vmem:[%s6390_s6 + $0x980] sm:$0xff]  ;;  %1148 = vst [vmem:[%s6398_s7 + $0x258] sm:$0xff] %v1147_v11 }
  0x5c   : > { %v1151_v13 = vld [vmem:[%s6390_s6 + $0x9a0] sm:$0xff]  ;;  %1150 = vst [vmem:[%s6398_s7 + $0x260] sm:$0xff] %v1149_v12 }
  0x5d   : > { %1152 = vst [vmem:[%s6398_s7 + $0x268] sm:$0xff] %v1151_v13  ;;  %v1153_v14 = vld [vmem:[%s6390_s6 + $0x9c0] sm:$0xff] }
  0x5e   : > { %v1155_v15 = vld [vmem:[%s6390_s6 + $0x9e0] sm:$0xff]  ;;  %1154 = vst [vmem:[%s6398_s7 + $0x270] sm:$0xff] %v1153_v14 }
  0x5f   : > { %v1157_v16 = vld [vmem:[%s6390_s6 + $0xa00] sm:$0xff]  ;;  %1156 = vst [vmem:[%s6398_s7 + $0x278] sm:$0xff] %v1155_v15 }
  0x60   : > { %1158 = vst [vmem:[%s6398_s7 + $0x280] sm:$0xff] %v1157_v16  ;;  %v1159_v17 = vld [vmem:[%s6390_s6 + $0xa20] sm:$0xff] }
  0x61   : > { %v1161_v18 = vld [vmem:[%s6390_s6 + $0xa40] sm:$0xff]  ;;  %1160 = vst [vmem:[%s6398_s7 + $0x288] sm:$0xff] %v1159_v17 }
  0x62   : > { %v1163_v19 = vld [vmem:[%s6390_s6 + $0xa60] sm:$0xff]  ;;  %1162 = vst [vmem:[%s6398_s7 + $0x290] sm:$0xff] %v1161_v18 }
  0x63   : > { %1164 = vst [vmem:[%s6398_s7 + $0x298] sm:$0xff] %v1163_v19  ;;  %v1165_v20 = vld [vmem:[%s6390_s6 + $0xa80] sm:$0xff] }
  0x64   : > { %v1167_v21 = vld [vmem:[%s6390_s6 + $0xaa0] sm:$0xff]  ;;  %1166 = vst [vmem:[%s6398_s7 + $0x2a0] sm:$0xff] %v1165_v20 }
  0x65   : > { %v1169_v22 = vld [vmem:[%s6390_s6 + $0xac0] sm:$0xff]  ;;  %1168 = vst [vmem:[%s6398_s7 + $0x2a8] sm:$0xff] %v1167_v21 }
  0x66   : > { %1170 = vst [vmem:[%s6398_s7 + $0x2b0] sm:$0xff] %v1169_v22  ;;  %v1171_v23 = vld [vmem:[%s6390_s6 + $0xae0] sm:$0xff] }
  0x67   : > { %v1173_v24 = vld [vmem:[%s6390_s6 + $0xb00] sm:$0xff]  ;;  %1172 = vst [vmem:[%s6398_s7 + $0x2b8] sm:$0xff] %v1171_v23 }
  0x68   : > { %v1175_v25 = vld [vmem:[%s6390_s6 + $0xb20] sm:$0xff]  ;;  %1174 = vst [vmem:[%s6398_s7 + $0x2c0] sm:$0xff] %v1173_v24 }
  0x69   : > { %1176 = vst [vmem:[%s6398_s7 + $0x2c8] sm:$0xff] %v1175_v25  ;;  %v1177_v26 = vld [vmem:[%s6390_s6 + $0xb40] sm:$0xff] }
  0x6a   : > { %v1179_v27 = vld [vmem:[%s6390_s6 + $0xb60] sm:$0xff]  ;;  %1178 = vst [vmem:[%s6398_s7 + $0x2d0] sm:$0xff] %v1177_v26 }
  0x6b   : > { %v1181_v28 = vld [vmem:[%s6390_s6 + $0xb80] sm:$0xff]  ;;  %1180 = vst [vmem:[%s6398_s7 + $0x2d8] sm:$0xff] %v1179_v27 }
  0x6c   : > { %1182 = vst [vmem:[%s6398_s7 + $0x2e0] sm:$0xff] %v1181_v28  ;;  %v1183_v29 = vld [vmem:[%s6390_s6 + $0xba0] sm:$0xff] }
  0x6d   : > { %v1185_v30 = vld [vmem:[%s6390_s6 + $0xbc0] sm:$0xff]  ;;  %1184 = vst [vmem:[%s6398_s7 + $0x2e8] sm:$0xff] %v1183_v29 }
  0x6e   : > { %v1187_v31 = vld [vmem:[%s6390_s6 + $0xbe0] sm:$0xff]  ;;  %1186 = vst [vmem:[%s6398_s7 + $0x2f0] sm:$0xff] %v1185_v30 }
  0x6f   : > { %1188 = vst [vmem:[%s6398_s7 + $0x2f8] sm:$0xff] %v1187_v31  ;;  %v1189_v32 = vld [vmem:[%s6390_s6 + $0xc00] sm:$0xff] }
  0x70   : > { %v1191_v33 = vld [vmem:[%s6390_s6 + $0xc20] sm:$0xff]  ;;  %1190 = vst [vmem:[%s6398_s7 + $0x300] sm:$0xff] %v1189_v32 }
  0x71   : > { %v1193_v34 = vld [vmem:[%s6390_s6 + $0xc40] sm:$0xff]  ;;  %1192 = vst [vmem:[%s6398_s7 + $0x308] sm:$0xff] %v1191_v33 }
  0x72   : > { %1194 = vst [vmem:[%s6398_s7 + $0x310] sm:$0xff] %v1193_v34  ;;  %v1195_v35 = vld [vmem:[%s6390_s6 + $0xc60] sm:$0xff] }
  0x73   : > { %v1197_v36 = vld [vmem:[%s6390_s6 + $0xc80] sm:$0xff]  ;;  %1196 = vst [vmem:[%s6398_s7 + $0x318] sm:$0xff] %v1195_v35 }
  0x74   : > { %v1199_v37 = vld [vmem:[%s6390_s6 + $0xca0] sm:$0xff]  ;;  %1198 = vst [vmem:[%s6398_s7 + $0x320] sm:$0xff] %v1197_v36 }
  0x75   : > { %1200 = vst [vmem:[%s6398_s7 + $0x328] sm:$0xff] %v1199_v37  ;;  %v1201_v38 = vld [vmem:[%s6390_s6 + $0xcc0] sm:$0xff] }
  0x76   : > { %v1203_v39 = vld [vmem:[%s6390_s6 + $0xce0] sm:$0xff]  ;;  %1202 = vst [vmem:[%s6398_s7 + $0x330] sm:$0xff] %v1201_v38 }
  0x77   : > { %v1205_v40 = vld [vmem:[%s6390_s6 + $0xd00] sm:$0xff]  ;;  %1204 = vst [vmem:[%s6398_s7 + $0x338] sm:$0xff] %v1203_v39 }
  0x78   : > { %1206 = vst [vmem:[%s6398_s7 + $0x340] sm:$0xff] %v1205_v40  ;;  %v1207_v41 = vld [vmem:[%s6390_s6 + $0xd20] sm:$0xff] }
  0x79   : > { %v1209_v42 = vld [vmem:[%s6390_s6 + $0xd40] sm:$0xff]  ;;  %1208 = vst [vmem:[%s6398_s7 + $0x348] sm:$0xff] %v1207_v41 }
  0x7a   : > { %v1211_v43 = vld [vmem:[%s6390_s6 + $0xd60] sm:$0xff]  ;;  %1210 = vst [vmem:[%s6398_s7 + $0x350] sm:$0xff] %v1209_v42 }
  0x7b   : > { %1212 = vst [vmem:[%s6398_s7 + $0x358] sm:$0xff] %v1211_v43  ;;  %v1213_v44 = vld [vmem:[%s6390_s6 + $0xd80] sm:$0xff] }
  0x7c   : > { %v1215_v45 = vld [vmem:[%s6390_s6 + $0xda0] sm:$0xff]  ;;  %1214 = vst [vmem:[%s6398_s7 + $0x360] sm:$0xff] %v1213_v44 }
  0x7d   : > { %v1217_v46 = vld [vmem:[%s6390_s6 + $0xdc0] sm:$0xff]  ;;  %1216 = vst [vmem:[%s6398_s7 + $0x368] sm:$0xff] %v1215_v45 }
  0x7e   : > { %1218 = vst [vmem:[%s6398_s7 + $0x370] sm:$0xff] %v1217_v46  ;;  %v1219_v47 = vld [vmem:[%s6390_s6 + $0xde0] sm:$0xff] }
  0x7f   : > { %v1221_v48 = vld [vmem:[%s6390_s6 + $0xe00] sm:$0xff]  ;;  %1220 = vst [vmem:[%s6398_s7 + $0x378] sm:$0xff] %v1219_v47 }
  0x80   : > { %v1223_v49 = vld [vmem:[%s6390_s6 + $0xe20] sm:$0xff]  ;;  %1222 = vst [vmem:[%s6398_s7 + $0x380] sm:$0xff] %v1221_v48 }
  0x81   : > { %1224 = vst [vmem:[%s6398_s7 + $0x388] sm:$0xff] %v1223_v49  ;;  %v1225_v50 = vld [vmem:[%s6390_s6 + $0xe40] sm:$0xff] }
  0x82   : > { %v1227_v51 = vld [vmem:[%s6390_s6 + $0xe60] sm:$0xff]  ;;  %1226 = vst [vmem:[%s6398_s7 + $0x390] sm:$0xff] %v1225_v50 }
  0x83   : > { %v1229_v52 = vld [vmem:[%s6390_s6 + $0xe80] sm:$0xff]  ;;  %1228 = vst [vmem:[%s6398_s7 + $0x398] sm:$0xff] %v1227_v51 }
  0x84   : > { %1230 = vst [vmem:[%s6398_s7 + $0x3a0] sm:$0xff] %v1229_v52  ;;  %v1231_v53 = vld [vmem:[%s6390_s6 + $0xea0] sm:$0xff] }
  0x85   : > { %v1233_v54 = vld [vmem:[%s6390_s6 + $0xec0] sm:$0xff]  ;;  %1232 = vst [vmem:[%s6398_s7 + $0x3a8] sm:$0xff] %v1231_v53 }
  0x86   : > { %v1235_v55 = vld [vmem:[%s6390_s6 + $0xee0] sm:$0xff]  ;;  %1234 = vst [vmem:[%s6398_s7 + $0x3b0] sm:$0xff] %v1233_v54 }
  0x87   : > { %1236 = vst [vmem:[%s6398_s7 + $0x3b8] sm:$0xff] %v1235_v55  ;;  %v1237_v56 = vld [vmem:[%s6390_s6 + $0xf00] sm:$0xff] }
  0x88   : > { %v1239_v57 = vld [vmem:[%s6390_s6 + $0xf20] sm:$0xff]  ;;  %1238 = vst [vmem:[%s6398_s7 + $0x3c0] sm:$0xff] %v1237_v56 }
  0x89   : > { %v1241_v58 = vld [vmem:[%s6390_s6 + $0xf40] sm:$0xff]  ;;  %1240 = vst [vmem:[%s6398_s7 + $0x3c8] sm:$0xff] %v1239_v57 }
  0x8a   : > { %1242 = vst [vmem:[%s6398_s7 + $0x3d0] sm:$0xff] %v1241_v58  ;;  %v1243_v59 = vld [vmem:[%s6390_s6 + $0xf60] sm:$0xff] }
  0x8b   : > { %v1245_v60 = vld [vmem:[%s6390_s6 + $0xf80] sm:$0xff]  ;;  %1244 = vst [vmem:[%s6398_s7 + $0x3d8] sm:$0xff] %v1243_v59 }
  0x8c   : > { %v1247_v61 = vld [vmem:[%s6390_s6 + $0xfa0] sm:$0xff]  ;;  %1246 = vst [vmem:[%s6398_s7 + $0x3e0] sm:$0xff] %v1245_v60 }
  0x8d   : > { %1248 = vst [vmem:[%s6398_s7 + $0x3e8] sm:$0xff] %v1247_v61  ;;  %v1249_v62 = vld [vmem:[%s6390_s6 + $0xfc0] sm:$0xff] }
  0x8e   : > { %v1251_v63 = vld [vmem:[%s6390_s6 + $0xfe0] sm:$0xff]  ;;  %1250 = vst [vmem:[%s6398_s7 + $0x3f0] sm:$0xff] %v1249_v62 }
  0x8f   : > { %v1253_v0 = vld [vmem:[%s6390_s6 + $0x1000] sm:$0xff]  ;;  %1252 = vst [vmem:[%s6398_s7 + $0x3f8] sm:$0xff] %v1251_v63 }
  0x90   : > { %1254 = vst [vmem:[%s6398_s7 + $0x400] sm:$0xff] %v1253_v0  ;;  %v1255_v1 = vld [vmem:[%s6390_s6 + $0x1020] sm:$0xff] }
  0x91   : > { %v1257_v2 = vld [vmem:[%s6390_s6 + $0x1040] sm:$0xff]  ;;  %1256 = vst [vmem:[%s6398_s7 + $0x408] sm:$0xff] %v1255_v1 }
  0x92   : > { %v1259_v3 = vld [vmem:[%s6390_s6 + $0x1060] sm:$0xff]  ;;  %1258 = vst [vmem:[%s6398_s7 + $0x410] sm:$0xff] %v1257_v2 }
  0x93   : > { %1260 = vst [vmem:[%s6398_s7 + $0x418] sm:$0xff] %v1259_v3  ;;  %v1261_v4 = vld [vmem:[%s6390_s6 + $0x1080] sm:$0xff] }
  0x94   : > { %v1263_v5 = vld [vmem:[%s6390_s6 + $0x10a0] sm:$0xff]  ;;  %1262 = vst [vmem:[%s6398_s7 + $0x420] sm:$0xff] %v1261_v4 }
  0x95   : > { %v1265_v6 = vld [vmem:[%s6390_s6 + $0x10c0] sm:$0xff]  ;;  %1264 = vst [vmem:[%s6398_s7 + $0x428] sm:$0xff] %v1263_v5 }
  0x96   : > { %1266 = vst [vmem:[%s6398_s7 + $0x430] sm:$0xff] %v1265_v6  ;;  %v1267_v7 = vld [vmem:[%s6390_s6 + $0x10e0] sm:$0xff] }
  0x97   : > { %v1269_v8 = vld [vmem:[%s6390_s6 + $0x1100] sm:$0xff]  ;;  %1268 = vst [vmem:[%s6398_s7 + $0x438] sm:$0xff] %v1267_v7 }
  0x98   : > { %v1271_v9 = vld [vmem:[%s6390_s6 + $0x1120] sm:$0xff]  ;;  %1270 = vst [vmem:[%s6398_s7 + $0x440] sm:$0xff] %v1269_v8 }
  0x99   : > { %1272 = vst [vmem:[%s6398_s7 + $0x448] sm:$0xff] %v1271_v9  ;;  %v1273_v10 = vld [vmem:[%s6390_s6 + $0x1140] sm:$0xff] }
  0x9a   : > { %v1275_v11 = vld [vmem:[%s6390_s6 + $0x1160] sm:$0xff]  ;;  %1274 = vst [vmem:[%s6398_s7 + $0x450] sm:$0xff] %v1273_v10 }
  0x9b   : > { %v1277_v12 = vld [vmem:[%s6390_s6 + $0x1180] sm:$0xff]  ;;  %1276 = vst [vmem:[%s6398_s7 + $0x458] sm:$0xff] %v1275_v11 }
  0x9c   : > { %1278 = vst [vmem:[%s6398_s7 + $0x460] sm:$0xff] %v1277_v12  ;;  %v1279_v13 = vld [vmem:[%s6390_s6 + $0x11a0] sm:$0xff] }
  0x9d   : > { %v1281_v14 = vld [vmem:[%s6390_s6 + $0x11c0] sm:$0xff]  ;;  %1280 = vst [vmem:[%s6398_s7 + $0x468] sm:$0xff] %v1279_v13 }
  0x9e   : > { %v1283_v15 = vld [vmem:[%s6390_s6 + $0x11e0] sm:$0xff]  ;;  %1282 = vst [vmem:[%s6398_s7 + $0x470] sm:$0xff] %v1281_v14 }
  0x9f   : > { %1284 = vst [vmem:[%s6398_s7 + $0x478] sm:$0xff] %v1283_v15  ;;  %v1285_v16 = vld [vmem:[%s6390_s6 + $0x1200] sm:$0xff] }
  0xa0   : > { %v1287_v17 = vld [vmem:[%s6390_s6 + $0x1220] sm:$0xff]  ;;  %1286 = vst [vmem:[%s6398_s7 + $0x480] sm:$0xff] %v1285_v16 }
  0xa1   : > { %v1289_v18 = vld [vmem:[%s6390_s6 + $0x1240] sm:$0xff]  ;;  %1288 = vst [vmem:[%s6398_s7 + $0x488] sm:$0xff] %v1287_v17 }
  0xa2   : > { %1290 = vst [vmem:[%s6398_s7 + $0x490] sm:$0xff] %v1289_v18  ;;  %v1291_v19 = vld [vmem:[%s6390_s6 + $0x1260] sm:$0xff] }
  0xa3   : > { %v1293_v20 = vld [vmem:[%s6390_s6 + $0x1280] sm:$0xff]  ;;  %1292 = vst [vmem:[%s6398_s7 + $0x498] sm:$0xff] %v1291_v19 }
  0xa4   : > { %v1295_v21 = vld [vmem:[%s6390_s6 + $0x12a0] sm:$0xff]  ;;  %1294 = vst [vmem:[%s6398_s7 + $0x4a0] sm:$0xff] %v1293_v20 }
  0xa5   : > { %1296 = vst [vmem:[%s6398_s7 + $0x4a8] sm:$0xff] %v1295_v21  ;;  %v1297_v22 = vld [vmem:[%s6390_s6 + $0x12c0] sm:$0xff] }
  0xa6   : > { %v1299_v23 = vld [vmem:[%s6390_s6 + $0x12e0] sm:$0xff]  ;;  %1298 = vst [vmem:[%s6398_s7 + $0x4b0] sm:$0xff] %v1297_v22 }
  0xa7   : > { %v1301_v24 = vld [vmem:[%s6390_s6 + $0x1300] sm:$0xff]  ;;  %1300 = vst [vmem:[%s6398_s7 + $0x4b8] sm:$0xff] %v1299_v23 }
  0xa8   : > { %1302 = vst [vmem:[%s6398_s7 + $0x4c0] sm:$0xff] %v1301_v24  ;;  %v1303_v25 = vld [vmem:[%s6390_s6 + $0x1320] sm:$0xff] }
  0xa9   : > { %v1305_v26 = vld [vmem:[%s6390_s6 + $0x1340] sm:$0xff]  ;;  %1304 = vst [vmem:[%s6398_s7 + $0x4c8] sm:$0xff] %v1303_v25 }
  0xaa   : > { %v1307_v27 = vld [vmem:[%s6390_s6 + $0x1360] sm:$0xff]  ;;  %1306 = vst [vmem:[%s6398_s7 + $0x4d0] sm:$0xff] %v1305_v26 }
  0xab   : > { %1308 = vst [vmem:[%s6398_s7 + $0x4d8] sm:$0xff] %v1307_v27  ;;  %v1309_v28 = vld [vmem:[%s6390_s6 + $0x1380] sm:$0xff] }
  0xac   : > { %v1311_v29 = vld [vmem:[%s6390_s6 + $0x13a0] sm:$0xff]  ;;  %1310 = vst [vmem:[%s6398_s7 + $0x4e0] sm:$0xff] %v1309_v28 }
  0xad   : > { %v1313_v30 = vld [vmem:[%s6390_s6 + $0x13c0] sm:$0xff]  ;;  %1312 = vst [vmem:[%s6398_s7 + $0x4e8] sm:$0xff] %v1311_v29 }
  0xae   : > { %1314 = vst [vmem:[%s6398_s7 + $0x4f0] sm:$0xff] %v1313_v30  ;;  %v1315_v31 = vld [vmem:[%s6390_s6 + $0x13e0] sm:$0xff] }
  0xaf   : > { %v1317_v32 = vld [vmem:[%s6390_s6 + $0x1400] sm:$0xff]  ;;  %1316 = vst [vmem:[%s6398_s7 + $0x4f8] sm:$0xff] %v1315_v31 }
  0xb0   : > { %v1319_v33 = vld [vmem:[%s6390_s6 + $0x1420] sm:$0xff]  ;;  %1318 = vst [vmem:[%s6398_s7 + $0x500] sm:$0xff] %v1317_v32 }
  0xb1   : > { %1320 = vst [vmem:[%s6398_s7 + $0x508] sm:$0xff] %v1319_v33  ;;  %v1321_v34 = vld [vmem:[%s6390_s6 + $0x1440] sm:$0xff] }
  0xb2   : > { %v1323_v35 = vld [vmem:[%s6390_s6 + $0x1460] sm:$0xff]  ;;  %1322 = vst [vmem:[%s6398_s7 + $0x510] sm:$0xff] %v1321_v34 }
  0xb3   : > { %v1325_v36 = vld [vmem:[%s6390_s6 + $0x1480] sm:$0xff]  ;;  %1324 = vst [vmem:[%s6398_s7 + $0x518] sm:$0xff] %v1323_v35 }
  0xb4   : > { %1326 = vst [vmem:[%s6398_s7 + $0x520] sm:$0xff] %v1325_v36  ;;  %v1327_v37 = vld [vmem:[%s6390_s6 + $0x14a0] sm:$0xff] }
  0xb5   : > { %v1329_v38 = vld [vmem:[%s6390_s6 + $0x14c0] sm:$0xff]  ;;  %1328 = vst [vmem:[%s6398_s7 + $0x528] sm:$0xff] %v1327_v37 }
  0xb6   : > { %v1331_v39 = vld [vmem:[%s6390_s6 + $0x14e0] sm:$0xff]  ;;  %1330 = vst [vmem:[%s6398_s7 + $0x530] sm:$0xff] %v1329_v38 }
  0xb7   : > { %1332 = vst [vmem:[%s6398_s7 + $0x538] sm:$0xff] %v1331_v39  ;;  %v1333_v40 = vld [vmem:[%s6390_s6 + $0x1500] sm:$0xff] }
  0xb8   : > { %v1335_v41 = vld [vmem:[%s6390_s6 + $0x1520] sm:$0xff]  ;;  %1334 = vst [vmem:[%s6398_s7 + $0x540] sm:$0xff] %v1333_v40 }
  0xb9   : > { %v1337_v42 = vld [vmem:[%s6390_s6 + $0x1540] sm:$0xff]  ;;  %1336 = vst [vmem:[%s6398_s7 + $0x548] sm:$0xff] %v1335_v41 }
  0xba   : > { %1338 = vst [vmem:[%s6398_s7 + $0x550] sm:$0xff] %v1337_v42  ;;  %v1339_v43 = vld [vmem:[%s6390_s6 + $0x1560] sm:$0xff] }
  0xbb   : > { %v1341_v44 = vld [vmem:[%s6390_s6 + $0x1580] sm:$0xff]  ;;  %1340 = vst [vmem:[%s6398_s7 + $0x558] sm:$0xff] %v1339_v43 }
  0xbc   : > { %v1343_v45 = vld [vmem:[%s6390_s6 + $0x15a0] sm:$0xff]  ;;  %1342 = vst [vmem:[%s6398_s7 + $0x560] sm:$0xff] %v1341_v44 }
  0xbd   : > { %1344 = vst [vmem:[%s6398_s7 + $0x568] sm:$0xff] %v1343_v45  ;;  %v1345_v46 = vld [vmem:[%s6390_s6 + $0x15c0] sm:$0xff] }
  0xbe   : > { %v1347_v47 = vld [vmem:[%s6390_s6 + $0x15e0] sm:$0xff]  ;;  %1346 = vst [vmem:[%s6398_s7 + $0x570] sm:$0xff] %v1345_v46 }
  0xbf   : > { %v1349_v48 = vld [vmem:[%s6390_s6 + $0x1600] sm:$0xff]  ;;  %1348 = vst [vmem:[%s6398_s7 + $0x578] sm:$0xff] %v1347_v47 }
  0xc0   : > { %1350 = vst [vmem:[%s6398_s7 + $0x580] sm:$0xff] %v1349_v48  ;;  %v1351_v49 = vld [vmem:[%s6390_s6 + $0x1620] sm:$0xff] }
  0xc1   : > { %v1353_v50 = vld [vmem:[%s6390_s6 + $0x1640] sm:$0xff]  ;;  %1352 = vst [vmem:[%s6398_s7 + $0x588] sm:$0xff] %v1351_v49 }
  0xc2   : > { %v1355_v51 = vld [vmem:[%s6390_s6 + $0x1660] sm:$0xff]  ;;  %1354 = vst [vmem:[%s6398_s7 + $0x590] sm:$0xff] %v1353_v50 }
  0xc3   : > { %1356 = vst [vmem:[%s6398_s7 + $0x598] sm:$0xff] %v1355_v51  ;;  %v1357_v52 = vld [vmem:[%s6390_s6 + $0x1680] sm:$0xff] }
  0xc4   : > { %v1359_v53 = vld [vmem:[%s6390_s6 + $0x16a0] sm:$0xff]  ;;  %1358 = vst [vmem:[%s6398_s7 + $0x5a0] sm:$0xff] %v1357_v52 }
  0xc5   : > { %v1361_v54 = vld [vmem:[%s6390_s6 + $0x16c0] sm:$0xff]  ;;  %1360 = vst [vmem:[%s6398_s7 + $0x5a8] sm:$0xff] %v1359_v53 }
  0xc6   : > { %1362 = vst [vmem:[%s6398_s7 + $0x5b0] sm:$0xff] %v1361_v54  ;;  %v1363_v55 = vld [vmem:[%s6390_s6 + $0x16e0] sm:$0xff] }
  0xc7   : > { %v1365_v56 = vld [vmem:[%s6390_s6 + $0x1700] sm:$0xff]  ;;  %1364 = vst [vmem:[%s6398_s7 + $0x5b8] sm:$0xff] %v1363_v55 }
  0xc8   : > { %v1367_v57 = vld [vmem:[%s6390_s6 + $0x1720] sm:$0xff]  ;;  %1366 = vst [vmem:[%s6398_s7 + $0x5c0] sm:$0xff] %v1365_v56 }
  0xc9   : > { %1368 = vst [vmem:[%s6398_s7 + $0x5c8] sm:$0xff] %v1367_v57  ;;  %v1369_v58 = vld [vmem:[%s6390_s6 + $0x1740] sm:$0xff] }
  0xca   : > { %v1371_v59 = vld [vmem:[%s6390_s6 + $0x1760] sm:$0xff]  ;;  %1370 = vst [vmem:[%s6398_s7 + $0x5d0] sm:$0xff] %v1369_v58 }
  0xcb   : > { %v1373_v60 = vld [vmem:[%s6390_s6 + $0x1780] sm:$0xff]  ;;  %1372 = vst [vmem:[%s6398_s7 + $0x5d8] sm:$0xff] %v1371_v59 }
  0xcc   : > { %1374 = vst [vmem:[%s6398_s7 + $0x5e0] sm:$0xff] %v1373_v60  ;;  %v1375_v61 = vld [vmem:[%s6390_s6 + $0x17a0] sm:$0xff] }
  0xcd   : > { %v1377_v62 = vld [vmem:[%s6390_s6 + $0x17c0] sm:$0xff]  ;;  %1376 = vst [vmem:[%s6398_s7 + $0x5e8] sm:$0xff] %v1375_v61 }
  0xce   : > { %v1379_v63 = vld [vmem:[%s6390_s6 + $0x17e0] sm:$0xff]  ;;  %1378 = vst [vmem:[%s6398_s7 + $0x5f0] sm:$0xff] %v1377_v62 }
  0xcf   : > { %1380 = vst [vmem:[%s6398_s7 + $0x5f8] sm:$0xff] %v1379_v63  ;;  %v1381_v0 = vld [vmem:[%s6390_s6 + $0x1800] sm:$0xff] }
  0xd0   : > { %v1383_v1 = vld [vmem:[%s6390_s6 + $0x1820] sm:$0xff]  ;;  %1382 = vst [vmem:[%s6398_s7 + $0x600] sm:$0xff] %v1381_v0 }
  0xd1   : > { %v1385_v2 = vld [vmem:[%s6390_s6 + $0x1840] sm:$0xff]  ;;  %1384 = vst [vmem:[%s6398_s7 + $0x608] sm:$0xff] %v1383_v1 }
  0xd2   : > { %1386 = vst [vmem:[%s6398_s7 + $0x610] sm:$0xff] %v1385_v2  ;;  %v1387_v3 = vld [vmem:[%s6390_s6 + $0x1860] sm:$0xff] }
  0xd3   : > { %v1389_v4 = vld [vmem:[%s6390_s6 + $0x1880] sm:$0xff]  ;;  %1388 = vst [vmem:[%s6398_s7 + $0x618] sm:$0xff] %v1387_v3 }
  0xd4   : > { %v1391_v5 = vld [vmem:[%s6390_s6 + $0x18a0] sm:$0xff]  ;;  %1390 = vst [vmem:[%s6398_s7 + $0x620] sm:$0xff] %v1389_v4 }
  0xd5   : > { %1392 = vst [vmem:[%s6398_s7 + $0x628] sm:$0xff] %v1391_v5  ;;  %v1393_v6 = vld [vmem:[%s6390_s6 + $0x18c0] sm:$0xff] }
  0xd6   : > { %v1395_v7 = vld [vmem:[%s6390_s6 + $0x18e0] sm:$0xff]  ;;  %1394 = vst [vmem:[%s6398_s7 + $0x630] sm:$0xff] %v1393_v6 }
  0xd7   : > { %v1397_v8 = vld [vmem:[%s6390_s6 + $0x1900] sm:$0xff]  ;;  %1396 = vst [vmem:[%s6398_s7 + $0x638] sm:$0xff] %v1395_v7 }
  0xd8   : > { %1398 = vst [vmem:[%s6398_s7 + $0x640] sm:$0xff] %v1397_v8  ;;  %v1399_v9 = vld [vmem:[%s6390_s6 + $0x1920] sm:$0xff] }
  0xd9   : > { %v1401_v10 = vld [vmem:[%s6390_s6 + $0x1940] sm:$0xff]  ;;  %1400 = vst [vmem:[%s6398_s7 + $0x648] sm:$0xff] %v1399_v9 }
  0xda   : > { %v1403_v11 = vld [vmem:[%s6390_s6 + $0x1960] sm:$0xff]  ;;  %1402 = vst [vmem:[%s6398_s7 + $0x650] sm:$0xff] %v1401_v10 }
  0xdb   : > { %1404 = vst [vmem:[%s6398_s7 + $0x658] sm:$0xff] %v1403_v11  ;;  %v1405_v12 = vld [vmem:[%s6390_s6 + $0x1980] sm:$0xff] }
  0xdc   : > { %v1407_v13 = vld [vmem:[%s6390_s6 + $0x19a0] sm:$0xff]  ;;  %1406 = vst [vmem:[%s6398_s7 + $0x660] sm:$0xff] %v1405_v12 }
  0xdd   : > { %v1409_v14 = vld [vmem:[%s6390_s6 + $0x19c0] sm:$0xff]  ;;  %1408 = vst [vmem:[%s6398_s7 + $0x668] sm:$0xff] %v1407_v13 }
  0xde   : > { %1410 = vst [vmem:[%s6398_s7 + $0x670] sm:$0xff] %v1409_v14  ;;  %v1411_v15 = vld [vmem:[%s6390_s6 + $0x19e0] sm:$0xff] }
  0xdf   : > { %v1413_v16 = vld [vmem:[%s6390_s6 + $0x1a00] sm:$0xff]  ;;  %1412 = vst [vmem:[%s6398_s7 + $0x678] sm:$0xff] %v1411_v15 }
  0xe0   : > { %v1415_v17 = vld [vmem:[%s6390_s6 + $0x1a20] sm:$0xff]  ;;  %1414 = vst [vmem:[%s6398_s7 + $0x680] sm:$0xff] %v1413_v16 }
  0xe1   : > { %1416 = vst [vmem:[%s6398_s7 + $0x688] sm:$0xff] %v1415_v17  ;;  %v1417_v18 = vld [vmem:[%s6390_s6 + $0x1a40] sm:$0xff] }
  0xe2   : > { %v1419_v19 = vld [vmem:[%s6390_s6 + $0x1a60] sm:$0xff]  ;;  %1418 = vst [vmem:[%s6398_s7 + $0x690] sm:$0xff] %v1417_v18 }
  0xe3   : > { %v1421_v20 = vld [vmem:[%s6390_s6 + $0x1a80] sm:$0xff]  ;;  %1420 = vst [vmem:[%s6398_s7 + $0x698] sm:$0xff] %v1419_v19 }
  0xe4   : > { %1422 = vst [vmem:[%s6398_s7 + $0x6a0] sm:$0xff] %v1421_v20  ;;  %v1423_v21 = vld [vmem:[%s6390_s6 + $0x1aa0] sm:$0xff] }
  0xe5   : > { %v1425_v22 = vld [vmem:[%s6390_s6 + $0x1ac0] sm:$0xff]  ;;  %1424 = vst [vmem:[%s6398_s7 + $0x6a8] sm:$0xff] %v1423_v21 }
  0xe6   : > { %v1427_v23 = vld [vmem:[%s6390_s6 + $0x1ae0] sm:$0xff]  ;;  %1426 = vst [vmem:[%s6398_s7 + $0x6b0] sm:$0xff] %v1425_v22 }
  0xe7   : > { %1428 = vst [vmem:[%s6398_s7 + $0x6b8] sm:$0xff] %v1427_v23  ;;  %v1429_v24 = vld [vmem:[%s6390_s6 + $0x1b00] sm:$0xff] }
  0xe8   : > { %v1431_v25 = vld [vmem:[%s6390_s6 + $0x1b20] sm:$0xff]  ;;  %1430 = vst [vmem:[%s6398_s7 + $0x6c0] sm:$0xff] %v1429_v24 }
  0xe9   : > { %v1433_v26 = vld [vmem:[%s6390_s6 + $0x1b40] sm:$0xff]  ;;  %1432 = vst [vmem:[%s6398_s7 + $0x6c8] sm:$0xff] %v1431_v25 }
  0xea   : > { %1434 = vst [vmem:[%s6398_s7 + $0x6d0] sm:$0xff] %v1433_v26  ;;  %v1435_v27 = vld [vmem:[%s6390_s6 + $0x1b60] sm:$0xff] }
  0xeb   : > { %v1437_v28 = vld [vmem:[%s6390_s6 + $0x1b80] sm:$0xff]  ;;  %1436 = vst [vmem:[%s6398_s7 + $0x6d8] sm:$0xff] %v1435_v27 }
  0xec   : > { %v1439_v29 = vld [vmem:[%s6390_s6 + $0x1ba0] sm:$0xff]  ;;  %1438 = vst [vmem:[%s6398_s7 + $0x6e0] sm:$0xff] %v1437_v28 }
  0xed   : > { %1440 = vst [vmem:[%s6398_s7 + $0x6e8] sm:$0xff] %v1439_v29  ;;  %v1441_v30 = vld [vmem:[%s6390_s6 + $0x1bc0] sm:$0xff] }
  0xee   : > { %v1443_v31 = vld [vmem:[%s6390_s6 + $0x1be0] sm:$0xff]  ;;  %1442 = vst [vmem:[%s6398_s7 + $0x6f0] sm:$0xff] %v1441_v30 }
  0xef   : > { %v1445_v32 = vld [vmem:[%s6390_s6 + $0x1c00] sm:$0xff]  ;;  %1444 = vst [vmem:[%s6398_s7 + $0x6f8] sm:$0xff] %v1443_v31 }
  0xf0   : > { %1446 = vst [vmem:[%s6398_s7 + $0x700] sm:$0xff] %v1445_v32  ;;  %v1447_v33 = vld [vmem:[%s6390_s6 + $0x1c20] sm:$0xff] }
  0xf1   : > { %v1449_v34 = vld [vmem:[%s6390_s6 + $0x1c40] sm:$0xff]  ;;  %1448 = vst [vmem:[%s6398_s7 + $0x708] sm:$0xff] %v1447_v33 }
  0xf2   : > { %v1451_v35 = vld [vmem:[%s6390_s6 + $0x1c60] sm:$0xff]  ;;  %1450 = vst [vmem:[%s6398_s7 + $0x710] sm:$0xff] %v1449_v34 }
  0xf3   : > { %1452 = vst [vmem:[%s6398_s7 + $0x718] sm:$0xff] %v1451_v35  ;;  %v1453_v36 = vld [vmem:[%s6390_s6 + $0x1c80] sm:$0xff] }
  0xf4   : > { %v1455_v37 = vld [vmem:[%s6390_s6 + $0x1ca0] sm:$0xff]  ;;  %1454 = vst [vmem:[%s6398_s7 + $0x720] sm:$0xff] %v1453_v36 }
  0xf5   : > { %v1457_v38 = vld [vmem:[%s6390_s6 + $0x1cc0] sm:$0xff]  ;;  %1456 = vst [vmem:[%s6398_s7 + $0x728] sm:$0xff] %v1455_v37 }
  0xf6   : > { %1458 = vst [vmem:[%s6398_s7 + $0x730] sm:$0xff] %v1457_v38  ;;  %v1459_v39 = vld [vmem:[%s6390_s6 + $0x1ce0] sm:$0xff] }
  0xf7   : > { %v1461_v40 = vld [vmem:[%s6390_s6 + $0x1d00] sm:$0xff]  ;;  %1460 = vst [vmem:[%s6398_s7 + $0x738] sm:$0xff] %v1459_v39 }
  0xf8   : > { %v1463_v41 = vld [vmem:[%s6390_s6 + $0x1d20] sm:$0xff]  ;;  %1462 = vst [vmem:[%s6398_s7 + $0x740] sm:$0xff] %v1461_v40 }
  0xf9   : > { %1464 = vst [vmem:[%s6398_s7 + $0x748] sm:$0xff] %v1463_v41  ;;  %v1465_v42 = vld [vmem:[%s6390_s6 + $0x1d40] sm:$0xff] }
  0xfa   : > { %v1467_v43 = vld [vmem:[%s6390_s6 + $0x1d60] sm:$0xff]  ;;  %1466 = vst [vmem:[%s6398_s7 + $0x750] sm:$0xff] %v1465_v42 }
  0xfb   : > { %v1469_v44 = vld [vmem:[%s6390_s6 + $0x1d80] sm:$0xff]  ;;  %1468 = vst [vmem:[%s6398_s7 + $0x758] sm:$0xff] %v1467_v43 }
  0xfc   : > { %1470 = vst [vmem:[%s6398_s7 + $0x760] sm:$0xff] %v1469_v44  ;;  %v1471_v45 = vld [vmem:[%s6390_s6 + $0x1da0] sm:$0xff] }
  0xfd   : > { %v1473_v46 = vld [vmem:[%s6390_s6 + $0x1dc0] sm:$0xff]  ;;  %1472 = vst [vmem:[%s6398_s7 + $0x768] sm:$0xff] %v1471_v45 }
  0xfe   : > { %v1475_v47 = vld [vmem:[%s6390_s6 + $0x1de0] sm:$0xff]  ;;  %1474 = vst [vmem:[%s6398_s7 + $0x770] sm:$0xff] %v1473_v46 }
  0xff   : > { %1476 = vst [vmem:[%s6398_s7 + $0x778] sm:$0xff] %v1475_v47  ;;  %v1477_v48 = vld [vmem:[%s6390_s6 + $0x1e00] sm:$0xff] }
 0x100   : > { %v1479_v49 = vld [vmem:[%s6390_s6 + $0x1e20] sm:$0xff]  ;;  %1478 = vst [vmem:[%s6398_s7 + $0x780] sm:$0xff] %v1477_v48 }
 0x101   : > { %v1481_v50 = vld [vmem:[%s6390_s6 + $0x1e40] sm:$0xff]  ;;  %1480 = vst [vmem:[%s6398_s7 + $0x788] sm:$0xff] %v1479_v49 }
 0x102   : > { %1482 = vst [vmem:[%s6398_s7 + $0x790] sm:$0xff] %v1481_v50  ;;  %v1483_v51 = vld [vmem:[%s6390_s6 + $0x1e60] sm:$0xff] }
 0x103   : > { %v1485_v52 = vld [vmem:[%s6390_s6 + $0x1e80] sm:$0xff]  ;;  %1484 = vst [vmem:[%s6398_s7 + $0x798] sm:$0xff] %v1483_v51 }
 0x104   : > { %v1487_v53 = vld [vmem:[%s6390_s6 + $0x1ea0] sm:$0xff]  ;;  %1486 = vst [vmem:[%s6398_s7 + $0x7a0] sm:$0xff] %v1485_v52 }
 0x105   : > { %1488 = vst [vmem:[%s6398_s7 + $0x7a8] sm:$0xff] %v1487_v53  ;;  %v1489_v54 = vld [vmem:[%s6390_s6 + $0x1ec0] sm:$0xff] }
 0x106   : > { %v1491_v55 = vld [vmem:[%s6390_s6 + $0x1ee0] sm:$0xff]  ;;  %1490 = vst [vmem:[%s6398_s7 + $0x7b0] sm:$0xff] %v1489_v54 }
 0x107   : > { %v1493_v56 = vld [vmem:[%s6390_s6 + $0x1f00] sm:$0xff]  ;;  %1492 = vst [vmem:[%s6398_s7 + $0x7b8] sm:$0xff] %v1491_v55 }
 0x108   : > { %1494 = vst [vmem:[%s6398_s7 + $0x7c0] sm:$0xff] %v1493_v56  ;;  %v1495_v57 = vld [vmem:[%s6390_s6 + $0x1f20] sm:$0xff] }
 0x109   : > { %v1497_v58 = vld [vmem:[%s6390_s6 + $0x1f40] sm:$0xff]  ;;  %1496 = vst [vmem:[%s6398_s7 + $0x7c8] sm:$0xff] %v1495_v57 }
 0x10a   : > { %v1499_v59 = vld [vmem:[%s6390_s6 + $0x1f60] sm:$0xff]  ;;  %1498 = vst [vmem:[%s6398_s7 + $0x7d0] sm:$0xff] %v1497_v58 }
 0x10b   : > { %1500 = vst [vmem:[%s6398_s7 + $0x7d8] sm:$0xff] %v1499_v59  ;;  %v1501_v60 = vld [vmem:[%s6390_s6 + $0x1f80] sm:$0xff] }
 0x10c   : > { %v1503_v61 = vld [vmem:[%s6390_s6 + $0x1fa0] sm:$0xff]  ;;  %1502 = vst [vmem:[%s6398_s7 + $0x7e0] sm:$0xff] %v1501_v60 }
 0x10d   : > { %v1505_v62 = vld [vmem:[%s6390_s6 + $0x1fc0] sm:$0xff]  ;;  %1504 = vst [vmem:[%s6398_s7 + $0x7e8] sm:$0xff] %v1503_v61 }
 0x10e   : > { %1506 = vst [vmem:[%s6398_s7 + $0x7f0] sm:$0xff] %v1505_v62  ;;  %v1507_v63 = vld [vmem:[%s6390_s6 + $0x1fe0] sm:$0xff] }
 0x10f   : > { %v1509_v0 = vld [vmem:[%s6390_s6 + $0x2000] sm:$0xff]  ;;  %1508 = vst [vmem:[%s6398_s7 + $0x7f8] sm:$0xff] %v1507_v63 }
 0x110   : > { %v1511_v1 = vld [vmem:[%s6390_s6 + $0x2020] sm:$0xff]  ;;  %1510 = vst [vmem:[%s6398_s7 + $0x800] sm:$0xff] %v1509_v0 }
 0x111   : > { %1512 = vst [vmem:[%s6398_s7 + $0x808] sm:$0xff] %v1511_v1  ;;  %v1513_v2 = vld [vmem:[%s6390_s6 + $0x2040] sm:$0xff] }
 0x112   : > { %v1515_v3 = vld [vmem:[%s6390_s6 + $0x2060] sm:$0xff]  ;;  %1514 = vst [vmem:[%s6398_s7 + $0x810] sm:$0xff] %v1513_v2 }
 0x113   : > { %v1517_v4 = vld [vmem:[%s6390_s6 + $0x2080] sm:$0xff]  ;;  %1516 = vst [vmem:[%s6398_s7 + $0x818] sm:$0xff] %v1515_v3 }
 0x114   : > { %1518 = vst [vmem:[%s6398_s7 + $0x820] sm:$0xff] %v1517_v4  ;;  %v1519_v5 = vld [vmem:[%s6390_s6 + $0x20a0] sm:$0xff] }
 0x115   : > { %v1521_v6 = vld [vmem:[%s6390_s6 + $0x20c0] sm:$0xff]  ;;  %1520 = vst [vmem:[%s6398_s7 + $0x828] sm:$0xff] %v1519_v5 }
 0x116   : > { %v1523_v7 = vld [vmem:[%s6390_s6 + $0x20e0] sm:$0xff]  ;;  %1522 = vst [vmem:[%s6398_s7 + $0x830] sm:$0xff] %v1521_v6 }
 0x117   : > { %1524 = vst [vmem:[%s6398_s7 + $0x838] sm:$0xff] %v1523_v7  ;;  %v1525_v8 = vld [vmem:[%s6390_s6 + $0x2100] sm:$0xff] }
 0x118   : > { %v1527_v9 = vld [vmem:[%s6390_s6 + $0x2120] sm:$0xff]  ;;  %1526 = vst [vmem:[%s6398_s7 + $0x840] sm:$0xff] %v1525_v8 }
 0x119   : > { %v1529_v10 = vld [vmem:[%s6390_s6 + $0x2140] sm:$0xff]  ;;  %1528 = vst [vmem:[%s6398_s7 + $0x848] sm:$0xff] %v1527_v9 }
 0x11a   : > { %1530 = vst [vmem:[%s6398_s7 + $0x850] sm:$0xff] %v1529_v10  ;;  %v1531_v11 = vld [vmem:[%s6390_s6 + $0x2160] sm:$0xff] }
 0x11b   : > { %v1533_v12 = vld [vmem:[%s6390_s6 + $0x2180] sm:$0xff]  ;;  %1532 = vst [vmem:[%s6398_s7 + $0x858] sm:$0xff] %v1531_v11 }
 0x11c   : > { %v1535_v13 = vld [vmem:[%s6390_s6 + $0x21a0] sm:$0xff]  ;;  %1534 = vst [vmem:[%s6398_s7 + $0x860] sm:$0xff] %v1533_v12 }
 0x11d   : > { %1536 = vst [vmem:[%s6398_s7 + $0x868] sm:$0xff] %v1535_v13  ;;  %v1537_v14 = vld [vmem:[%s6390_s6 + $0x21c0] sm:$0xff] }
 0x11e   : > { %v1539_v15 = vld [vmem:[%s6390_s6 + $0x21e0] sm:$0xff]  ;;  %1538 = vst [vmem:[%s6398_s7 + $0x870] sm:$0xff] %v1537_v14 }
 0x11f   : > { %v1541_v16 = vld [vmem:[%s6390_s6 + $0x2200] sm:$0xff]  ;;  %1540 = vst [vmem:[%s6398_s7 + $0x878] sm:$0xff] %v1539_v15 }
 0x120   : > { %1542 = vst [vmem:[%s6398_s7 + $0x880] sm:$0xff] %v1541_v16  ;;  %v1543_v17 = vld [vmem:[%s6390_s6 + $0x2220] sm:$0xff] }
 0x121   : > { %v1545_v18 = vld [vmem:[%s6390_s6 + $0x2240] sm:$0xff]  ;;  %1544 = vst [vmem:[%s6398_s7 + $0x888] sm:$0xff] %v1543_v17 }
 0x122   : > { %v1547_v19 = vld [vmem:[%s6390_s6 + $0x2260] sm:$0xff]  ;;  %1546 = vst [vmem:[%s6398_s7 + $0x890] sm:$0xff] %v1545_v18 }
 0x123   : > { %1548 = vst [vmem:[%s6398_s7 + $0x898] sm:$0xff] %v1547_v19  ;;  %v1549_v20 = vld [vmem:[%s6390_s6 + $0x2280] sm:$0xff] }
 0x124   : > { %v1551_v21 = vld [vmem:[%s6390_s6 + $0x22a0] sm:$0xff]  ;;  %1550 = vst [vmem:[%s6398_s7 + $0x8a0] sm:$0xff] %v1549_v20 }
 0x125   : > { %v1553_v22 = vld [vmem:[%s6390_s6 + $0x22c0] sm:$0xff]  ;;  %1552 = vst [vmem:[%s6398_s7 + $0x8a8] sm:$0xff] %v1551_v21 }
 0x126   : > { %1554 = vst [vmem:[%s6398_s7 + $0x8b0] sm:$0xff] %v1553_v22  ;;  %v1555_v23 = vld [vmem:[%s6390_s6 + $0x22e0] sm:$0xff] }
 0x127   : > { %v1557_v24 = vld [vmem:[%s6390_s6 + $0x2300] sm:$0xff]  ;;  %1556 = vst [vmem:[%s6398_s7 + $0x8b8] sm:$0xff] %v1555_v23 }
 0x128   : > { %v1559_v25 = vld [vmem:[%s6390_s6 + $0x2320] sm:$0xff]  ;;  %1558 = vst [vmem:[%s6398_s7 + $0x8c0] sm:$0xff] %v1557_v24 }
 0x129   : > { %1560 = vst [vmem:[%s6398_s7 + $0x8c8] sm:$0xff] %v1559_v25  ;;  %v1561_v26 = vld [vmem:[%s6390_s6 + $0x2340] sm:$0xff] }
 0x12a   : > { %v1563_v27 = vld [vmem:[%s6390_s6 + $0x2360] sm:$0xff]  ;;  %1562 = vst [vmem:[%s6398_s7 + $0x8d0] sm:$0xff] %v1561_v26 }
 0x12b   : > { %v1565_v28 = vld [vmem:[%s6390_s6 + $0x2380] sm:$0xff]  ;;  %1564 = vst [vmem:[%s6398_s7 + $0x8d8] sm:$0xff] %v1563_v27 }
 0x12c   : > { %1566 = vst [vmem:[%s6398_s7 + $0x8e0] sm:$0xff] %v1565_v28  ;;  %v1567_v29 = vld [vmem:[%s6390_s6 + $0x23a0] sm:$0xff] }
 0x12d   : > { %v1569_v30 = vld [vmem:[%s6390_s6 + $0x23c0] sm:$0xff]  ;;  %1568 = vst [vmem:[%s6398_s7 + $0x8e8] sm:$0xff] %v1567_v29 }
 0x12e   : > { %v1571_v31 = vld [vmem:[%s6390_s6 + $0x23e0] sm:$0xff]  ;;  %1570 = vst [vmem:[%s6398_s7 + $0x8f0] sm:$0xff] %v1569_v30 }
 0x12f   : > { %1572 = vst [vmem:[%s6398_s7 + $0x8f8] sm:$0xff] %v1571_v31  ;;  %v1573_v32 = vld [vmem:[%s6390_s6 + $0x2400] sm:$0xff] }
 0x130   : > { %v1575_v33 = vld [vmem:[%s6390_s6 + $0x2420] sm:$0xff]  ;;  %1574 = vst [vmem:[%s6398_s7 + $0x900] sm:$0xff] %v1573_v32 }
 0x131   : > { %v1577_v34 = vld [vmem:[%s6390_s6 + $0x2440] sm:$0xff]  ;;  %1576 = vst [vmem:[%s6398_s7 + $0x908] sm:$0xff] %v1575_v33 }
 0x132   : > { %1578 = vst [vmem:[%s6398_s7 + $0x910] sm:$0xff] %v1577_v34  ;;  %v1579_v35 = vld [vmem:[%s6390_s6 + $0x2460] sm:$0xff] }
 0x133   : > { %v1581_v36 = vld [vmem:[%s6390_s6 + $0x2480] sm:$0xff]  ;;  %1580 = vst [vmem:[%s6398_s7 + $0x918] sm:$0xff] %v1579_v35 }
 0x134   : > { %v1583_v37 = vld [vmem:[%s6390_s6 + $0x24a0] sm:$0xff]  ;;  %1582 = vst [vmem:[%s6398_s7 + $0x920] sm:$0xff] %v1581_v36 }
 0x135   : > { %1584 = vst [vmem:[%s6398_s7 + $0x928] sm:$0xff] %v1583_v37  ;;  %v1585_v38 = vld [vmem:[%s6390_s6 + $0x24c0] sm:$0xff] }
 0x136   : > { %v1587_v39 = vld [vmem:[%s6390_s6 + $0x24e0] sm:$0xff]  ;;  %1586 = vst [vmem:[%s6398_s7 + $0x930] sm:$0xff] %v1585_v38 }
 0x137   : > { %v1589_v40 = vld [vmem:[%s6390_s6 + $0x2500] sm:$0xff]  ;;  %1588 = vst [vmem:[%s6398_s7 + $0x938] sm:$0xff] %v1587_v39 }
 0x138   : > { %1590 = vst [vmem:[%s6398_s7 + $0x940] sm:$0xff] %v1589_v40  ;;  %v1591_v41 = vld [vmem:[%s6390_s6 + $0x2520] sm:$0xff] }
 0x139   : > { %v1593_v42 = vld [vmem:[%s6390_s6 + $0x2540] sm:$0xff]  ;;  %1592 = vst [vmem:[%s6398_s7 + $0x948] sm:$0xff] %v1591_v41 }
 0x13a   : > { %v1595_v43 = vld [vmem:[%s6390_s6 + $0x2560] sm:$0xff]  ;;  %1594 = vst [vmem:[%s6398_s7 + $0x950] sm:$0xff] %v1593_v42 }
 0x13b   : > { %1596 = vst [vmem:[%s6398_s7 + $0x958] sm:$0xff] %v1595_v43  ;;  %v1597_v44 = vld [vmem:[%s6390_s6 + $0x2580] sm:$0xff] }
 0x13c   : > { %v1599_v45 = vld [vmem:[%s6390_s6 + $0x25a0] sm:$0xff]  ;;  %1598 = vst [vmem:[%s6398_s7 + $0x960] sm:$0xff] %v1597_v44 }
 0x13d   : > { %v1601_v46 = vld [vmem:[%s6390_s6 + $0x25c0] sm:$0xff]  ;;  %1600 = vst [vmem:[%s6398_s7 + $0x968] sm:$0xff] %v1599_v45 }
 0x13e   : > { %1602 = vst [vmem:[%s6398_s7 + $0x970] sm:$0xff] %v1601_v46  ;;  %v1603_v47 = vld [vmem:[%s6390_s6 + $0x25e0] sm:$0xff] }
 0x13f   : > { %v1605_v48 = vld [vmem:[%s6390_s6 + $0x2600] sm:$0xff]  ;;  %1604 = vst [vmem:[%s6398_s7 + $0x978] sm:$0xff] %v1603_v47 }
 0x140   : > { %v1607_v49 = vld [vmem:[%s6390_s6 + $0x2620] sm:$0xff]  ;;  %1606 = vst [vmem:[%s6398_s7 + $0x980] sm:$0xff] %v1605_v48 }
 0x141   : > { %1608 = vst [vmem:[%s6398_s7 + $0x988] sm:$0xff] %v1607_v49  ;;  %v1609_v50 = vld [vmem:[%s6390_s6 + $0x2640] sm:$0xff] }
 0x142   : > { %v1611_v51 = vld [vmem:[%s6390_s6 + $0x2660] sm:$0xff]  ;;  %1610 = vst [vmem:[%s6398_s7 + $0x990] sm:$0xff] %v1609_v50 }
 0x143   : > { %v1613_v52 = vld [vmem:[%s6390_s6 + $0x2680] sm:$0xff]  ;;  %1612 = vst [vmem:[%s6398_s7 + $0x998] sm:$0xff] %v1611_v51 }
 0x144   : > { %1614 = vst [vmem:[%s6398_s7 + $0x9a0] sm:$0xff] %v1613_v52  ;;  %v1615_v53 = vld [vmem:[%s6390_s6 + $0x26a0] sm:$0xff] }
 0x145   : > { %v1617_v54 = vld [vmem:[%s6390_s6 + $0x26c0] sm:$0xff]  ;;  %1616 = vst [vmem:[%s6398_s7 + $0x9a8] sm:$0xff] %v1615_v53 }
 0x146   : > { %v1619_v55 = vld [vmem:[%s6390_s6 + $0x26e0] sm:$0xff]  ;;  %1618 = vst [vmem:[%s6398_s7 + $0x9b0] sm:$0xff] %v1617_v54 }
 0x147   : > { %1620 = vst [vmem:[%s6398_s7 + $0x9b8] sm:$0xff] %v1619_v55  ;;  %v1621_v56 = vld [vmem:[%s6390_s6 + $0x2700] sm:$0xff] }
 0x148   : > { %v1623_v57 = vld [vmem:[%s6390_s6 + $0x2720] sm:$0xff]  ;;  %1622 = vst [vmem:[%s6398_s7 + $0x9c0] sm:$0xff] %v1621_v56 }
 0x149   : > { %v1625_v58 = vld [vmem:[%s6390_s6 + $0x2740] sm:$0xff]  ;;  %1624 = vst [vmem:[%s6398_s7 + $0x9c8] sm:$0xff] %v1623_v57 }
 0x14a   : > { %1626 = vst [vmem:[%s6398_s7 + $0x9d0] sm:$0xff] %v1625_v58  ;;  %v1627_v59 = vld [vmem:[%s6390_s6 + $0x2760] sm:$0xff] }
 0x14b   : > { %v1629_v60 = vld [vmem:[%s6390_s6 + $0x2780] sm:$0xff]  ;;  %1628 = vst [vmem:[%s6398_s7 + $0x9d8] sm:$0xff] %v1627_v59 }
 0x14c   : > { %v1631_v61 = vld [vmem:[%s6390_s6 + $0x27a0] sm:$0xff]  ;;  %1630 = vst [vmem:[%s6398_s7 + $0x9e0] sm:$0xff] %v1629_v60 }
 0x14d   : > { %1632 = vst [vmem:[%s6398_s7 + $0x9e8] sm:$0xff] %v1631_v61  ;;  %v1633_v62 = vld [vmem:[%s6390_s6 + $0x27c0] sm:$0xff] }
 0x14e   : > { %v1635_v63 = vld [vmem:[%s6390_s6 + $0x27e0] sm:$0xff]  ;;  %1634 = vst [vmem:[%s6398_s7 + $0x9f0] sm:$0xff] %v1633_v62 }
 0x14f   : > { %v1637_v0 = vld [vmem:[%s6390_s6 + $0x2800] sm:$0xff]  ;;  %1636 = vst [vmem:[%s6398_s7 + $0x9f8] sm:$0xff] %v1635_v63 }
 0x150   : > { %1638 = vst [vmem:[%s6398_s7 + $0xa00] sm:$0xff] %v1637_v0  ;;  %v1639_v1 = vld [vmem:[%s6390_s6 + $0x2820] sm:$0xff] }
 0x151   : > { %v1641_v2 = vld [vmem:[%s6390_s6 + $0x2840] sm:$0xff]  ;;  %1640 = vst [vmem:[%s6398_s7 + $0xa08] sm:$0xff] %v1639_v1 }
 0x152   : > { %v1643_v3 = vld [vmem:[%s6390_s6 + $0x2860] sm:$0xff]  ;;  %1642 = vst [vmem:[%s6398_s7 + $0xa10] sm:$0xff] %v1641_v2 }
 0x153   : > { %1644 = vst [vmem:[%s6398_s7 + $0xa18] sm:$0xff] %v1643_v3  ;;  %v1645_v4 = vld [vmem:[%s6390_s6 + $0x2880] sm:$0xff] }
 0x154   : > { %v1647_v5 = vld [vmem:[%s6390_s6 + $0x28a0] sm:$0xff]  ;;  %1646 = vst [vmem:[%s6398_s7 + $0xa20] sm:$0xff] %v1645_v4 }
 0x155   : > { %v1649_v6 = vld [vmem:[%s6390_s6 + $0x28c0] sm:$0xff]  ;;  %1648 = vst [vmem:[%s6398_s7 + $0xa28] sm:$0xff] %v1647_v5 }
 0x156   : > { %1650 = vst [vmem:[%s6398_s7 + $0xa30] sm:$0xff] %v1649_v6  ;;  %v1651_v7 = vld [vmem:[%s6390_s6 + $0x28e0] sm:$0xff] }
 0x157   : > { %v1653_v8 = vld [vmem:[%s6390_s6 + $0x2900] sm:$0xff]  ;;  %1652 = vst [vmem:[%s6398_s7 + $0xa38] sm:$0xff] %v1651_v7 }
 0x158   : > { %v1655_v9 = vld [vmem:[%s6390_s6 + $0x2920] sm:$0xff]  ;;  %1654 = vst [vmem:[%s6398_s7 + $0xa40] sm:$0xff] %v1653_v8 }
 0x159   : > { %1656 = vst [vmem:[%s6398_s7 + $0xa48] sm:$0xff] %v1655_v9  ;;  %v1657_v10 = vld [vmem:[%s6390_s6 + $0x2940] sm:$0xff] }
 0x15a   : > { %v1659_v11 = vld [vmem:[%s6390_s6 + $0x2960] sm:$0xff]  ;;  %1658 = vst [vmem:[%s6398_s7 + $0xa50] sm:$0xff] %v1657_v10 }
 0x15b   : > { %v1661_v12 = vld [vmem:[%s6390_s6 + $0x2980] sm:$0xff]  ;;  %1660 = vst [vmem:[%s6398_s7 + $0xa58] sm:$0xff] %v1659_v11 }
 0x15c   : > { %1662 = vst [vmem:[%s6398_s7 + $0xa60] sm:$0xff] %v1661_v12  ;;  %v1663_v13 = vld [vmem:[%s6390_s6 + $0x29a0] sm:$0xff] }
 0x15d   : > { %v1665_v14 = vld [vmem:[%s6390_s6 + $0x29c0] sm:$0xff]  ;;  %1664 = vst [vmem:[%s6398_s7 + $0xa68] sm:$0xff] %v1663_v13 }
 0x15e   : > { %v1667_v15 = vld [vmem:[%s6390_s6 + $0x29e0] sm:$0xff]  ;;  %1666 = vst [vmem:[%s6398_s7 + $0xa70] sm:$0xff] %v1665_v14 }
 0x15f   : > { %1668 = vst [vmem:[%s6398_s7 + $0xa78] sm:$0xff] %v1667_v15  ;;  %v1669_v16 = vld [vmem:[%s6390_s6 + $0x2a00] sm:$0xff] }
 0x160   : > { %v1671_v17 = vld [vmem:[%s6390_s6 + $0x2a20] sm:$0xff]  ;;  %1670 = vst [vmem:[%s6398_s7 + $0xa80] sm:$0xff] %v1669_v16 }
 0x161   : > { %v1673_v18 = vld [vmem:[%s6390_s6 + $0x2a40] sm:$0xff]  ;;  %1672 = vst [vmem:[%s6398_s7 + $0xa88] sm:$0xff] %v1671_v17 }
 0x162   : > { %1674 = vst [vmem:[%s6398_s7 + $0xa90] sm:$0xff] %v1673_v18  ;;  %v1675_v19 = vld [vmem:[%s6390_s6 + $0x2a60] sm:$0xff] }
 0x163   : > { %v1677_v20 = vld [vmem:[%s6390_s6 + $0x2a80] sm:$0xff]  ;;  %1676 = vst [vmem:[%s6398_s7 + $0xa98] sm:$0xff] %v1675_v19 }
 0x164   : > { %v1679_v21 = vld [vmem:[%s6390_s6 + $0x2aa0] sm:$0xff]  ;;  %1678 = vst [vmem:[%s6398_s7 + $0xaa0] sm:$0xff] %v1677_v20 }
 0x165   : > { %1680 = vst [vmem:[%s6398_s7 + $0xaa8] sm:$0xff] %v1679_v21  ;;  %v1681_v22 = vld [vmem:[%s6390_s6 + $0x2ac0] sm:$0xff] }
 0x166   : > { %v1683_v23 = vld [vmem:[%s6390_s6 + $0x2ae0] sm:$0xff]  ;;  %1682 = vst [vmem:[%s6398_s7 + $0xab0] sm:$0xff] %v1681_v22 }
 0x167   : > { %v1685_v24 = vld [vmem:[%s6390_s6 + $0x2b00] sm:$0xff]  ;;  %1684 = vst [vmem:[%s6398_s7 + $0xab8] sm:$0xff] %v1683_v23 }
 0x168   : > { %1686 = vst [vmem:[%s6398_s7 + $0xac0] sm:$0xff] %v1685_v24  ;;  %v1687_v25 = vld [vmem:[%s6390_s6 + $0x2b20] sm:$0xff] }
 0x169   : > { %v1689_v26 = vld [vmem:[%s6390_s6 + $0x2b40] sm:$0xff]  ;;  %1688 = vst [vmem:[%s6398_s7 + $0xac8] sm:$0xff] %v1687_v25 }
 0x16a   : > { %v1691_v27 = vld [vmem:[%s6390_s6 + $0x2b60] sm:$0xff]  ;;  %1690 = vst [vmem:[%s6398_s7 + $0xad0] sm:$0xff] %v1689_v26 }
 0x16b   : > { %1692 = vst [vmem:[%s6398_s7 + $0xad8] sm:$0xff] %v1691_v27  ;;  %v1693_v28 = vld [vmem:[%s6390_s6 + $0x2b80] sm:$0xff] }
 0x16c   : > { %v1695_v29 = vld [vmem:[%s6390_s6 + $0x2ba0] sm:$0xff]  ;;  %1694 = vst [vmem:[%s6398_s7 + $0xae0] sm:$0xff] %v1693_v28 }
 0x16d   : > { %v1697_v30 = vld [vmem:[%s6390_s6 + $0x2bc0] sm:$0xff]  ;;  %1696 = vst [vmem:[%s6398_s7 + $0xae8] sm:$0xff] %v1695_v29 }
 0x16e   : > { %1698 = vst [vmem:[%s6398_s7 + $0xaf0] sm:$0xff] %v1697_v30  ;;  %v1699_v31 = vld [vmem:[%s6390_s6 + $0x2be0] sm:$0xff] }
 0x16f   : > { %v1701_v32 = vld [vmem:[%s6390_s6 + $0x2c00] sm:$0xff]  ;;  %1700 = vst [vmem:[%s6398_s7 + $0xaf8] sm:$0xff] %v1699_v31 }
 0x170   : > { %v1703_v33 = vld [vmem:[%s6390_s6 + $0x2c20] sm:$0xff]  ;;  %1702 = vst [vmem:[%s6398_s7 + $0xb00] sm:$0xff] %v1701_v32 }
 0x171   : > { %1704 = vst [vmem:[%s6398_s7 + $0xb08] sm:$0xff] %v1703_v33  ;;  %v1705_v34 = vld [vmem:[%s6390_s6 + $0x2c40] sm:$0xff] }
 0x172   : > { %v1707_v35 = vld [vmem:[%s6390_s6 + $0x2c60] sm:$0xff]  ;;  %1706 = vst [vmem:[%s6398_s7 + $0xb10] sm:$0xff] %v1705_v34 }
 0x173   : > { %v1709_v36 = vld [vmem:[%s6390_s6 + $0x2c80] sm:$0xff]  ;;  %1708 = vst [vmem:[%s6398_s7 + $0xb18] sm:$0xff] %v1707_v35 }
 0x174   : > { %1710 = vst [vmem:[%s6398_s7 + $0xb20] sm:$0xff] %v1709_v36  ;;  %v1711_v37 = vld [vmem:[%s6390_s6 + $0x2ca0] sm:$0xff] }
 0x175   : > { %v1713_v38 = vld [vmem:[%s6390_s6 + $0x2cc0] sm:$0xff]  ;;  %1712 = vst [vmem:[%s6398_s7 + $0xb28] sm:$0xff] %v1711_v37 }
 0x176   : > { %v1715_v39 = vld [vmem:[%s6390_s6 + $0x2ce0] sm:$0xff]  ;;  %1714 = vst [vmem:[%s6398_s7 + $0xb30] sm:$0xff] %v1713_v38 }
 0x177   : > { %1716 = vst [vmem:[%s6398_s7 + $0xb38] sm:$0xff] %v1715_v39  ;;  %v1717_v40 = vld [vmem:[%s6390_s6 + $0x2d00] sm:$0xff] }
 0x178   : > { %v1719_v41 = vld [vmem:[%s6390_s6 + $0x2d20] sm:$0xff]  ;;  %1718 = vst [vmem:[%s6398_s7 + $0xb40] sm:$0xff] %v1717_v40 }
 0x179   : > { %v1721_v42 = vld [vmem:[%s6390_s6 + $0x2d40] sm:$0xff]  ;;  %1720 = vst [vmem:[%s6398_s7 + $0xb48] sm:$0xff] %v1719_v41 }
 0x17a   : > { %1722 = vst [vmem:[%s6398_s7 + $0xb50] sm:$0xff] %v1721_v42  ;;  %v1723_v43 = vld [vmem:[%s6390_s6 + $0x2d60] sm:$0xff] }
 0x17b   : > { %v1725_v44 = vld [vmem:[%s6390_s6 + $0x2d80] sm:$0xff]  ;;  %1724 = vst [vmem:[%s6398_s7 + $0xb58] sm:$0xff] %v1723_v43 }
 0x17c   : > { %v1727_v45 = vld [vmem:[%s6390_s6 + $0x2da0] sm:$0xff]  ;;  %1726 = vst [vmem:[%s6398_s7 + $0xb60] sm:$0xff] %v1725_v44 }
 0x17d   : > { %1728 = vst [vmem:[%s6398_s7 + $0xb68] sm:$0xff] %v1727_v45  ;;  %v1729_v46 = vld [vmem:[%s6390_s6 + $0x2dc0] sm:$0xff] }
 0x17e   : > { %v1731_v47 = vld [vmem:[%s6390_s6 + $0x2de0] sm:$0xff]  ;;  %1730 = vst [vmem:[%s6398_s7 + $0xb70] sm:$0xff] %v1729_v46 }
 0x17f   : > { %v1733_v48 = vld [vmem:[%s6390_s6 + $0x2e00] sm:$0xff]  ;;  %1732 = vst [vmem:[%s6398_s7 + $0xb78] sm:$0xff] %v1731_v47 }
 0x180   : > { %1734 = vst [vmem:[%s6398_s7 + $0xb80] sm:$0xff] %v1733_v48  ;;  %v1735_v49 = vld [vmem:[%s6390_s6 + $0x2e20] sm:$0xff] }
 0x181   : > { %v1737_v50 = vld [vmem:[%s6390_s6 + $0x2e40] sm:$0xff]  ;;  %1736 = vst [vmem:[%s6398_s7 + $0xb88] sm:$0xff] %v1735_v49 }
 0x182   : > { %v1739_v51 = vld [vmem:[%s6390_s6 + $0x2e60] sm:$0xff]  ;;  %1738 = vst [vmem:[%s6398_s7 + $0xb90] sm:$0xff] %v1737_v50 }
 0x183   : > { %1740 = vst [vmem:[%s6398_s7 + $0xb98] sm:$0xff] %v1739_v51  ;;  %v1741_v52 = vld [vmem:[%s6390_s6 + $0x2e80] sm:$0xff] }
 0x184   : > { %v1743_v53 = vld [vmem:[%s6390_s6 + $0x2ea0] sm:$0xff]  ;;  %1742 = vst [vmem:[%s6398_s7 + $0xba0] sm:$0xff] %v1741_v52 }
 0x185   : > { %v1745_v54 = vld [vmem:[%s6390_s6 + $0x2ec0] sm:$0xff]  ;;  %1744 = vst [vmem:[%s6398_s7 + $0xba8] sm:$0xff] %v1743_v53 }
 0x186   : > { %1746 = vst [vmem:[%s6398_s7 + $0xbb0] sm:$0xff] %v1745_v54  ;;  %v1747_v55 = vld [vmem:[%s6390_s6 + $0x2ee0] sm:$0xff] }
 0x187   : > { %v1749_v56 = vld [vmem:[%s6390_s6 + $0x2f00] sm:$0xff]  ;;  %1748 = vst [vmem:[%s6398_s7 + $0xbb8] sm:$0xff] %v1747_v55 }
 0x188   : > { %v1751_v57 = vld [vmem:[%s6390_s6 + $0x2f20] sm:$0xff]  ;;  %1750 = vst [vmem:[%s6398_s7 + $0xbc0] sm:$0xff] %v1749_v56 }
 0x189   : > { %1752 = vst [vmem:[%s6398_s7 + $0xbc8] sm:$0xff] %v1751_v57  ;;  %v1753_v58 = vld [vmem:[%s6390_s6 + $0x2f40] sm:$0xff] }
 0x18a   : > { %v1755_v59 = vld [vmem:[%s6390_s6 + $0x2f60] sm:$0xff]  ;;  %1754 = vst [vmem:[%s6398_s7 + $0xbd0] sm:$0xff] %v1753_v58 }
 0x18b   : > { %v1757_v60 = vld [vmem:[%s6390_s6 + $0x2f80] sm:$0xff]  ;;  %1756 = vst [vmem:[%s6398_s7 + $0xbd8] sm:$0xff] %v1755_v59 }
 0x18c   : > { %1758 = vst [vmem:[%s6398_s7 + $0xbe0] sm:$0xff] %v1757_v60  ;;  %v1759_v61 = vld [vmem:[%s6390_s6 + $0x2fa0] sm:$0xff] }
 0x18d   : > { %v1761_v62 = vld [vmem:[%s6390_s6 + $0x2fc0] sm:$0xff]  ;;  %1760 = vst [vmem:[%s6398_s7 + $0xbe8] sm:$0xff] %v1759_v61 }
 0x18e   : > { %v1763_v63 = vld [vmem:[%s6390_s6 + $0x2fe0] sm:$0xff]  ;;  %1762 = vst [vmem:[%s6398_s7 + $0xbf0] sm:$0xff] %v1761_v62 }
 0x18f   : > { %1764 = vst [vmem:[%s6398_s7 + $0xbf8] sm:$0xff] %v1763_v63  ;;  %v1765_v0 = vld [vmem:[%s6390_s6 + $0x3000] sm:$0xff] }
 0x190   : > { %v1767_v1 = vld [vmem:[%s6390_s6 + $0x3020] sm:$0xff]  ;;  %1766 = vst [vmem:[%s6398_s7 + $0xc00] sm:$0xff] %v1765_v0 }
 0x191   : > { %v1769_v2 = vld [vmem:[%s6390_s6 + $0x3040] sm:$0xff]  ;;  %1768 = vst [vmem:[%s6398_s7 + $0xc08] sm:$0xff] %v1767_v1 }
 0x192   : > { %1770 = vst [vmem:[%s6398_s7 + $0xc10] sm:$0xff] %v1769_v2  ;;  %v1771_v3 = vld [vmem:[%s6390_s6 + $0x3060] sm:$0xff] }
 0x193   : > { %v1773_v4 = vld [vmem:[%s6390_s6 + $0x3080] sm:$0xff]  ;;  %1772 = vst [vmem:[%s6398_s7 + $0xc18] sm:$0xff] %v1771_v3 }
 0x194   : > { %v1775_v5 = vld [vmem:[%s6390_s6 + $0x30a0] sm:$0xff]  ;;  %1774 = vst [vmem:[%s6398_s7 + $0xc20] sm:$0xff] %v1773_v4 }
 0x195   : > { %1776 = vst [vmem:[%s6398_s7 + $0xc28] sm:$0xff] %v1775_v5  ;;  %v1777_v6 = vld [vmem:[%s6390_s6 + $0x30c0] sm:$0xff] }
 0x196   : > { %v1779_v7 = vld [vmem:[%s6390_s6 + $0x30e0] sm:$0xff]  ;;  %1778 = vst [vmem:[%s6398_s7 + $0xc30] sm:$0xff] %v1777_v6 }
 0x197   : > { %1780 = vst [vmem:[%s6398_s7 + $0xc38] sm:$0xff] %v1779_v7 }
 0x198 PF: > { %p5219_p5 = scmp.ge.s32.totalorder %s6319_s20, 1  ;;  %p1802_p6 = scmp.lt.s32.totalorder %s6319_s20, 5 }
 0x19a   : > { %p1803_p7 = pnand %p5219_p5, %p1802_p6 }
 0x19b   : > { %s1809_s8 = sand.u32 (!%p1803_p7), 1, %s6311_s18   ;;  %s5220_s9 = sshll.u32 (!%p1803_p7), %s6370_s21, 1 }
 0x19c   : > { %1806 = sbr.rel (%p1803_p7) target bundleno = 1387 (0x56b), region = 74  ;;  %p1842_p8 = scmp.lt.s32.totalorder (!%p1803_p7), %s5220_s9, 7 }
 0x19d   : > { %s5662_s10 = smul.u32 (!%p1803_p7), 3136, %s1809_s8  ;;  %s5221_s11 = sshll.u32 (!%p1803_p7), %s6370_s21, 5 }
 0x19e   : > { %p1847_p9 = scmp.lt.s32.totalorder (!%p1803_p7), %s5221_s11, 127  ;;  %p5223_p10 = scmp.ne.s32.totalorder (!%p1803_p7), %s6370_s21, 0 }
 0x19f   : > { %s7194_s18 = scalar_lea.vmem (!%p1803_p7), [#allocation3], %s5662_s10 }
 0x1a1   : > { %s7724_s9 = smov (!%p1842_p8, %s5220_s9), 7  ;;  %s7726_s11 = smov (!%p1847_p9, %s5221_s11), 127 }
 0x1a2   : > { %s1844_s14 = scalar_lea.vmem %s7716_s2, %s7724_s9  ;;  %s5222_s15 = sshll.u32 %s7726_s11, 2 }
 0x1a3   : > { %s7192_s20 = scalar_lea.vmem %s7717_s3, %s5222_s15  ;;  %1856 = sbr.rel (%p5223_p10) target bundleno = 426 (0x1aa), region = 82 }
 0x1a8   : > { %v6321_v8 = vmov 0.0  }
 0x1a9   : > { %1857 = vst [vmem:[#allocation2] sm:$0x3] %v6321_v8 }
 0x1aa PF: > { %v5690_v9 = vld [vmem:[%s7194_s18 + $0x74] ss:$8 sps:$4 sm:$0xff]   ;;  %v5692_v10 = vld [vmem:[%s7194_s18 + $0x70] ss:$8 sps:$4 sm:$0xff]   ;;  %v5696_v13 = vld [vmem:[%s7194_s18 + $0x64] ss:$8 sps:$4 sm:$0xff]   ;;  %v2256_v44 = vlaneseq }
 0x1ab   : > { %4419 = vmatprep.subr.bf16.mxu0 %v5690_v9  ;;  %v5693_v11 = vld [vmem:[%s7194_s18 + $0x174] ss:$8 sps:$4 sm:$0xff]   ;;  %v5695_v12 = vld [vmem:[%s7194_s18 + $0x170] ss:$8 sps:$4 sm:$0xff]   ;;  %v5698_v14 = vld [vmem:[%s7194_s18 + $0x60] ss:$8 sps:$4 sm:$0xff]  }
 0x1ac   : > { %4420 = vmatpush1.bf16.msra.mxu0 %v5692_v10  ;;  %4460 = vmatprep.subr.bf16.mxu1 %v5693_v11  ;;  %v5699_v15 = vld [vmem:[%s7194_s18 + $0x164] ss:$8 sps:$4 sm:$0xff]   ;;  %v5701_v16 = vld [vmem:[%s7194_s18 + $0x160] ss:$8 sps:$4 sm:$0xff]   ;;  %v5702_v17 = vld [vmem:[%s7194_s18 + $0x54] ss:$8 sps:$4 sm:$0xff]  }
 0x1ad   : > { %4461 = vmatpush1.bf16.msra.mxu1 %v5695_v12  ;;  %4421 = vmatprep.subr.bf16.mxu0 %v5696_v13  ;;  %v5704_v18 = vld [vmem:[%s7194_s18 + $0x50] ss:$8 sps:$4 sm:$0xff]   ;;  %v5705_v19 = vld [vmem:[%s7194_s18 + $0x154] ss:$8 sps:$4 sm:$0xff]   ;;  %v5708_v20 = vld [vmem:[%s7194_s18 + $0x44] ss:$8 sps:$4 sm:$0xff]  }
 0x1ae   : > { %4462 = vmatprep.subr.bf16.mxu1 %v5699_v15  ;;  %v5707_v21 = vld [vmem:[%s7194_s18 + $0x150] ss:$8 sps:$4 sm:$0xff]   ;;  %v5711_v22 = vld [vmem:[%s7194_s18 + $0x144] ss:$8 sps:$4 sm:$0xff]   ;;  %v5710_v23 = vld [vmem:[%s7194_s18 + $0x40] ss:$8 sps:$4 sm:$0xff]  }
 0x1af   : > { %v5714_v24 = vld [vmem:[%s7194_s18 + $0x34] ss:$8 sps:$4 sm:$0xff]   ;;  %v5713_v25 = vld [vmem:[%s7194_s18 + $0x140] ss:$8 sps:$4 sm:$0xff]   ;;  %v5716_v27 = vld [vmem:[%s7194_s18 + $0x30] ss:$8 sps:$4 sm:$0xff]  }
 0x1b0   : > { %4422 = vmatpush1.bf16.msra.mxu0 %v5698_v14  ;;  %v5717_v26 = vld [vmem:[%s7194_s18 + $0x134] ss:$8 sps:$4 sm:$0xff]   ;;  %v5720_v28 = vld [vmem:[%s7194_s18 + $0x24] ss:$8 sps:$4 sm:$0xff]   ;;  %v5719_v29 = vld [vmem:[%s7194_s18 + $0x130] ss:$8 sps:$4 sm:$0xff]  }
 0x1b1   : > { %4423 = vmatprep.subr.bf16.mxu0 %v5702_v17  ;;  %4463 = vmatpush1.bf16.msra.mxu1 %v5701_v16  ;;  %v5723_v30 = vld [vmem:[%s7194_s18 + $0x124] ss:$8 sps:$4 sm:$0xff]   ;;  %v5722_v31 = vld [vmem:[%s7194_s18 + $0x20] ss:$8 sps:$4 sm:$0xff]   ;;  %v5726_v32 = vld [vmem:[%s7194_s18 + $0x14] ss:$8 sps:$4 sm:$0xff]  }
 0x1b2   : > { %4464 = vmatprep.subr.bf16.mxu1 %v5705_v19  ;;  %v5725_v33 = vld [vmem:[%s7194_s18 + $0x120] ss:$8 sps:$4 sm:$0xff]   ;;  %v5729_v34 = vld [vmem:[%s7194_s18 + $0x114] ss:$8 sps:$4 sm:$0xff]   ;;  %v5728_v35 = vld [vmem:[%s7194_s18 + $0x10] ss:$8 sps:$4 sm:$0xff]  }
 0x1b3   : > { %v5732_v36 = vld [vmem:[%s7194_s18 + $0x4] ss:$8 sps:$4 sm:$0xff]   ;;  %v5731_v37 = vld [vmem:[%s7194_s18 + $0x110] ss:$8 sps:$4 sm:$0xff]   ;;  %v5734_v39 = vld [vmem:[%s7194_s18] ss:$8 sps:$4 sm:$0xff]  }
 0x1b4   : > { %4424 = vmatpush1.bf16.msra.mxu0 %v5704_v18  ;;  %v5735_v38 = vld [vmem:[%s7194_s18 + $0x104] ss:$8 sps:$4 sm:$0xff]   ;;  %v5738_v40 = vld [vmem:[%s7194_s18 + $0xf4] ss:$8 sps:$4 sm:$0xff]   ;;  %v5737_v41 = vld [vmem:[%s7194_s18 + $0x100] ss:$8 sps:$4 sm:$0xff]  }
 0x1b5   : > { %4425 = vmatprep.subr.bf16.mxu0 %v5708_v20  ;;  %4465 = vmatpush1.bf16.msra.mxu1 %v5707_v21  ;;  %v5741_v42 = vld [vmem:[%s7194_s18 + $0x1f4] ss:$8 sps:$4 sm:$0xff]   ;;  %v5740_v43 = vld [vmem:[%s7194_s18 + $0xf0] ss:$8 sps:$4 sm:$0xff]   ;;  %v6322_v45 = vmov 1966171168  }
 0x1b6   : > { %4466 = vmatprep.subr.bf16.mxu1 %v5711_v22  ;;  %v2272_v46 = vunpack.c.l.s4 %v6322_v45  ;;  %v5744_v47 = vld [vmem:[%s7194_s18 + $0xe4] ss:$8 sps:$4 sm:$0xff]   ;;  %v5743_v48 = vld [vmem:[%s7194_s18 + $0x1f0] ss:$8 sps:$4 sm:$0xff]   ;;  %v5746_v50 = vld [vmem:[%s7194_s18 + $0xe0] ss:$8 sps:$4 sm:$0xff]  }
 0x1b7   : > { %v5747_v49 = vld [vmem:[%s7194_s18 + $0x1e4] ss:$8 sps:$4 sm:$0xff]   ;;  %v7237_v51 = vshrl.u32 %v2256_v44, 7  ;;  %v5750_v53 = vld [vmem:[%s7194_s18 + $0xd4] ss:$8 sps:$4 sm:$0xff]   ;;  %vm4415_vm0 = vcmask 523264  }
 0x1b8   : > { %4426 = vmatpush1.bf16.msra.mxu0 %v5710_v23  ;;  %v2273_v52 = vunpack.c.0.s8 %v2272_v46  ;;  %v5749_v54 = vld [vmem:[%s7194_s18 + $0x1e0] ss:$8 sps:$4 sm:$0xff]   ;;  %v5753_v55 = vld [vmem:[%s7194_s18 + $0x1d4] ss:$8 sps:$4 sm:$0xff]   ;;  %v5752_v56 = vld [vmem:[%s7194_s18 + $0xd0] ss:$8 sps:$4 sm:$0xff]  }
 0x1b9   : > { %4427 = vmatprep.subr.bf16.mxu0 %v5714_v24  ;;  %4467 = vmatpush1.bf16.msra.mxu1 %v5713_v25  ;;  %v5756_v58 = vld [vmem:[%s7194_s18 + $0xc4] ss:$8 sps:$4 sm:$0xff]   ;;  %v5755_v59 = vld [vmem:[%s7194_s18 + $0x1d0] ss:$8 sps:$4 sm:$0xff]   ;;  %v5758_v62 = vld [vmem:[%s7194_s18 + $0xc0] ss:$8 sps:$4 sm:$0xff]  }
 0x1ba   : > { %4468 = vmatprep.subr.bf16.mxu1 %v5717_v26  ;;  %v7244_v57 = vsub.s32 %v2273_v52, %v7237_v51  ;;  %v5759_v60 = vld [vmem:[%s7194_s18 + $0x1c4] ss:$8 sps:$4 sm:$0xff]   ;;  %v5762_v0 = vld [vmem:[%s7194_s18 + $0xb4] ss:$8 sps:$4 sm:$0xff]   ;;  %v5761_v1 = vld [vmem:[%s7194_s18 + $0x1c0] ss:$8 sps:$4 sm:$0xff]  }
 0x1bb   : > { %v1858_v61 = vld [vmem:[%s7714_s0] sm:$0xff]  ;;  %v5764_v4 = vld [vmem:[%s7194_s18 + $0xb0] ss:$8 sps:$4 sm:$0xff]   ;;  %p5634_p11 = scmp.ne.s32.totalorder %s6370_s21, 3 }
 0x1bc   : > { %4428 = vmatpush1.bf16.msra.mxu0 %v5716_v27  ;;  %v2277_v63 = vrot.slane %v1858_v61, %v7244_v57  ;;  %v5765_v3 = vld [vmem:[%s7194_s18 + $0x1b4] ss:$8 sps:$4 sm:$0xff]   ;;  %v5768_v6 = vld [vmem:[%s7194_s18 + $0xa4] ss:$8 sps:$4 sm:$0xff]   ;;  %v5767_v7 = vld [vmem:[%s7194_s18 + $0x1b0] ss:$8 sps:$4 sm:$0xff]   ;;  %v2270_v8 = vcombine.high %v1858_v61, %v1858_v61 }
 0x1bd   : > { %4429 = vmatprep.subr.bf16.mxu0 %v5720_v28  ;;  %4469 = vmatpush1.bf16.msra.mxu1 %v5719_v29  ;;  %v5771_v10 = vld [vmem:[%s7194_s18 + $0x1a4] ss:$8 sps:$4 sm:$0xff]   ;;  %v5770_v11 = vld [vmem:[%s7194_s18 + $0xa0] ss:$8 sps:$4 sm:$0xff]   ;;  %v5774_v12 = vld [vmem:[%s7194_s18 + $0x94] ss:$8 sps:$4 sm:$0xff]  }
 0x1be   : > { %4470 = vmatprep.subr.bf16.mxu1 %v5723_v30  ;;  %v2285_v2 = vcombine.high %v2277_v63, %v2277_v63  ;;  %v5773_v13 = vld [vmem:[%s7194_s18 + $0x1a0] ss:$8 sps:$4 sm:$0xff]   ;;  %v7266_v14 = vrot.slane %v2270_v8, %v7244_v57  ;;  %v5777_v15 = vld [vmem:[%s7194_s18 + $0x194] ss:$8 sps:$4 sm:$0xff]   ;;  %v5776_v16 = vld [vmem:[%s7194_s18 + $0x90] ss:$8 sps:$4 sm:$0xff]   ;;  %v2293_v22 = vrot.slane %v2277_v63, %v7244_v57 }
 0x1bf   : > { %v5780_v17 = vld [vmem:[%s7194_s18 + $0x84] ss:$8 sps:$4 sm:$0xff]   ;;  %v5779_v18 = vld [vmem:[%s7194_s18 + $0x190] ss:$8 sps:$4 sm:$0xff]   ;;  %v5782_v21 = vld [vmem:[%s7194_s18 + $0x80] ss:$8 sps:$4 sm:$0xff]  }
 0x1c0   : > { %4430 = vmatpush1.bf16.msra.mxu0 %v5722_v31  ;;  %v2307_v5 = vrot.slane %v2285_v2, %v7244_v57  ;;  %v2286_v19 = vcombine.high %v7266_v14, %v7266_v14  ;;  %v5783_v20 = vld [vmem:[%s7194_s18 + $0x184] ss:$8 sps:$4 sm:$0xff]   ;;  %v5789_v23 = vld [vmem:[%s7194_s18 + $0x274] ss:$8 sps:$4 sm:$0xff]   ;;  %v5786_v24 = vld [vmem:[%s7194_s18 + $0x180] ss:$8 sps:$4 sm:$0xff]   ;;  %v2315_v28 = vcombine.high %v2293_v22, %v2293_v22 }
 0x1c1   : > { %4431 = vmatprep.subr.bf16.mxu0 %v5726_v32  ;;  %4471 = vmatpush1.bf16.msra.mxu1 %v5725_v33  ;;  %v5792_v26 = vld [vmem:[%s7194_s18 + $0x374] ss:$8 sps:$4 sm:$0xff]   ;;  %v5787_v27 = vld [vmem:[%s7194_s18 + $0x270] ss:$8 sps:$4 sm:$0xff]   ;;  %v5795_v29 = vld [vmem:[%s7194_s18 + $0x264] ss:$8 sps:$4 sm:$0xff]  }
 0x1c2   : > { %4472 = vmatprep.subr.bf16.mxu1 %v5729_v34  ;;  %4451 = vmatprep.mubr.bf16.mxu0 %v2307_v5  ;;  %v2317_v9 = vcombine.high %v2307_v5, %v2307_v5  ;;  %v2314_v25 = vrot.slane %v2286_v19, %v7244_v57  ;;  %v5790_v30 = vld [vmem:[%s7194_s18 + $0x370] ss:$8 sps:$4 sm:$0xff]   ;;  %v5798_v32 = vld [vmem:[%s7194_s18 + $0x364] ss:$8 sps:$4 sm:$0xff]   ;;  %v5793_v33 = vld [vmem:[%s7194_s18 + $0x260] ss:$8 sps:$4 sm:$0xff]  }
 0x1c3   : > { %v5801_v34 = vld [vmem:[%s7194_s18 + $0x254] ss:$8 sps:$4 sm:$0xff]   ;;  %v5811_v46 = vld [vmem:[%s7194_s18 + $0x230] ss:$8 sps:$4 sm:$0xff]  }
 0x1c4   : > { %4432 = vmatpush1.bf16.msra.mxu0 %v5728_v35  ;;  %4492 = vmatprep.mubr.bf16.mxu1 %v2317_v9  ;;  %v2318_v31 = vcombine.high %v2314_v25, %v2314_v25  ;;  %v5796_v35 = vld [vmem:[%s7194_s18 + $0x360] ss:$8 sps:$4 sm:$0xff]   ;;  %v5816_v45 = vld [vmem:[%s7194_s18 + $0x334] ss:$8 sps:$4 sm:$0xff]   ;;  %v5838_v2 = vld [vmem:[%s7194_s18 + $0x3f0] ss:$8 sps:$4 sm:$0xff]  }
 0x1c5   : > { %4433 = vmatprep.subr.bf16.mxu0 %v5732_v36  ;;  %4473 = vmatpush1.bf16.msra.mxu1 %v5731_v37  ;;  %v5804_v36 = vld [vmem:[%s7194_s18 + $0x354] ss:$8 sps:$4 sm:$0xff]   ;;  %v5799_v37 = vld [vmem:[%s7194_s18 + $0x250] ss:$8 sps:$4 sm:$0xff]   ;;  %v5855_v9 = vld [vmem:[%s7194_s18 + $0x2c4] ss:$8 sps:$4 sm:$0xff]  }
 0x1c6   : > { %4474 = vmatprep.subr.bf16.mxu1 %v5735_v38  ;;  %v5807_v38 = vld [vmem:[%s7194_s18 + $0x244] ss:$8 sps:$4 sm:$0xff]   ;;  %v5825_v52 = vld [vmem:[%s7194_s18 + $0x214] ss:$8 sps:$4 sm:$0xff]   ;;  %v5847_v8 = vld [vmem:[%s7194_s18 + $0x2d0] ss:$8 sps:$4 sm:$0xff]  }
 0x1c7   : > { %v5837_v61 = vld [vmem:[%s7194_s18 + $0x2f4] ss:$8 sps:$4 sm:$0xff]   ;;  %v5862_v19 = vld [vmem:[%s7194_s18 + $0x3b0] ss:$8 sps:$4 sm:$0xff]  }
 0x1c8   : > { %4434 = vmatpush1.bf16.msra.mxu0 %v5734_v39  ;;  %v5802_v39 = vld [vmem:[%s7194_s18 + $0x350] ss:$8 sps:$4 sm:$0xff]   ;;  %v5840_v63 = vld [vmem:[%s7194_s18 + $0x3f4] ss:$8 sps:$4 sm:$0xff]  }
 0x1c9   : > { %4435 = vmatprep.subr.bf16.mxu0 %v5738_v40  ;;  %4475 = vmatpush1.bf16.msra.mxu1 %v5737_v41  ;;  %v5810_v40 = vld [vmem:[%s7194_s18 + $0x344] ss:$8 sps:$4 sm:$0xff]   ;;  %v5805_v41 = vld [vmem:[%s7194_s18 + $0x240] ss:$8 sps:$4 sm:$0xff]   ;;  %v5849_v5 = vld [vmem:[%s7194_s18 + $0x2d4] ss:$8 sps:$4 sm:$0xff]  }
 0x1ca   : > { %4476 = vmatprep.subr.bf16.mxu1 %v5741_v42  ;;  %v5813_v42 = vld [vmem:[%s7194_s18 + $0x234] ss:$8 sps:$4 sm:$0xff]  }
 0x1cc   : > { %4436 = vmatpush2.bf16.msra.mxu0 %v5740_v43  ;;  %v5808_v43 = vld [vmem:[%s7194_s18 + $0x340] ss:$8 sps:$4 sm:$0xff]  }
 0x1cd   : > { %4437 = vmatprep.subr.bf16.mxu0 %v5744_v47  ;;  %4477 = vmatpush2.bf16.msra.mxu1 %v5743_v48  ;;  %v5819_v47 = vld [vmem:[%s7194_s18 + $0x224] ss:$8 sps:$4 sm:$0xff]   ;;  %v5814_v48 = vld [vmem:[%s7194_s18 + $0x330] ss:$8 sps:$4 sm:$0xff]  }
 0x1ce   : > { %4478 = vmatprep.subr.bf16.mxu1 %v5747_v49  ;;  %v5822_v49 = vld [vmem:[%s7194_s18 + $0x324] ss:$8 sps:$4 sm:$0xff]  }
 0x1d0   : > { %4438 = vmatpush2.bf16.msra.mxu0 %v5746_v50  ;;  %v5817_v50 = vld [vmem:[%s7194_s18 + $0x220] ss:$8 sps:$4 sm:$0xff]  }
 0x1d1   : > { %4439 = vmatprep.subr.bf16.mxu0 %v5750_v53  ;;  %4479 = vmatpush2.bf16.msra.mxu1 %v5749_v54  ;;  %v5820_v53 = vld [vmem:[%s7194_s18 + $0x320] ss:$8 sps:$4 sm:$0xff]   ;;  %v5828_v54 = vld [vmem:[%s7194_s18 + $0x314] ss:$8 sps:$4 sm:$0xff]  }
 0x1d2   : > { %4480 = vmatprep.subr.bf16.mxu1 %v5753_v55  ;;  %v5823_v55 = vld [vmem:[%s7194_s18 + $0x210] ss:$8 sps:$4 sm:$0xff]  }
 0x1d4   : > { %4440 = vmatpush2.bf16.msra.mxu0 %v5752_v56  ;;  %v5831_v56 = vld [vmem:[%s7194_s18 + $0x204] ss:$8 sps:$4 sm:$0xff]  }
 0x1d5   : > { %4441 = vmatprep.subr.bf16.mxu0 %v5756_v58  ;;  %4481 = vmatpush2.bf16.msra.mxu1 %v5755_v59  ;;  %v5826_v58 = vld [vmem:[%s7194_s18 + $0x310] ss:$8 sps:$4 sm:$0xff]   ;;  %v5834_v59 = vld [vmem:[%s7194_s18 + $0x304] ss:$8 sps:$4 sm:$0xff]  }
 0x1d6   : > { %4482 = vmatprep.subr.bf16.mxu1 %v5759_v60  ;;  %v5829_v60 = vld [vmem:[%s7194_s18 + $0x200] ss:$8 sps:$4 sm:$0xff]  }
 0x1d8   : > { %4442 = vmatpush2.bf16.msra.mxu0 %v5758_v62  ;;  %v5832_v62 = vld [vmem:[%s7194_s18 + $0x300] ss:$8 sps:$4 sm:$0xff]  }
 0x1d9   : > { %4443 = vmatprep.subr.bf16.mxu0 %v5762_v0  ;;  %4483 = vmatpush2.bf16.msra.mxu1 %v5761_v1  ;;  %v5835_v0 = vld [vmem:[%s7194_s18 + $0x2f0] ss:$8 sps:$4 sm:$0xff]   ;;  %v5843_v1 = vld [vmem:[%s7194_s18 + $0x2e4] ss:$8 sps:$4 sm:$0xff]  }
 0x1da   : > { %4484 = vmatprep.subr.bf16.mxu1 %v5765_v3  ;;  %v5846_v3 = vld [vmem:[%s7194_s18 + $0x3e4] ss:$8 sps:$4 sm:$0xff]  }
 0x1dc   : > { %4444 = vmatpush2.bf16.msra.mxu0 %v5764_v4  ;;  %v5841_v4 = vld [vmem:[%s7194_s18 + $0x2e0] ss:$8 sps:$4 sm:$0xff]  }
 0x1dd   : > { %4445 = vmatprep.subr.bf16.mxu0 %v5768_v6  ;;  %4485 = vmatpush2.bf16.msra.mxu1 %v5767_v7  ;;  %v5844_v6 = vld [vmem:[%s7194_s18 + $0x3e0] ss:$8 sps:$4 sm:$0xff]   ;;  %v5852_v7 = vld [vmem:[%s7194_s18 + $0x3d4] ss:$8 sps:$4 sm:$0xff]  }
 0x1de   : > { %4486 = vmatprep.subr.bf16.mxu1 %v5771_v10  ;;  %v5850_v10 = vld [vmem:[%s7194_s18 + $0x3d0] ss:$8 sps:$4 sm:$0xff]  }
 0x1e0   : > { %4446 = vmatpush2.bf16.msra.mxu0 %v5770_v11  ;;  %v5858_v11 = vld [vmem:[%s7194_s18 + $0x3c4] ss:$8 sps:$4 sm:$0xff]  }
 0x1e1   : > { %4447 = vmatprep.subr.bf16.mxu0 %v5774_v12  ;;  %4487 = vmatpush2.bf16.msra.mxu1 %v5773_v13  ;;  %v5853_v12 = vld [vmem:[%s7194_s18 + $0x2c0] ss:$8 sps:$4 sm:$0xff]   ;;  %v5861_v13 = vld [vmem:[%s7194_s18 + $0x2b4] ss:$8 sps:$4 sm:$0xff]  }
 0x1e2   : > { %4488 = vmatprep.subr.bf16.mxu1 %v5777_v15  ;;  %v5856_v15 = vld [vmem:[%s7194_s18 + $0x3c0] ss:$8 sps:$4 sm:$0xff]  }
 0x1e4   : > { %4448 = vmatpush2.bf16.msra.mxu0 %v5776_v16  ;;  %v5864_v16 = vld [vmem:[%s7194_s18 + $0x3b4] ss:$8 sps:$4 sm:$0xff]  }
 0x1e5   : > { %4449 = vmatprep.subr.bf16.mxu0 %v5780_v17  ;;  %4489 = vmatpush2.bf16.msra.mxu1 %v5779_v18  ;;  %v5859_v17 = vld [vmem:[%s7194_s18 + $0x2b0] ss:$8 sps:$4 sm:$0xff]   ;;  %v5867_v18 = vld [vmem:[%s7194_s18 + $0x2a4] ss:$8 sps:$4 sm:$0xff]  }
 0x1e6   : > { %4490 = vmatprep.subr.bf16.mxu1 %v5783_v20  ;;  %v5870_v20 = vld [vmem:[%s7194_s18 + $0x3a4] ss:$8 sps:$4 sm:$0xff]  }
 0x1e8   : > { %4450 = vmatpush2.bf16.msra.mxu0 %v5782_v21  ;;  %v5865_v21 = vld [vmem:[%s7194_s18 + $0x2a0] ss:$8 sps:$4 sm:$0xff]  }
 0x1e9   : > { %4501 = vmatprep.subr.bf16.mxu0 %v5789_v23  ;;  %4491 = vmatpush2.bf16.msra.mxu1 %v5786_v24  ;;  %v5868_v23 = vld [vmem:[%s7194_s18 + $0x3a0] ss:$8 sps:$4 sm:$0xff]   ;;  %v5876_v24 = vld [vmem:[%s7194_s18 + $0x394] ss:$8 sps:$4 sm:$0xff]  }
 0x1ea   : > { %4542 = vmatprep.subr.bf16.mxu1 %v5792_v26  ;;  %v5879_v26 = vld [vmem:[%s7194_s18 + $0x284] ss:$8 sps:$4 sm:$0xff]  }
 0x1eb   : > { %4452 = vmatmul.mubr.bf16.vlgmr.msra.gmra.mxu0 %v2293_v22  ;;  %v5873_v22 = vld [vmem:[%s7194_s18 + $0x294] ss:$8 sps:$4 sm:$0xff]  }
 0x1ec   : > { %4502 = vmatpush1.bf16.msra.mxu0 %v5787_v27  ;;  %4533 = vmatprep.mubr.bf16.mxu0 %v2314_v25  ;;  %v5871_v25 = vld [vmem:[%s7194_s18 + $0x290] ss:$8 sps:$4 sm:$0xff]  }
 0x1ed   : > { %4493 = vmatmul.mubr.bf16.vlgmr.msra.gmra.mxu1 %v2315_v28  ;;  %4503 = vmatprep.subr.bf16.mxu0 %v5795_v29  ;;  %v5874_v27 = vld [vmem:[%s7194_s18 + $0x390] ss:$8 sps:$4 sm:$0xff]   ;;  %v5882_v28 = vld [vmem:[%s7194_s18 + $0x384] ss:$8 sps:$4 sm:$0xff]   ;;  %v5877_v29 = vld [vmem:[%s7194_s18 + $0x280] ss:$8 sps:$4 sm:$0xff]  }
 0x1ee   : > { %4543 = vmatpush1.bf16.msra.mxu1 %v5790_v30  ;;  %4574 = vmatprep.mubr.bf16.mxu1 %v2318_v31  ;;  %v2300_v30 = vrot.slane %v7266_v14, %v7244_v57  ;;  %v5885_v31 = vld [vmem:[%s7194_s18 + $0x474] ss:$8 sps:$4 sm:$0xff]   ;;  %v5886_v14 = vld [vmem:[%s7194_s18 + $0x570] ss:$8 sps:$4 sm:$0xff]  }
 0x1ef   : > { %4544 = vmatprep.subr.bf16.mxu1 %v5798_v32  ;;  %v5880_v32 = vld [vmem:[%s7194_s18 + $0x380] ss:$8 sps:$4 sm:$0xff]  }
 0x1f0   : > { %4504 = vmatpush1.bf16.msra.mxu0 %v5793_v33  ;;  %v5888_v33 = vld [vmem:[%s7194_s18 + $0x574] ss:$8 sps:$4 sm:$0xff]  }
 0x1f1   : > { %4505 = vmatprep.subr.bf16.mxu0 %v5801_v34  ;;  %v5883_v34 = vld [vmem:[%s7194_s18 + $0x470] ss:$8 sps:$4 sm:$0xff]  }
 0x1f2   : > { %4545 = vmatpush1.bf16.msra.mxu1 %v5796_v35  ;;  %v2316_v35 = vcombine.high %v2300_v30, %v2300_v30 }
 0x1f3   : > { %4546 = vmatprep.subr.bf16.mxu1 %v5804_v36  ;;  %v5891_v36 = vld [vmem:[%s7194_s18 + $0x464] ss:$8 sps:$4 sm:$0xff]  }
 0x1f4   : > { %4506 = vmatpush1.bf16.msra.mxu0 %v5799_v37  ;;  %v7352_v37 = vld [vmem:[%s7714_s0 + $0x8] sm:$0xff] }
 0x1f5   : > { %4507 = vmatprep.subr.bf16.mxu0 %v5807_v38  ;;  %v7357_v38 = vrot.slane %v7352_v37, %v7244_v57 }
 0x1f6   : > { %4547 = vmatpush1.bf16.msra.mxu1 %v5802_v39  ;;  %v5894_v39 = vld [vmem:[%s7194_s18 + $0x564] ss:$8 sps:$4 sm:$0xff]  }
 0x1f7   : > { %4548 = vmatprep.subr.bf16.mxu1 %v5810_v40  ;;  %v5889_v40 = vld [vmem:[%s7194_s18 + $0x460] ss:$8 sps:$4 sm:$0xff]  }
 0x1f8   : > { %4508 = vmatpush1.bf16.msra.mxu0 %v5805_v41  ;;  %v2334_v41 = vcombine.high %v7357_v38, %v7357_v38 }
 0x1f9   : > { %4509 = vmatprep.subr.bf16.mxu0 %v5813_v42  ;;  %v5897_v42 = vld [vmem:[%s7194_s18 + $0x454] ss:$8 sps:$4 sm:$0xff]  }
 0x1fa   : > { %4549 = vmatpush1.bf16.msra.mxu1 %v5808_v43  ;;  %v5892_v43 = vld [vmem:[%s7194_s18 + $0x560] ss:$8 sps:$4 sm:$0xff]  }
 0x1fb   : > { %4550 = vmatprep.subr.bf16.mxu1 %v5816_v45  ;;  %v2356_v45 = vrot.slane %v2334_v41, %v7244_v57  ;;  %v5978_v41 = vld [vmem:[%s7194_s18 + $0x584] ss:$8 sps:$4 sm:$0xff]  }
 0x1fc   : > { %4510 = vmatpush1.bf16.msra.mxu0 %v5811_v46  ;;  %v5900_v46 = vld [vmem:[%s7194_s18 + $0x554] ss:$8 sps:$4 sm:$0xff]  }
 0x1fd   : > { %4511 = vmatprep.subr.bf16.mxu0 %v5819_v47  ;;  %v5895_v47 = vld [vmem:[%s7194_s18 + $0x450] ss:$8 sps:$4 sm:$0xff]  }
 0x1fe   : > { %4551 = vmatpush1.bf16.msra.mxu1 %v5814_v48  ;;  %v2366_v48 = vcombine.high %v2356_v45, %v2356_v45 }
 0x1ff   : > { %4552 = vmatprep.subr.bf16.mxu1 %v5822_v49  ;;  %v5903_v49 = vld [vmem:[%s7194_s18 + $0x444] ss:$8 sps:$4 sm:$0xff]  }
 0x200   : > { %4512 = vmatpush1.bf16.msra.mxu0 %v5817_v50  ;;  %v5898_v50 = vld [vmem:[%s7194_s18 + $0x550] ss:$8 sps:$4 sm:$0xff]  }
 0x201   : > { %4513 = vmatprep.subr.bf16.mxu0 %v5825_v52  ;;  %v5906_v52 = vld [vmem:[%s7194_s18 + $0x544] ss:$8 sps:$4 sm:$0xff]  }
 0x202   : > { %4553 = vmatpush1.bf16.msra.mxu1 %v5820_v53  ;;  %v5901_v53 = vld [vmem:[%s7194_s18 + $0x440] ss:$8 sps:$4 sm:$0xff]  }
 0x203   : > { %4554 = vmatprep.subr.bf16.mxu1 %v5828_v54  ;;  %v5909_v54 = vld [vmem:[%s7194_s18 + $0x434] ss:$8 sps:$4 sm:$0xff]  }
 0x204   : > { %4514 = vmatpush1.bf16.msra.mxu0 %v5823_v55  ;;  %v5904_v55 = vld [vmem:[%s7194_s18 + $0x540] ss:$8 sps:$4 sm:$0xff]  }
 0x205   : > { %4515 = vmatprep.subr.bf16.mxu0 %v5831_v56  ;;  %v5912_v56 = vld [vmem:[%s7194_s18 + $0x534] ss:$8 sps:$4 sm:$0xff]  }
 0x206   : > { %4555 = vmatpush1.bf16.msra.mxu1 %v5826_v58  ;;  %v5907_v58 = vld [vmem:[%s7194_s18 + $0x430] ss:$8 sps:$4 sm:$0xff]  }
 0x207   : > { %4556 = vmatprep.subr.bf16.mxu1 %v5834_v59  ;;  %v5915_v59 = vld [vmem:[%s7194_s18 + $0x424] ss:$8 sps:$4 sm:$0xff]  }
 0x208   : > { %4516 = vmatpush1.bf16.msra.mxu0 %v5829_v60  ;;  %v5910_v60 = vld [vmem:[%s7194_s18 + $0x530] ss:$8 sps:$4 sm:$0xff]  }
 0x209   : > { %4517 = vmatprep.subr.bf16.mxu0 %v5837_v61  ;;  %v5918_v61 = vld [vmem:[%s7194_s18 + $0x524] ss:$8 sps:$4 sm:$0xff]  }
 0x20a   : > { %4557 = vmatpush1.bf16.msra.mxu1 %v5832_v62  ;;  %v5913_v62 = vld [vmem:[%s7194_s18 + $0x420] ss:$8 sps:$4 sm:$0xff]  }
 0x20b   : > { %4558 = vmatprep.subr.bf16.mxu1 %v5840_v63  ;;  %v5921_v63 = vld [vmem:[%s7194_s18 + $0x414] ss:$8 sps:$4 sm:$0xff]  }
 0x20c   : > { %4518 = vmatpush2.bf16.msra.mxu0 %v5835_v0  ;;  %v5916_v0 = vld [vmem:[%s7194_s18 + $0x520] ss:$8 sps:$4 sm:$0xff]  }
 0x20d   : > { %4519 = vmatprep.subr.bf16.mxu0 %v5843_v1  ;;  %v5924_v1 = vld [vmem:[%s7194_s18 + $0x514] ss:$8 sps:$4 sm:$0xff]  }
 0x20e   : > { %4559 = vmatpush2.bf16.msra.mxu1 %v5838_v2  ;;  %v5919_v2 = vld [vmem:[%s7194_s18 + $0x410] ss:$8 sps:$4 sm:$0xff]  }
 0x20f   : > { %4560 = vmatprep.subr.bf16.mxu1 %v5846_v3  ;;  %v5927_v3 = vld [vmem:[%s7194_s18 + $0x404] ss:$8 sps:$4 sm:$0xff]  }
 0x210   : > { %4520 = vmatpush2.bf16.msra.mxu0 %v5841_v4  ;;  %v5922_v4 = vld [vmem:[%s7194_s18 + $0x510] ss:$8 sps:$4 sm:$0xff]  }
 0x211   : > { %4521 = vmatprep.subr.bf16.mxu0 %v5849_v5  ;;  %v5930_v5 = vld [vmem:[%s7194_s18 + $0x504] ss:$8 sps:$4 sm:$0xff]  }
 0x212   : > { %4561 = vmatpush2.bf16.msra.mxu1 %v5844_v6  ;;  %v5925_v6 = vld [vmem:[%s7194_s18 + $0x400] ss:$8 sps:$4 sm:$0xff]  }
 0x213   : > { %4562 = vmatprep.subr.bf16.mxu1 %v5852_v7  ;;  %v5933_v7 = vld [vmem:[%s7194_s18 + $0x4f4] ss:$8 sps:$4 sm:$0xff]  }
 0x214   : > { %4522 = vmatpush2.bf16.msra.mxu0 %v5847_v8  ;;  %v5928_v8 = vld [vmem:[%s7194_s18 + $0x500] ss:$8 sps:$4 sm:$0xff]  }
 0x215   : > { %4523 = vmatprep.subr.bf16.mxu0 %v5855_v9  ;;  %v5936_v9 = vld [vmem:[%s7194_s18 + $0x5f4] ss:$8 sps:$4 sm:$0xff]  }
 0x216   : > { %4563 = vmatpush2.bf16.msra.mxu1 %v5850_v10  ;;  %v5931_v10 = vld [vmem:[%s7194_s18 + $0x4f0] ss:$8 sps:$4 sm:$0xff]  }
 0x217   : > { %4564 = vmatprep.subr.bf16.mxu1 %v5858_v11  ;;  %v5939_v11 = vld [vmem:[%s7194_s18 + $0x4e4] ss:$8 sps:$4 sm:$0xff]  }
 0x218   : > { %4524 = vmatpush2.bf16.msra.mxu0 %v5853_v12  ;;  %v5934_v12 = vld [vmem:[%s7194_s18 + $0x5f0] ss:$8 sps:$4 sm:$0xff]  }
 0x219   : > { %4525 = vmatprep.subr.bf16.mxu0 %v5861_v13  ;;  %v5942_v13 = vld [vmem:[%s7194_s18 + $0x5e4] ss:$8 sps:$4 sm:$0xff]  }
 0x21a   : > { %4565 = vmatpush2.bf16.msra.mxu1 %v5856_v15  ;;  %v5937_v15 = vld [vmem:[%s7194_s18 + $0x4e0] ss:$8 sps:$4 sm:$0xff]  }
 0x21b   : > { %4566 = vmatprep.subr.bf16.mxu1 %v5864_v16  ;;  %v5945_v16 = vld [vmem:[%s7194_s18 + $0x4d4] ss:$8 sps:$4 sm:$0xff]  }
 0x21c   : > { %4526 = vmatpush2.bf16.msra.mxu0 %v5859_v17  ;;  %v5940_v17 = vld [vmem:[%s7194_s18 + $0x5e0] ss:$8 sps:$4 sm:$0xff]  }
 0x21d   : > { %4527 = vmatprep.subr.bf16.mxu0 %v5867_v18  ;;  %v5948_v18 = vld [vmem:[%s7194_s18 + $0x5d4] ss:$8 sps:$4 sm:$0xff]  }
 0x21e   : > { %4567 = vmatpush2.bf16.msra.mxu1 %v5862_v19  ;;  %v5943_v19 = vld [vmem:[%s7194_s18 + $0x4d0] ss:$8 sps:$4 sm:$0xff]  }
 0x21f   : > { %4568 = vmatprep.subr.bf16.mxu1 %v5870_v20  ;;  %v5951_v20 = vld [vmem:[%s7194_s18 + $0x4c4] ss:$8 sps:$4 sm:$0xff]  }
 0x220   : > { %4528 = vmatpush2.bf16.msra.mxu0 %v5865_v21  ;;  %v5946_v21 = vld [vmem:[%s7194_s18 + $0x5d0] ss:$8 sps:$4 sm:$0xff]  }
 0x221   : > { %4529 = vmatprep.subr.bf16.mxu0 %v5873_v22  ;;  %v5954_v22 = vld [vmem:[%s7194_s18 + $0x5c4] ss:$8 sps:$4 sm:$0xff]  }
 0x222   : > { %4569 = vmatpush2.bf16.msra.mxu1 %v5868_v23  ;;  %v5949_v23 = vld [vmem:[%s7194_s18 + $0x4c0] ss:$8 sps:$4 sm:$0xff]  }
 0x223   : > { %4570 = vmatprep.subr.bf16.mxu1 %v5876_v24  ;;  %v5957_v24 = vld [vmem:[%s7194_s18 + $0x4b4] ss:$8 sps:$4 sm:$0xff]  }
 0x224   : > { %4530 = vmatpush2.bf16.msra.mxu0 %v5871_v25  ;;  %v5952_v25 = vld [vmem:[%s7194_s18 + $0x5c0] ss:$8 sps:$4 sm:$0xff]  }
 0x225   : > { %4531 = vmatprep.subr.bf16.mxu0 %v5879_v26  ;;  %v5960_v26 = vld [vmem:[%s7194_s18 + $0x5b4] ss:$8 sps:$4 sm:$0xff]  }
 0x226   : > { %4571 = vmatpush2.bf16.msra.mxu1 %v5874_v27  ;;  %v5955_v27 = vld [vmem:[%s7194_s18 + $0x4b0] ss:$8 sps:$4 sm:$0xff]  }
 0x227   : > { %4572 = vmatprep.subr.bf16.mxu1 %v5882_v28  ;;  %v5963_v28 = vld [vmem:[%s7194_s18 + $0x4a4] ss:$8 sps:$4 sm:$0xff]  }
 0x228   : > { %4532 = vmatpush2.bf16.msra.mxu0 %v5877_v29  ;;  %v5958_v29 = vld [vmem:[%s7194_s18 + $0x5b0] ss:$8 sps:$4 sm:$0xff]  }
 0x229   : > { %4583 = vmatprep.subr.bf16.mxu0 %v5885_v31  ;;  %v5966_v31 = vld [vmem:[%s7194_s18 + $0x5a4] ss:$8 sps:$4 sm:$0xff]  }
 0x22a   : > { %4573 = vmatpush2.bf16.msra.mxu1 %v5880_v32  ;;  %v5961_v32 = vld [vmem:[%s7194_s18 + $0x4a0] ss:$8 sps:$4 sm:$0xff]  }
 0x22b   : > { %4534 = vmatmul.mubr.bf16.vlgmr.msra.gmra.mxu0 %v2300_v30  ;;  %4624 = vmatprep.subr.bf16.mxu1 %v5888_v33  ;;  %v2319_v30 = vcombine.high %v7352_v37, %v7352_v37  ;;  %v5969_v33 = vld [vmem:[%s7194_s18 + $0x494] ss:$8 sps:$4 sm:$0xff]   ;;  %v5967_v37 = vld [vmem:[%s7194_s18 + $0x490] ss:$8 sps:$4 sm:$0xff]  }
 0x22c   : > { %4584 = vmatpush1.bf16.msra.mxu0 %v5883_v34  ;;  %4615 = vmatprep.mubr.bf16.mxu0 %v2356_v45  ;;  %v5964_v34 = vld [vmem:[%s7194_s18 + $0x5a0] ss:$8 sps:$4 sm:$0xff]   ;;  %v5981_v45 = vld [vmem:[%s7194_s18 + $0x674] ss:$8 sps:$4 sm:$0xff]  }
 0x22d   : > { %4575 = vmatmul.mubr.bf16.vlgmr.msra.gmra.mxu1 %v2316_v35  ;;  %4585 = vmatprep.subr.bf16.mxu0 %v5891_v36  ;;  %v7417_v35 = vrot.slane %v2319_v30, %v7244_v57  ;;  %v5972_v36 = vld [vmem:[%s7194_s18 + $0x594] ss:$8 sps:$4 sm:$0xff]   ;;  %v6047_v30 = vld [vmem:[%s7194_s18 + $0x6c4] ss:$8 sps:$4 sm:$0xff]  }
 0x22e   : > { %4625 = vmatpush1.bf16.msra.mxu1 %v5886_v14  ;;  %4656 = vmatprep.mubr.bf16.mxu1 %v2366_v48  ;;  %v5975_v14 = vld [vmem:[%s7194_s18 + $0x484] ss:$8 sps:$4 sm:$0xff]   ;;  %v5984_v48 = vld [vmem:[%s7194_s18 + $0x774] ss:$8 sps:$4 sm:$0xff]  }
 0x22f   : > { %4626 = vmatprep.subr.bf16.mxu1 %v5894_v39  ;;  %v5970_v39 = vld [vmem:[%s7194_s18 + $0x590] ss:$8 sps:$4 sm:$0xff]  }
 0x230   : > { %4586 = vmatpush1.bf16.msra.mxu0 %v5889_v40  ;;  %v2335_v40 = vcombine.high %v7417_v35, %v7417_v35 }
 0x231   : > { %4587 = vmatprep.subr.bf16.mxu0 %v5897_v42  ;;  %v5973_v42 = vld [vmem:[%s7194_s18 + $0x480] ss:$8 sps:$4 sm:$0xff]  }
 0x232   : > { %4627 = vmatpush1.bf16.msra.mxu1 %v5892_v43  ;;  %v2342_v43 = vrot.slane %v7357_v38, %v7244_v57 }
 0x233   : > { %4628 = vmatprep.subr.bf16.mxu1 %v5900_v46  ;;  %v5976_v46 = vld [vmem:[%s7194_s18 + $0x580] ss:$8 sps:$4 sm:$0xff]  }
 0x234   : > { %4588 = vmatpush1.bf16.msra.mxu0 %v5895_v47  ;;  %v2363_v47 = vrot.slane %v2335_v40, %v7244_v57  ;;  %v6054_v40 = vld [vmem:[%s7194_s18 + $0x7b0] ss:$8 sps:$4 sm:$0xff]  }
 0x235   : > { %4589 = vmatprep.subr.bf16.mxu0 %v5903_v49  ;;  %v5979_v49 = vld [vmem:[%s7194_s18 + $0x670] ss:$8 sps:$4 sm:$0xff]  }
 0x236   : > { %4629 = vmatpush1.bf16.msra.mxu1 %v5898_v50  ;;  %v2364_v50 = vcombine.high %v2342_v43, %v2342_v43  ;;  %v2367_v38 = vcombine.high %v2363_v47, %v2363_v47 }
 0x237   : > { %4630 = vmatprep.subr.bf16.mxu1 %v5906_v52  ;;  %v5987_v52 = vld [vmem:[%s7194_s18 + $0x664] ss:$8 sps:$4 sm:$0xff]  }
 0x238   : > { %4590 = vmatpush1.bf16.msra.mxu0 %v5901_v53  ;;  %v5982_v53 = vld [vmem:[%s7194_s18 + $0x770] ss:$8 sps:$4 sm:$0xff]  }
 0x239   : > { %4591 = vmatprep.subr.bf16.mxu0 %v5909_v54  ;;  %v5990_v54 = vld [vmem:[%s7194_s18 + $0x764] ss:$8 sps:$4 sm:$0xff]  }
 0x23a   : > { %4631 = vmatpush1.bf16.msra.mxu1 %v5904_v55  ;;  %v5985_v55 = vld [vmem:[%s7194_s18 + $0x660] ss:$8 sps:$4 sm:$0xff]  }
 0x23b   : > { %4632 = vmatprep.subr.bf16.mxu1 %v5912_v56  ;;  %v5993_v56 = vld [vmem:[%s7194_s18 + $0x654] ss:$8 sps:$4 sm:$0xff]  }
 0x23c   : > { %4592 = vmatpush1.bf16.msra.mxu0 %v5907_v58  ;;  %v5988_v58 = vld [vmem:[%s7194_s18 + $0x760] ss:$8 sps:$4 sm:$0xff]  }
 0x23d   : > { %4593 = vmatprep.subr.bf16.mxu0 %v5915_v59  ;;  %v5996_v59 = vld [vmem:[%s7194_s18 + $0x754] ss:$8 sps:$4 sm:$0xff]  }
 0x23e   : > { %4633 = vmatpush1.bf16.msra.mxu1 %v5910_v60  ;;  %v5991_v60 = vld [vmem:[%s7194_s18 + $0x650] ss:$8 sps:$4 sm:$0xff]  }
 0x23f   : > { %4634 = vmatprep.subr.bf16.mxu1 %v5918_v61  ;;  %v5999_v61 = vld [vmem:[%s7194_s18 + $0x644] ss:$8 sps:$4 sm:$0xff]  }
 0x240   : > { %4594 = vmatpush1.bf16.msra.mxu0 %v5913_v62  ;;  %v5994_v62 = vld [vmem:[%s7194_s18 + $0x750] ss:$8 sps:$4 sm:$0xff]  }
 0x241   : > { %4595 = vmatprep.subr.bf16.mxu0 %v5921_v63  ;;  %v6002_v63 = vld [vmem:[%s7194_s18 + $0x744] ss:$8 sps:$4 sm:$0xff]  }
 0x242   : > { %4635 = vmatpush1.bf16.msra.mxu1 %v5916_v0  ;;  %v5997_v0 = vld [vmem:[%s7194_s18 + $0x640] ss:$8 sps:$4 sm:$0xff]  }
 0x243   : > { %4636 = vmatprep.subr.bf16.mxu1 %v5924_v1  ;;  %v6005_v1 = vld [vmem:[%s7194_s18 + $0x634] ss:$8 sps:$4 sm:$0xff]  }
 0x244   : > { %4596 = vmatpush1.bf16.msra.mxu0 %v5919_v2  ;;  %v6000_v2 = vld [vmem:[%s7194_s18 + $0x740] ss:$8 sps:$4 sm:$0xff]  }
 0x245   : > { %4597 = vmatprep.subr.bf16.mxu0 %v5927_v3  ;;  %v6008_v3 = vld [vmem:[%s7194_s18 + $0x734] ss:$8 sps:$4 sm:$0xff]  }
 0x246   : > { %4637 = vmatpush1.bf16.msra.mxu1 %v5922_v4  ;;  %v6003_v4 = vld [vmem:[%s7194_s18 + $0x630] ss:$8 sps:$4 sm:$0xff]  }
 0x247   : > { %4638 = vmatprep.subr.bf16.mxu1 %v5930_v5  ;;  %v6011_v5 = vld [vmem:[%s7194_s18 + $0x624] ss:$8 sps:$4 sm:$0xff]  }
 0x248   : > { %4598 = vmatpush1.bf16.msra.mxu0 %v5925_v6  ;;  %v6006_v6 = vld [vmem:[%s7194_s18 + $0x730] ss:$8 sps:$4 sm:$0xff]  }
 0x249   : > { %4599 = vmatprep.subr.bf16.mxu0 %v5933_v7  ;;  %v6014_v7 = vld [vmem:[%s7194_s18 + $0x724] ss:$8 sps:$4 sm:$0xff]  }
 0x24a   : > { %4639 = vmatpush1.bf16.msra.mxu1 %v5928_v8  ;;  %v6009_v8 = vld [vmem:[%s7194_s18 + $0x620] ss:$8 sps:$4 sm:$0xff]  }
 0x24b   : > { %4640 = vmatprep.subr.bf16.mxu1 %v5936_v9  ;;  %v6017_v9 = vld [vmem:[%s7194_s18 + $0x614] ss:$8 sps:$4 sm:$0xff]  }
 0x24c   : > { %4600 = vmatpush2.bf16.msra.mxu0 %v5931_v10  ;;  %v6012_v10 = vld [vmem:[%s7194_s18 + $0x720] ss:$8 sps:$4 sm:$0xff]  }
 0x24d   : > { %4601 = vmatprep.subr.bf16.mxu0 %v5939_v11  ;;  %v6020_v11 = vld [vmem:[%s7194_s18 + $0x714] ss:$8 sps:$4 sm:$0xff]  }
 0x24e   : > { %4641 = vmatpush2.bf16.msra.mxu1 %v5934_v12  ;;  %v6015_v12 = vld [vmem:[%s7194_s18 + $0x610] ss:$8 sps:$4 sm:$0xff]  }
 0x24f   : > { %4642 = vmatprep.subr.bf16.mxu1 %v5942_v13  ;;  %v6023_v13 = vld [vmem:[%s7194_s18 + $0x604] ss:$8 sps:$4 sm:$0xff]  }
 0x250   : > { %4602 = vmatpush2.bf16.msra.mxu0 %v5937_v15  ;;  %v6018_v15 = vld [vmem:[%s7194_s18 + $0x710] ss:$8 sps:$4 sm:$0xff]  }
 0x251   : > { %4603 = vmatprep.subr.bf16.mxu0 %v5945_v16  ;;  %v6026_v16 = vld [vmem:[%s7194_s18 + $0x704] ss:$8 sps:$4 sm:$0xff]  }
 0x252   : > { %4643 = vmatpush2.bf16.msra.mxu1 %v5940_v17  ;;  %v6021_v17 = vld [vmem:[%s7194_s18 + $0x600] ss:$8 sps:$4 sm:$0xff]  }
 0x253   : > { %4644 = vmatprep.subr.bf16.mxu1 %v5948_v18  ;;  %v6029_v18 = vld [vmem:[%s7194_s18 + $0x6f4] ss:$8 sps:$4 sm:$0xff]  }
 0x254   : > { %4604 = vmatpush2.bf16.msra.mxu0 %v5943_v19  ;;  %v6024_v19 = vld [vmem:[%s7194_s18 + $0x700] ss:$8 sps:$4 sm:$0xff]  }
 0x255   : > { %4605 = vmatprep.subr.bf16.mxu0 %v5951_v20  ;;  %v6032_v20 = vld [vmem:[%s7194_s18 + $0x7f4] ss:$8 sps:$4 sm:$0xff]  }
 0x256   : > { %4645 = vmatpush2.bf16.msra.mxu1 %v5946_v21  ;;  %v6027_v21 = vld [vmem:[%s7194_s18 + $0x6f0] ss:$8 sps:$4 sm:$0xff]  }
 0x257   : > { %4646 = vmatprep.subr.bf16.mxu1 %v5954_v22  ;;  %v6035_v22 = vld [vmem:[%s7194_s18 + $0x6e4] ss:$8 sps:$4 sm:$0xff]  }
 0x258   : > { %4606 = vmatpush2.bf16.msra.mxu0 %v5949_v23  ;;  %v6030_v23 = vld [vmem:[%s7194_s18 + $0x7f0] ss:$8 sps:$4 sm:$0xff]  }
 0x259   : > { %4607 = vmatprep.subr.bf16.mxu0 %v5957_v24  ;;  %v6038_v24 = vld [vmem:[%s7194_s18 + $0x7e4] ss:$8 sps:$4 sm:$0xff]  }
 0x25a   : > { %4647 = vmatpush2.bf16.msra.mxu1 %v5952_v25  ;;  %v6033_v25 = vld [vmem:[%s7194_s18 + $0x6e0] ss:$8 sps:$4 sm:$0xff]  }
 0x25b   : > { %4648 = vmatprep.subr.bf16.mxu1 %v5960_v26  ;;  %v6041_v26 = vld [vmem:[%s7194_s18 + $0x6d4] ss:$8 sps:$4 sm:$0xff]  }
 0x25c   : > { %4608 = vmatpush2.bf16.msra.mxu0 %v5955_v27  ;;  %v6036_v27 = vld [vmem:[%s7194_s18 + $0x7e0] ss:$8 sps:$4 sm:$0xff]  }
 0x25d   : > { %4609 = vmatprep.subr.bf16.mxu0 %v5963_v28  ;;  %v6044_v28 = vld [vmem:[%s7194_s18 + $0x7d4] ss:$8 sps:$4 sm:$0xff]  }
 0x25e   : > { %4649 = vmatpush2.bf16.msra.mxu1 %v5958_v29  ;;  %v6039_v29 = vld [vmem:[%s7194_s18 + $0x6d0] ss:$8 sps:$4 sm:$0xff]  }
 0x25f   : > { %4650 = vmatprep.subr.bf16.mxu1 %v5966_v31  ;;  %v6042_v31 = vld [vmem:[%s7194_s18 + $0x7d0] ss:$8 sps:$4 sm:$0xff]  }
 0x260   : > { %4610 = vmatpush2.bf16.msra.mxu0 %v5961_v32  ;;  %v6050_v32 = vld [vmem:[%s7194_s18 + $0x7c4] ss:$8 sps:$4 sm:$0xff]  }
 0x261   : > { %4611 = vmatprep.subr.bf16.mxu0 %v5969_v33  ;;  %v6045_v33 = vld [vmem:[%s7194_s18 + $0x6c0] ss:$8 sps:$4 sm:$0xff]  }
 0x262   : > { %4651 = vmatpush2.bf16.msra.mxu1 %v5964_v34  ;;  %v6053_v34 = vld [vmem:[%s7194_s18 + $0x6b4] ss:$8 sps:$4 sm:$0xff]  }
 0x263   : > { %4652 = vmatprep.subr.bf16.mxu1 %v5972_v36  ;;  %v6048_v36 = vld [vmem:[%s7194_s18 + $0x7c0] ss:$8 sps:$4 sm:$0xff]  }
 0x264   : > { %4612 = vmatpush2.bf16.msra.mxu0 %v5967_v37  ;;  %v6056_v37 = vld [vmem:[%s7194_s18 + $0x7b4] ss:$8 sps:$4 sm:$0xff]  }
 0x265   : > { %4613 = vmatprep.subr.bf16.mxu0 %v5975_v14  ;;  %v6051_v14 = vld [vmem:[%s7194_s18 + $0x6b0] ss:$8 sps:$4 sm:$0xff]  }
 0x266   : > { %4653 = vmatpush2.bf16.msra.mxu1 %v5970_v39  ;;  %v6059_v39 = vld [vmem:[%s7194_s18 + $0x6a4] ss:$8 sps:$4 sm:$0xff]  }
 0x267   : > { %4654 = vmatprep.subr.bf16.mxu1 %v5978_v41  ;;  %v6062_v41 = vld [vmem:[%s7194_s18 + $0x7a4] ss:$8 sps:$4 sm:$0xff]  }
 0x268   : > { %4614 = vmatpush2.bf16.msra.mxu0 %v5973_v42  ;;  %v7488_v42 = vld [vmem:[%s7714_s0 + $0x10] sm:$0xff] }
 0x269   : > { %4665 = vmatprep.subr.bf16.mxu0 %v5981_v45  ;;  %v6065_v45 = vld [vmem:[%s7194_s18 + $0x694] ss:$8 sps:$4 sm:$0xff]  }
 0x26a   : > { %4655 = vmatpush2.bf16.msra.mxu1 %v5976_v46  ;;  %v6060_v46 = vld [vmem:[%s7194_s18 + $0x7a0] ss:$8 sps:$4 sm:$0xff]  }
 0x26b   : > { %4616 = vmatmul.mubr.bf16.vlgmr.msra.gmra.mxu0 %v2342_v43  ;;  %4706 = vmatprep.subr.bf16.mxu1 %v5984_v48  ;;  %v6057_v43 = vld [vmem:[%s7194_s18 + $0x6a0] ss:$8 sps:$4 sm:$0xff]   ;;  %v6068_v48 = vld [vmem:[%s7194_s18 + $0x794] ss:$8 sps:$4 sm:$0xff]  }
 0x26c   : > { %4666 = vmatpush1.bf16.msra.mxu0 %v5979_v49  ;;  %4697 = vmatprep.mubr.bf16.mxu0 %v2363_v47  ;;  %v7495_v47 = vrot.slane %v7488_v42, %v7244_v57  ;;  %v6063_v49 = vld [vmem:[%s7194_s18 + $0x690] ss:$8 sps:$4 sm:$0xff]  }
 0x26d   : > { %4657 = vmatmul.mubr.bf16.vlgmr.msra.gmra.mxu1 %v2364_v50  ;;  %4667 = vmatprep.subr.bf16.mxu0 %v5987_v52  ;;  %v6071_v50 = vld [vmem:[%s7194_s18 + $0x684] ss:$8 sps:$4 sm:$0xff]   ;;  %v6066_v52 = vld [vmem:[%s7194_s18 + $0x790] ss:$8 sps:$4 sm:$0xff]  }
 0x26e   : > { %4707 = vmatpush1.bf16.msra.mxu1 %v5982_v53  ;;  %4738 = vmatprep.mubr.bf16.mxu1 %v2367_v38  ;;  %v2383_v53 = vcombine.high %v7495_v47, %v7495_v47  ;;  %v6074_v38 = vld [vmem:[%s7194_s18 + $0x784] ss:$8 sps:$4 sm:$0xff]  }
 0x26f   : > { %4708 = vmatprep.subr.bf16.mxu1 %v5990_v54  ;;  %v6069_v54 = vld [vmem:[%s7194_s18 + $0x680] ss:$8 sps:$4 sm:$0xff]  }
 0x270   : > { %4668 = vmatpush1.bf16.msra.mxu0 %v5985_v55  ;;  %v2254_v55 = vld [vmem:[%s1844_s14] sm:$0x3] }
 0x271   : > { %4669 = vmatprep.subr.bf16.mxu0 %v5993_v56  ;;  %v2258_v56 = vsub.s32 0, %v7237_v51 }
 0x272   : > { %4709 = vmatpush1.bf16.msra.mxu1 %v5988_v58  ;;  %v2349_v58 = vrot.slane %v7417_v35, %v7244_v57 }
 0x273   : > { %4710 = vmatprep.subr.bf16.mxu1 %v5996_v59  ;;  %v6078_v59 = vld [vmem:[%s7194_s18 + $0x874] ss:$8 sps:$4 sm:$0xff]  }
 0x274   : > { %4670 = vmatpush1.bf16.msra.mxu0 %v5991_v60  ;;  %v6072_v60 = vld [vmem:[%s7194_s18 + $0x780] ss:$8 sps:$4 sm:$0xff]  }
 0x275   : > { %4671 = vmatprep.subr.bf16.mxu0 %v5999_v61  ;;  %v2262_v61 = vsub.s32 1, %v7237_v51  ;;  %v6082_v51 = vld [vmem:[%s7194_s18 + $0x860] ss:$8 sps:$4 sm:$0xff]  }
 0x276   : > { %4711 = vmatpush1.bf16.msra.mxu1 %v5994_v62  ;;  %v2405_v62 = vrot.slane %v2383_v53, %v7244_v57  ;;  %v6132_v53 = vld [vmem:[%s7194_s18 + $0x8e4] ss:$8 sps:$4 sm:$0xff]  }
 0x277   : > { %4712 = vmatprep.subr.bf16.mxu1 %v6002_v63  ;;  %v6081_v63 = vld [vmem:[%s7194_s18 + $0x974] ss:$8 sps:$4 sm:$0xff]   ;;  %v2263_v35 = vrot.slane %v2254_v55, %v2262_v61  ;;  %v6144_v61 = vld [vmem:[%s7194_s18 + $0x8c4] ss:$8 sps:$4 sm:$0xff]  }
 0x278   : > { %4672 = vmatpush1.bf16.msra.mxu0 %v5997_v0  ;;  %v2259_v0 = vrot.slane %v2254_v55, %v2258_v56  ;;  %v6130_v55 = vld [vmem:[%s7194_s18 + $0x8e0] ss:$8 sps:$4 sm:$0xff]   ;;  %v6138_v56 = vld [vmem:[%s7194_s18 + $0x8d4] ss:$8 sps:$4 sm:$0xff]  }
 0x279   : > { %4673 = vmatprep.subr.bf16.mxu0 %v6005_v1  ;;  %v6076_v1 = vld [vmem:[%s7194_s18 + $0x870] ss:$8 sps:$4 sm:$0xff]  }
 0x27a   : > { %4713 = vmatpush1.bf16.msra.mxu1 %v6000_v2  ;;  %v2365_v2 = vcombine.high %v2349_v58, %v2349_v58 }
 0x27b   : > { %4714 = vmatprep.subr.bf16.mxu1 %v6008_v3  ;;  %v6084_v3 = vld [vmem:[%s7194_s18 + $0x864] ss:$8 sps:$4 sm:$0xff]  }
 0x27c   : > { %4674 = vmatpush1.bf16.msra.mxu0 %v6003_v4  ;;  %v6079_v4 = vld [vmem:[%s7194_s18 + $0x970] ss:$8 sps:$4 sm:$0xff]  }
 0x27d   : > { %4675 = vmatprep.subr.bf16.mxu0 %v6011_v5  ;;  %v2415_v5 = vcombine.high %v2405_v62, %v2405_v62 }
 0x27e   : > { %4715 = vmatpush1.bf16.msra.mxu1 %v6006_v6 }
 0x27f   : > { %4716 = vmatprep.subr.bf16.mxu1 %v6014_v7  ;;  %v6087_v7 = vld [vmem:[%s7194_s18 + $0x964] ss:$8 sps:$4 sm:$0xff]  }
 0x280   : > { %4676 = vmatpush1.bf16.msra.mxu0 %v6009_v8 }
 0x281   : > { %4677 = vmatprep.subr.bf16.mxu0 %v6017_v9  ;;  %v6085_v9 = vld [vmem:[%s7194_s18 + $0x960] ss:$8 sps:$4 sm:$0xff]  }
 0x282   : > { %4717 = vmatpush1.bf16.msra.mxu1 %v6012_v10 }
 0x283   : > { %4718 = vmatprep.subr.bf16.mxu1 %v6020_v11 }
 0x284   : > { %4678 = vmatpush1.bf16.msra.mxu0 %v6015_v12  ;;  %v6090_v12 = vld [vmem:[%s7194_s18 + $0x854] ss:$8 sps:$4 sm:$0xff]  }
 0x285   : > { %4679 = vmatprep.subr.bf16.mxu0 %v6023_v13 }
 0x286   : > { %4719 = vmatpush1.bf16.msra.mxu1 %v6018_v15 }
 0x287   : > { %4720 = vmatprep.subr.bf16.mxu1 %v6026_v16  ;;  %v6088_v16 = vld [vmem:[%s7194_s18 + $0x850] ss:$8 sps:$4 sm:$0xff]  }
 0x288   : > { %4680 = vmatpush1.bf16.msra.mxu0 %v6021_v17  ;;  %v6093_v17 = vld [vmem:[%s7194_s18 + $0x954] ss:$8 sps:$4 sm:$0xff]  }
 0x289   : > { %4681 = vmatprep.subr.bf16.mxu0 %v6029_v18 }
 0x28a   : > { %4721 = vmatpush1.bf16.msra.mxu1 %v6024_v19 }
 0x28b   : > { %4722 = vmatprep.subr.bf16.mxu1 %v6032_v20 }
 0x28c   : > { %4682 = vmatpush2.bf16.msra.mxu0 %v6027_v21  ;;  %v6091_v21 = vld [vmem:[%s7194_s18 + $0x950] ss:$8 sps:$4 sm:$0xff]  }
 0x28d   : > { %4683 = vmatprep.subr.bf16.mxu0 %v6035_v22 }
 0x28e   : > { %4723 = vmatpush2.bf16.msra.mxu1 %v6030_v23  ;;  %v6096_v23 = vld [vmem:[%s7194_s18 + $0x844] ss:$8 sps:$4 sm:$0xff]  }
 0x28f   : > { %4724 = vmatprep.subr.bf16.mxu1 %v6038_v24 }
 0x290   : > { %4684 = vmatpush2.bf16.msra.mxu0 %v6033_v25  ;;  %v6099_v25 = vld [vmem:[%s7194_s18 + $0x944] ss:$8 sps:$4 sm:$0xff]  }
 0x291   : > { %4685 = vmatprep.subr.bf16.mxu0 %v6041_v26  ;;  %v6094_v26 = vld [vmem:[%s7194_s18 + $0x840] ss:$8 sps:$4 sm:$0xff]  }
 0x292   : > { %4725 = vmatpush2.bf16.msra.mxu1 %v6036_v27 }
 0x293   : > { %4726 = vmatprep.subr.bf16.mxu1 %v6044_v28  ;;  %v6097_v28 = vld [vmem:[%s7194_s18 + $0x940] ss:$8 sps:$4 sm:$0xff]  }
 0x294   : > { %4686 = vmatpush2.bf16.msra.mxu0 %v6039_v29  ;;  %v6102_v29 = vld [vmem:[%s7194_s18 + $0x834] ss:$8 sps:$4 sm:$0xff]  }
 0x295   : > { %4687 = vmatprep.subr.bf16.mxu0 %v6047_v30  ;;  %v6105_v30 = vld [vmem:[%s7194_s18 + $0x934] ss:$8 sps:$4 sm:$0xff]  }
 0x296   : > { %4727 = vmatpush2.bf16.msra.mxu1 %v6042_v31  ;;  %v6100_v31 = vld [vmem:[%s7194_s18 + $0x830] ss:$8 sps:$4 sm:$0xff]  }
 0x297   : > { %4728 = vmatprep.subr.bf16.mxu1 %v6050_v32  ;;  %v6103_v32 = vld [vmem:[%s7194_s18 + $0x930] ss:$8 sps:$4 sm:$0xff]  }
 0x298   : > { %4688 = vmatpush2.bf16.msra.mxu0 %v6045_v33  ;;  %v6108_v33 = vld [vmem:[%s7194_s18 + $0x824] ss:$8 sps:$4 sm:$0xff]  }
 0x299   : > { %4689 = vmatprep.subr.bf16.mxu0 %v6053_v34  ;;  %v6111_v34 = vld [vmem:[%s7194_s18 + $0x924] ss:$8 sps:$4 sm:$0xff]  }
 0x29a   : > { %4729 = vmatpush2.bf16.msra.mxu1 %v6048_v36  ;;  %v6106_v36 = vld [vmem:[%s7194_s18 + $0x820] ss:$8 sps:$4 sm:$0xff]  }
 0x29b   : > { %4730 = vmatprep.subr.bf16.mxu1 %v6056_v37  ;;  %v6114_v37 = vld [vmem:[%s7194_s18 + $0x814] ss:$8 sps:$4 sm:$0xff]  }
 0x29c   : > { %4690 = vmatpush2.bf16.msra.mxu0 %v6051_v14  ;;  %v6109_v14 = vld [vmem:[%s7194_s18 + $0x920] ss:$8 sps:$4 sm:$0xff]  }
 0x29d   : > { %4691 = vmatprep.subr.bf16.mxu0 %v6059_v39  ;;  %v6117_v39 = vld [vmem:[%s7194_s18 + $0x914] ss:$8 sps:$4 sm:$0xff]  }
 0x29e   : > { %4731 = vmatpush2.bf16.msra.mxu1 %v6054_v40  ;;  %v6112_v40 = vld [vmem:[%s7194_s18 + $0x810] ss:$8 sps:$4 sm:$0xff]  }
 0x29f   : > { %4732 = vmatprep.subr.bf16.mxu1 %v6062_v41  ;;  %v6120_v41 = vld [vmem:[%s7194_s18 + $0x804] ss:$8 sps:$4 sm:$0xff]  }
 0x2a0   : > { %4692 = vmatpush2.bf16.msra.mxu0 %v6057_v43  ;;  %v6115_v43 = vld [vmem:[%s7194_s18 + $0x910] ss:$8 sps:$4 sm:$0xff]  }
 0x2a1   : > { %4693 = vmatprep.subr.bf16.mxu0 %v6065_v45  ;;  %v6123_v45 = vld [vmem:[%s7194_s18 + $0x904] ss:$8 sps:$4 sm:$0xff]  }
 0x2a2   : > { %4733 = vmatpush2.bf16.msra.mxu1 %v6060_v46  ;;  %v6118_v46 = vld [vmem:[%s7194_s18 + $0x800] ss:$8 sps:$4 sm:$0xff]  }
 0x2a3   : > { %4734 = vmatprep.subr.bf16.mxu1 %v6068_v48  ;;  %v6126_v48 = vld [vmem:[%s7194_s18 + $0x8f4] ss:$8 sps:$4 sm:$0xff]  }
 0x2a4   : > { %4694 = vmatpush2.bf16.msra.mxu0 %v6063_v49  ;;  %v6121_v49 = vld [vmem:[%s7194_s18 + $0x900] ss:$8 sps:$4 sm:$0xff]  }
 0x2a5   : > { %4695 = vmatprep.subr.bf16.mxu0 %v6071_v50  ;;  %v6129_v50 = vld [vmem:[%s7194_s18 + $0x9f4] ss:$8 sps:$4 sm:$0xff]  }
 0x2a6   : > { %4735 = vmatpush2.bf16.msra.mxu1 %v6066_v52  ;;  %v6124_v52 = vld [vmem:[%s7194_s18 + $0x8f0] ss:$8 sps:$4 sm:$0xff]  }
 0x2a7   : > { %4736 = vmatprep.subr.bf16.mxu1 %v6074_v38  ;;  %v6127_v38 = vld [vmem:[%s7194_s18 + $0x9f0] ss:$8 sps:$4 sm:$0xff]  }
 0x2a8   : > { %4696 = vmatpush2.bf16.msra.mxu0 %v6069_v54  ;;  %v6135_v54 = vld [vmem:[%s7194_s18 + $0x9e4] ss:$8 sps:$4 sm:$0xff]  }
 0x2a9   : > { %4747 = vmatprep.subr.bf16.mxu0 %v6078_v59  ;;  %v6141_v59 = vld [vmem:[%s7194_s18 + $0x9d4] ss:$8 sps:$4 sm:$0xff]  }
 0x2aa   : > { %4737 = vmatpush2.bf16.msra.mxu1 %v6072_v60  ;;  %v6136_v60 = vld [vmem:[%s7194_s18 + $0x8d0] ss:$8 sps:$4 sm:$0xff]  }
 0x2ab   : > { %v4453_v6 = vpop.f32.mrf.mxu0  ;;  %4698 = vmatmul.mubr.bf16.vlgmr.msra.gmra.mxu0 %v2349_v58  ;;  %4788 = vmatprep.subr.bf16.mxu1 %v6081_v63  ;;  %v6133_v58 = vld [vmem:[%s7194_s18 + $0x9e0] ss:$8 sps:$4 sm:$0xff]   ;;  %v6147_v63 = vld [vmem:[%s7194_s18 + $0x9c4] ss:$8 sps:$4 sm:$0xff]  }
 0x2ac   : > { %v4454_v8 = vadd.f32 %v4453_v6, %v2259_v0  ;;  %4748 = vmatpush1.bf16.msra.mxu0 %v6076_v1  ;;  %4779 = vmatprep.mubr.bf16.mxu0 %v2405_v62  ;;  %v6139_v62 = vld [vmem:[%s7194_s18 + $0x9d0] ss:$8 sps:$4 sm:$0xff]   ;;  %v6142_v0 = vld [vmem:[%s7194_s18 + $0x8c0] ss:$8 sps:$4 sm:$0xff]   ;;  %v6150_v1 = vld [vmem:[%s7194_s18 + $0x8b4] ss:$8 sps:$4 sm:$0xff]   ;;  %v2368_v6 = vcombine.high %v7488_v42, %v7488_v42 }
 0x2ad   : > { %v4455_v10 = vpop.f32.mrf.mxu0  ;;  %v4494_v11 = vpop.f32.mrf.mxu1  ;;  %4739 = vmatmul.mubr.bf16.vlgmr.msra.gmra.mxu1 %v2365_v2  ;;  %4749 = vmatprep.subr.bf16.mxu0 %v6084_v3  ;;  %v6145_v2 = vld [vmem:[%s7194_s18 + $0x9c0] ss:$8 sps:$4 sm:$0xff]   ;;  %v6153_v3 = vld [vmem:[%s7194_s18 + $0x9b4] ss:$8 sps:$4 sm:$0xff]   ;;  %v6160_v42 = vld [vmem:[%s7194_s18 + $0x890] ss:$8 sps:$4 sm:$0xff]  }
 0x2ae   : > { %v4456_v13 = vadd.f32 %v4455_v10, %v2263_v35  ;;  %v7525_v15 = vadd.f32 %v4494_v11, %v4454_v8  ;;  %4789 = vmatpush1.bf16.msra.mxu1 %v6079_v4  ;;  %4820 = vmatprep.mubr.bf16.mxu1 %v2415_v5  ;;  %v6148_v35 = vld [vmem:[%s7194_s18 + $0x8b0] ss:$8 sps:$4 sm:$0xff]   ;;  %v6156_v4 = vld [vmem:[%s7194_s18 + $0x8a4] ss:$8 sps:$4 sm:$0xff]   ;;  %v6162_v8 = vld [vmem:[%s7194_s18 + $0x894] ss:$8 sps:$4 sm:$0xff]   ;;  %v7580_v10 = vrot.slane %v2368_v6, %v7244_v57 }
 0x2af   : > { %v4457_v18 = vpop.f32.mrf.mxu0  ;;  %v4496_v19 = vpop.f32.mrf.mxu1  ;;  %4790 = vmatprep.subr.bf16.mxu1 %v6087_v7  ;;  %v6151_v5 = vld [vmem:[%s7194_s18 + $0x9b0] ss:$8 sps:$4 sm:$0xff]   ;;  %v6154_v7 = vld [vmem:[%s7194_s18 + $0x8a0] ss:$8 sps:$4 sm:$0xff]   ;;  %v6165_v11 = vld [vmem:[%s7194_s18 + $0x994] ss:$8 sps:$4 sm:$0xff]  }
 0x2b0   : > { %v7529_v20 = vadd.f32 %v4496_v19, %v4456_v13  ;;  %4750 = vmatpush1.bf16.msra.mxu0 %v6082_v51  ;;  %v6159_v51 = vld [vmem:[%s7194_s18 + $0x9a4] ss:$8 sps:$4 sm:$0xff]   ;;  %v6163_v13 = vld [vmem:[%s7194_s18 + $0x990] ss:$8 sps:$4 sm:$0xff]   ;;  %v6166_v18 = vld [vmem:[%s7194_s18 + $0x880] ss:$8 sps:$4 sm:$0xff]   ;;  %v2391_v19 = vrot.slane %v7495_v47, %v7244_v57 }
 0x2b1   : > { %v4458_v22 = vpop.f32.mrf.mxu0  ;;  %4751 = vmatprep.subr.bf16.mxu0 %v6090_v12  ;;  %v4498_v24 = vpop.f32.mrf.mxu1  ;;  %v6168_v12 = vld [vmem:[%s7194_s18 + $0x884] ss:$8 sps:$4 sm:$0xff]   ;;  %v6217_v6 = vld [vmem:[%s7194_s18 + $0xb00] ss:$8 sps:$4 sm:$0xff]  }
 0x2b2   : > { %4791 = vmatpush1.bf16.msra.mxu1 %v6085_v9  ;;  %v6157_v9 = vld [vmem:[%s7194_s18 + $0x9a0] ss:$8 sps:$4 sm:$0xff]   ;;  %v6177_v24 = vld [vmem:[%s7194_s18 + $0xb74] ss:$8 sps:$4 sm:$0xff]   ;;  %v6183_v47 = vld [vmem:[%s7194_s18 + $0xb64] ss:$8 sps:$4 sm:$0xff]  }
 0x2b3   : > { %4792 = vmatprep.subr.bf16.mxu1 %v6093_v17  ;;  %v4499_v27 = vpop.f32.mrf.mxu1  ;;  %v6171_v17 = vld [vmem:[%s7194_s18 + $0x984] ss:$8 sps:$4 sm:$0xff]   ;;  %v6169_v22 = vld [vmem:[%s7194_s18 + $0x980] ss:$8 sps:$4 sm:$0xff]  }
 0x2b4   : > { %4752 = vmatpush1.bf16.msra.mxu0 %v6088_v16  ;;  %v2384_v16 = vcombine.high %v7580_v10, %v7580_v10  ;;  %v6180_v27 = vld [vmem:[%s7194_s18 + $0xa64] ss:$8 sps:$4 sm:$0xff]  }
 0x2b5   : > { %4753 = vmatprep.subr.bf16.mxu0 %v6096_v23 }
 0x2b6   : > { %4793 = vmatpush1.bf16.msra.mxu1 %v6091_v21  ;;  %v6174_v21 = vld [vmem:[%s7194_s18 + $0xa74] ss:$8 sps:$4 sm:$0xff]   ;;  %v2412_v23 = vrot.slane %v2384_v16, %v7244_v57 }
 0x2b7   : > { %4794 = vmatprep.subr.bf16.mxu1 %v6099_v25  ;;  %v6172_v25 = vld [vmem:[%s7194_s18 + $0xa70] ss:$8 sps:$4 sm:$0xff]   ;;  %v6237_v16 = vld [vmem:[%s7194_s18 + $0xbd4] ss:$8 sps:$4 sm:$0xff]  }
 0x2b8   : > { %4754 = vmatpush1.bf16.msra.mxu0 %v6094_v26  ;;  %v2413_v26 = vcombine.high %v2391_v19, %v2391_v19 }
 0x2b9   : > { %4755 = vmatprep.subr.bf16.mxu0 %v6102_v29  ;;  %v2416_v29 = vcombine.high %v2412_v23, %v2412_v23 }
 0x2ba   : > { %4795 = vmatpush1.bf16.msra.mxu1 %v6097_v28  ;;  %v6175_v28 = vld [vmem:[%s7194_s18 + $0xb70] ss:$8 sps:$4 sm:$0xff]  }
 0x2bb   : > { %4796 = vmatprep.subr.bf16.mxu1 %v6105_v30 }
 0x2bc   : > { %4756 = vmatpush1.bf16.msra.mxu0 %v6100_v31 }
 0x2bd   : > { %4757 = vmatprep.subr.bf16.mxu0 %v6108_v33 }
 0x2be   : > { %4797 = vmatpush1.bf16.msra.mxu1 %v6103_v32  ;;  %v6178_v32 = vld [vmem:[%s7194_s18 + $0xa60] ss:$8 sps:$4 sm:$0xff]  }
 0x2bf   : > { %4798 = vmatprep.subr.bf16.mxu1 %v6111_v34 }
 0x2c0   : > { %4758 = vmatpush1.bf16.msra.mxu0 %v6106_v36  ;;  %v6186_v36 = vld [vmem:[%s7194_s18 + $0xa54] ss:$8 sps:$4 sm:$0xff]  }
 0x2c1   : > { %4759 = vmatprep.subr.bf16.mxu0 %v6114_v37 }
 0x2c2   : > { %4799 = vmatpush1.bf16.msra.mxu1 %v6109_v14 }
 0x2c3   : > { %4800 = vmatprep.subr.bf16.mxu1 %v6117_v39  ;;  %v6181_v39 = vld [vmem:[%s7194_s18 + $0xb60] ss:$8 sps:$4 sm:$0xff]  }
 0x2c4   : > { %4760 = vmatpush1.bf16.msra.mxu0 %v6112_v40 }
 0x2c5   : > { %4761 = vmatprep.subr.bf16.mxu0 %v6120_v41  ;;  %v6189_v41 = vld [vmem:[%s7194_s18 + $0xb54] ss:$8 sps:$4 sm:$0xff]  }
 0x2c6   : > { %4801 = vmatpush1.bf16.msra.mxu1 %v6115_v43 }
 0x2c7   : > { %4802 = vmatprep.subr.bf16.mxu1 %v6123_v45  ;;  %v6184_v45 = vld [vmem:[%s7194_s18 + $0xa50] ss:$8 sps:$4 sm:$0xff]  }
 0x2c8   : > { %4762 = vmatpush1.bf16.msra.mxu0 %v6118_v46 }
 0x2c9   : > { %4763 = vmatprep.subr.bf16.mxu0 %v6126_v48 }
 0x2ca   : > { %4803 = vmatpush1.bf16.msra.mxu1 %v6121_v49  ;;  %v6187_v49 = vld [vmem:[%s7194_s18 + $0xb50] ss:$8 sps:$4 sm:$0xff]  }
 0x2cb   : > { %4804 = vmatprep.subr.bf16.mxu1 %v6129_v50  ;;  %v6195_v50 = vld [vmem:[%s7194_s18 + $0xb44] ss:$8 sps:$4 sm:$0xff]  }
 0x2cc   : > { %4764 = vmatpush2.bf16.msra.mxu0 %v6124_v52 }
 0x2cd   : > { %4765 = vmatprep.subr.bf16.mxu0 %v6132_v53  ;;  %v6190_v53 = vld [vmem:[%s7194_s18 + $0xa40] ss:$8 sps:$4 sm:$0xff]  }
 0x2ce   : > { %4805 = vmatpush2.bf16.msra.mxu1 %v6127_v38  ;;  %v6198_v38 = vld [vmem:[%s7194_s18 + $0xa34] ss:$8 sps:$4 sm:$0xff]  }
 0x2cf   : > { %4806 = vmatprep.subr.bf16.mxu1 %v6135_v54  ;;  %v6193_v54 = vld [vmem:[%s7194_s18 + $0xb40] ss:$8 sps:$4 sm:$0xff]  }
 0x2d0   : > { %4766 = vmatpush2.bf16.msra.mxu0 %v6130_v55  ;;  %v6201_v55 = vld [vmem:[%s7194_s18 + $0xb34] ss:$8 sps:$4 sm:$0xff]  }
 0x2d1   : > { %4767 = vmatprep.subr.bf16.mxu0 %v6138_v56  ;;  %v6196_v56 = vld [vmem:[%s7194_s18 + $0xa30] ss:$8 sps:$4 sm:$0xff]  }
 0x2d2   : > { %4807 = vmatpush2.bf16.msra.mxu1 %v6133_v58  ;;  %v6204_v58 = vld [vmem:[%s7194_s18 + $0xa24] ss:$8 sps:$4 sm:$0xff]  }
 0x2d3   : > { %4808 = vmatprep.subr.bf16.mxu1 %v6141_v59  ;;  %v6199_v59 = vld [vmem:[%s7194_s18 + $0xb30] ss:$8 sps:$4 sm:$0xff]  }
 0x2d4   : > { %4768 = vmatpush2.bf16.msra.mxu0 %v6136_v60  ;;  %v6207_v60 = vld [vmem:[%s7194_s18 + $0xb24] ss:$8 sps:$4 sm:$0xff]  }
 0x2d5   : > { %4769 = vmatprep.subr.bf16.mxu0 %v6144_v61  ;;  %v6202_v61 = vld [vmem:[%s7194_s18 + $0xa20] ss:$8 sps:$4 sm:$0xff]  }
 0x2d6   : > { %4809 = vmatpush2.bf16.msra.mxu1 %v6139_v62  ;;  %v6210_v62 = vld [vmem:[%s7194_s18 + $0xa14] ss:$8 sps:$4 sm:$0xff]  }
 0x2d7   : > { %4810 = vmatprep.subr.bf16.mxu1 %v6147_v63  ;;  %v6205_v63 = vld [vmem:[%s7194_s18 + $0xb20] ss:$8 sps:$4 sm:$0xff]  }
 0x2d8   : > { %4770 = vmatpush2.bf16.msra.mxu0 %v6142_v0  ;;  %v6213_v0 = vld [vmem:[%s7194_s18 + $0xb14] ss:$8 sps:$4 sm:$0xff]  }
 0x2d9   : > { %4771 = vmatprep.subr.bf16.mxu0 %v6150_v1  ;;  %v6208_v1 = vld [vmem:[%s7194_s18 + $0xa10] ss:$8 sps:$4 sm:$0xff]  }
 0x2da   : > { %4811 = vmatpush2.bf16.msra.mxu1 %v6145_v2  ;;  %v6216_v2 = vld [vmem:[%s7194_s18 + $0xa04] ss:$8 sps:$4 sm:$0xff]  }
 0x2db   : > { %4812 = vmatprep.subr.bf16.mxu1 %v6153_v3  ;;  %v6211_v3 = vld [vmem:[%s7194_s18 + $0xb10] ss:$8 sps:$4 sm:$0xff]  }
 0x2dc   : > { %4772 = vmatpush2.bf16.msra.mxu0 %v6148_v35  ;;  %v6219_v35 = vld [vmem:[%s7194_s18 + $0xb04] ss:$8 sps:$4 sm:$0xff]  }
 0x2dd   : > { %4773 = vmatprep.subr.bf16.mxu0 %v6156_v4  ;;  %v6214_v4 = vld [vmem:[%s7194_s18 + $0xa00] ss:$8 sps:$4 sm:$0xff]  }
 0x2de   : > { %4813 = vmatpush2.bf16.msra.mxu1 %v6151_v5  ;;  %v6222_v5 = vld [vmem:[%s7194_s18 + $0xaf4] ss:$8 sps:$4 sm:$0xff]  }
 0x2df   : > { %4814 = vmatprep.subr.bf16.mxu1 %v6159_v51  ;;  %v6225_v51 = vld [vmem:[%s7194_s18 + $0xbf4] ss:$8 sps:$4 sm:$0xff]  }
 0x2e0   : > { %4774 = vmatpush2.bf16.msra.mxu0 %v6154_v7  ;;  %v6220_v7 = vld [vmem:[%s7194_s18 + $0xaf0] ss:$8 sps:$4 sm:$0xff]  }
 0x2e1   : > { %4775 = vmatprep.subr.bf16.mxu0 %v6162_v8  ;;  %v6228_v8 = vld [vmem:[%s7194_s18 + $0xae4] ss:$8 sps:$4 sm:$0xff]  }
 0x2e2   : > { %4815 = vmatpush2.bf16.msra.mxu1 %v6157_v9  ;;  %v6223_v9 = vld [vmem:[%s7194_s18 + $0xbf0] ss:$8 sps:$4 sm:$0xff]  }
 0x2e3   : > { %4816 = vmatprep.subr.bf16.mxu1 %v6165_v11  ;;  %v6231_v11 = vld [vmem:[%s7194_s18 + $0xbe4] ss:$8 sps:$4 sm:$0xff]  }
 0x2e4   : > { %4776 = vmatpush2.bf16.msra.mxu0 %v6160_v42  ;;  %v6226_v42 = vld [vmem:[%s7194_s18 + $0xae0] ss:$8 sps:$4 sm:$0xff]  }
 0x2e5   : > { %4777 = vmatprep.subr.bf16.mxu0 %v6168_v12  ;;  %v6234_v12 = vld [vmem:[%s7194_s18 + $0xad4] ss:$8 sps:$4 sm:$0xff]  }
 0x2e6   : > { %4817 = vmatpush2.bf16.msra.mxu1 %v6163_v13  ;;  %v6229_v13 = vld [vmem:[%s7194_s18 + $0xbe0] ss:$8 sps:$4 sm:$0xff]  }
 0x2e7   : > { %4818 = vmatprep.subr.bf16.mxu1 %v6171_v17  ;;  %v6232_v17 = vld [vmem:[%s7194_s18 + $0xad0] ss:$8 sps:$4 sm:$0xff]  }
 0x2e8   : > { %4778 = vmatpush2.bf16.msra.mxu0 %v6166_v18  ;;  %v6240_v18 = vld [vmem:[%s7194_s18 + $0xac4] ss:$8 sps:$4 sm:$0xff]  }
 0x2e9   : > { %4829 = vmatprep.subr.bf16.mxu0 %v6174_v21  ;;  %v6243_v21 = vld [vmem:[%s7194_s18 + $0xbc4] ss:$8 sps:$4 sm:$0xff]  }
 0x2ea   : > { %4819 = vmatpush2.bf16.msra.mxu1 %v6169_v22  ;;  %v6238_v22 = vld [vmem:[%s7194_s18 + $0xac0] ss:$8 sps:$4 sm:$0xff]  }
 0x2eb   : > { %v4535_v30 = vpop.f32.mrf.mxu0  ;;  %4780 = vmatmul.mubr.bf16.vlgmr.msra.gmra.mxu0 %v2391_v19  ;;  %4870 = vmatprep.subr.bf16.mxu1 %v6177_v24  ;;  %v6235_v19 = vld [vmem:[%s7194_s18 + $0xbd0] ss:$8 sps:$4 sm:$0xff]   ;;  %v6241_v24 = vld [vmem:[%s7194_s18 + $0xbc0] ss:$8 sps:$4 sm:$0xff]  }
 0x2ec   : > { %v4536_v31 = vadd.f32 %v4535_v30, %v7525_v15  ;;  %4830 = vmatpush1.bf16.msra.mxu0 %v6172_v25  ;;  %4861 = vmatprep.mubr.bf16.mxu0 %v2412_v23  ;;  %v6246_v23 = vld [vmem:[%s7194_s18 + $0xab4] ss:$8 sps:$4 sm:$0xff]   ;;  %v6250_v30 = vld [vmem:[%s7194_s18 + $0xaa0] ss:$8 sps:$4 sm:$0xff]  }
 0x2ed   : > { %v4537_v33 = vpop.f32.mrf.mxu0  ;;  %v4576_v34 = vpop.f32.mrf.mxu1  ;;  %4821 = vmatmul.mubr.bf16.vlgmr.msra.gmra.mxu1 %v2413_v26  ;;  %4831 = vmatprep.subr.bf16.mxu0 %v6180_v27  ;;  %v6249_v25 = vld [vmem:[%s7194_s18 + $0xbb4] ss:$8 sps:$4 sm:$0xff]   ;;  %v6244_v26 = vld [vmem:[%s7194_s18 + $0xab0] ss:$8 sps:$4 sm:$0xff]   ;;  %v6252_v27 = vld [vmem:[%s7194_s18 + $0xaa4] ss:$8 sps:$4 sm:$0xff]  }
 0x2ee   : > { %v4538_v37 = vadd.f32 %v4537_v33, %v7529_v20  ;;  %v7604_v14 = vadd.f32 %v4576_v34, %v4536_v31  ;;  %4871 = vmatpush1.bf16.msra.mxu1 %v6175_v28  ;;  %4902 = vmatprep.mubr.bf16.mxu1 %v2416_v29  ;;  %v6192_v20 = vld [vmem:[%s7194_s18 + $0xa44] ss:$8 sps:$4 sm:$0xff]   ;;  %v6247_v28 = vld [vmem:[%s7194_s18 + $0xbb0] ss:$8 sps:$4 sm:$0xff]   ;;  %v6253_v31 = vld [vmem:[%s7194_s18 + $0xba0] ss:$8 sps:$4 sm:$0xff]  }
 0x2ef   : > { %v4539_v15 = vpop.f32.mrf.mxu0  ;;  %v4578_v40 = vpop.f32.mrf.mxu1  ;;  %4872 = vmatprep.subr.bf16.mxu1 %v6183_v47  ;;  %v6255_v29 = vld [vmem:[%s7194_s18 + $0xba4] ss:$8 sps:$4 sm:$0xff]   ;;  %v6258_v47 = vld [vmem:[%s7194_s18 + $0xa94] ss:$8 sps:$4 sm:$0xff]   ;;  %v6256_v33 = vld [vmem:[%s7194_s18 + $0xa90] ss:$8 sps:$4 sm:$0xff]  }
 0x2f0   : > { %v7608_v43 = vadd.f32 %v4578_v40, %v4538_v37  ;;  %4832 = vmatpush1.bf16.msra.mxu0 %v6178_v32  ;;  %v6261_v32 = vld [vmem:[%s7194_s18 + $0xb94] ss:$8 sps:$4 sm:$0xff]   ;;  %v6264_v34 = vld [vmem:[%s7194_s18 + $0xa84] ss:$8 sps:$4 sm:$0xff]   ;;  %v2398_v15 = vrot.slane %v7580_v10, %v7244_v57 }
 0x2f1   : > { %v4540_v46 = vpop.f32.mrf.mxu0  ;;  %4833 = vmatprep.subr.bf16.mxu0 %v6186_v36  ;;  %v4580_v48 = vpop.f32.mrf.mxu1  ;;  %v6259_v36 = vld [vmem:[%s7194_s18 + $0xb90] ss:$8 sps:$4 sm:$0xff]   ;;  %v6267_v37 = vld [vmem:[%s7194_s18 + $0xb84] ss:$8 sps:$4 sm:$0xff]   ;;  %v6271_v40 = vld [vmem:[%s7194_s18 + $0xc34] ss:$8 sps:$4 sm:$0xff]  }
 0x2f2   : > { %4873 = vmatpush1.bf16.msra.mxu1 %v6181_v39  ;;  %v6262_v39 = vld [vmem:[%s7194_s18 + $0xa80] ss:$8 sps:$4 sm:$0xff]   ;;  %v2414_v46 = vcombine.high %v2398_v15, %v2398_v15 }
 0x2f3   : > { %4874 = vmatprep.subr.bf16.mxu1 %v6189_v41  ;;  %v4581_v52 = vpop.f32.mrf.mxu1  ;;  %v6265_v41 = vld [vmem:[%s7194_s18 + $0xb80] ss:$8 sps:$4 sm:$0xff]  }
 0x2f4   : > { %4834 = vmatpush1.bf16.msra.mxu0 %v6184_v45  ;;  %v6269_v45 = vld [vmem:[%s7194_s18 + $0xc30] ss:$8 sps:$4 sm:$0xff]   ;;  %v6323_v52 = vmov 0  }
 0x2f5   : > { %4835 = vmatprep.subr.bf16.mxu0 %v6192_v20  ;;  %v6274_v20 = vld [vmem:[%s7194_s18 + $0xc24] ss:$8 sps:$4 sm:$0xff]  }
 0x2f6   : > { %4875 = vmatpush1.bf16.msra.mxu1 %v6187_v49 }
 0x2f7   : > { %4876 = vmatprep.subr.bf16.mxu1 %v6195_v50  ;;  %v6272_v50 = vld [vmem:[%s7194_s18 + $0xc20] ss:$8 sps:$4 sm:$0xff]  }
 0x2f8   : > { %4836 = vmatpush1.bf16.msra.mxu0 %v6190_v53 }
 0x2f9   : > { %4837 = vmatprep.subr.bf16.mxu0 %v6198_v38  ;;  %v6277_v38 = vld [vmem:[%s7194_s18 + $0xc14] ss:$8 sps:$4 sm:$0xff]  }
 0x2fa   : > { %4877 = vmatpush1.bf16.msra.mxu1 %v6193_v54 }
 0x2fb   : > { %4878 = vmatprep.subr.bf16.mxu1 %v6201_v55 }
 0x2fc   : > { %4838 = vmatpush1.bf16.msra.mxu0 %v6196_v56 }
 0x2fd   : > { %4839 = vmatprep.subr.bf16.mxu0 %v6204_v58 }
 0x2fe   : > { %4879 = vmatpush1.bf16.msra.mxu1 %v6199_v59  ;;  %v6275_v59 = vld [vmem:[%s7194_s18 + $0xc10] ss:$8 sps:$4 sm:$0xff]  }
 0x2ff   : > { %4880 = vmatprep.subr.bf16.mxu1 %v6207_v60 }
 0x300   : > { %4840 = vmatpush1.bf16.msra.mxu0 %v6202_v61  ;;  %v6280_v61 = vld [vmem:[%s7194_s18 + $0xc04] ss:$8 sps:$4 sm:$0xff]  }
 0x301   : > { %4841 = vmatprep.subr.bf16.mxu0 %v6210_v62 }
 0x302   : > { %4881 = vmatpush1.bf16.msra.mxu1 %v6205_v63 }
 0x303   : > { %4882 = vmatprep.subr.bf16.mxu1 %v6213_v0  ;;  %v6281_v0 = vld [vmem:[%s7192_s20 + $0x78] sm:$0xff]  }
 0x304   : > { %4842 = vmatpush1.bf16.msra.mxu0 %v6208_v1  ;;  %v6282_v1 = vld [vmem:[%s7192_s20 + $0x38] sm:$0xff]  }
 0x305   : > { %4843 = vmatprep.subr.bf16.mxu0 %v6216_v2  ;;  %v6283_v2 = vld [vmem:[%s7192_s20 + $0x70] sm:$0xff]  }
 0x306   : > { %4883 = vmatpush1.bf16.msra.mxu1 %v6211_v3  ;;  %v5224_v3 = vld.sshfl [vmem:[%s7714_s0 + $0x18] sm:$0x1 pattern:$0x75316420] }
 0x307   : > { %4884 = vmatprep.subr.bf16.mxu1 %v6219_v35  ;;  %v6284_v35 = vld [vmem:[%s7192_s20 + $0x30] sm:$0xff]  }
 0x308   : > { %4844 = vmatpush1.bf16.msra.mxu0 %v6214_v4  ;;  %v2430_v4 = vrot.slane %v5224_v3, %v7244_v57 }
 0x309   : > { %4845 = vmatprep.subr.bf16.mxu0 %v6222_v5 }
 0x30a   : > { %4885 = vmatpush1.bf16.msra.mxu1 %v6217_v6  ;;  %v6285_v6 = vld [vmem:[%s7192_s20 + $0x68] sm:$0xff]  }
 0x30b   : > { %4886 = vmatprep.subr.bf16.mxu1 %v6225_v51 }
 0x30c   : > { %4846 = vmatpush2.bf16.msra.mxu0 %v6220_v7  ;;  %v6286_v7 = vld [vmem:[%s7192_s20 + $0x28] sm:$0xff]  }
 0x30d   : > { %4847 = vmatprep.subr.bf16.mxu0 %v6228_v8 }
 0x30e   : > { %4887 = vmatpush2.bf16.msra.mxu1 %v6223_v9 }
 0x30f   : > { %4888 = vmatprep.subr.bf16.mxu1 %v6231_v11 }
 0x310   : > { %4848 = vmatpush2.bf16.msra.mxu0 %v6226_v42 }
 0x311   : > { %4849 = vmatprep.subr.bf16.mxu0 %v6234_v12 }
 0x312   : > { %4889 = vmatpush2.bf16.msra.mxu1 %v6229_v13  ;;  %v6287_v13 = vld [vmem:[%s7192_s20 + $0x60] sm:$0xff]  }
 0x313   : > { %4890 = vmatprep.subr.bf16.mxu1 %v6237_v16 }
 0x314   : > { %4850 = vmatpush2.bf16.msra.mxu0 %v6232_v17  ;;  %v6288_v17 = vld [vmem:[%s7192_s20 + $0x20] sm:$0xff]  }
 0x315   : > { %4851 = vmatprep.subr.bf16.mxu0 %v6240_v18 }
 0x316   : > { %4891 = vmatpush2.bf16.msra.mxu1 %v6235_v19 }
 0x317   : > { %4892 = vmatprep.subr.bf16.mxu1 %v6243_v21  ;;  %v6289_v21 = vld [vmem:[%s7192_s20 + $0x58] sm:$0xff]  }
 0x318   : > { %4852 = vmatpush2.bf16.msra.mxu0 %v6238_v22  ;;  %v6290_v22 = vld [vmem:[%s7192_s20 + $0x18] sm:$0xff]  }
 0x319   : > { %4853 = vmatprep.subr.bf16.mxu0 %v6246_v23 }
 0x31a   : > { %4893 = vmatpush2.bf16.msra.mxu1 %v6241_v24  ;;  %v6291_v24 = vld [vmem:[%s7192_s20 + $0x50] sm:$0xff]  }
 0x31b   : > { %4894 = vmatprep.subr.bf16.mxu1 %v6249_v25  ;;  %v6292_v25 = vld [vmem:[%s7192_s20 + $0x10] sm:$0xff]  }
 0x31c   : > { %4854 = vmatpush2.bf16.msra.mxu0 %v6244_v26  ;;  %v6293_v26 = vld [vmem:[%s7192_s20 + $0x48] sm:$0xff]  }
 0x31d   : > { %4855 = vmatprep.subr.bf16.mxu0 %v6252_v27  ;;  %v6294_v27 = vld [vmem:[%s7192_s20 + $0x8] sm:$0xff]  }
 0x31e   : > { %4895 = vmatpush2.bf16.msra.mxu1 %v6247_v28  ;;  %v6295_v28 = vld [vmem:[%s7192_s20 + $0x40] sm:$0xff]  }
 0x31f   : > { %4896 = vmatprep.subr.bf16.mxu1 %v6255_v29  ;;  %v6296_v29 = vld [vmem:[%s7192_s20] sm:$0xff]  }
 0x320   : > { %4856 = vmatpush2.bf16.msra.mxu0 %v6250_v30 }
 0x321   : > { %4857 = vmatprep.subr.bf16.mxu0 %v6258_v47 }
 0x322   : > { %4897 = vmatpush2.bf16.msra.mxu1 %v6253_v31 }
 0x323   : > { %4898 = vmatprep.subr.bf16.mxu1 %v6261_v32 }
 0x324   : > { %4858 = vmatpush2.bf16.msra.mxu0 %v6256_v33 }
 0x325   : > { %4859 = vmatprep.subr.bf16.mxu0 %v6264_v34 }
 0x326   : > { %4899 = vmatpush2.bf16.msra.mxu1 %v6259_v36 }
 0x327   : > { %4900 = vmatprep.subr.bf16.mxu1 %v6267_v37 }
 0x328   : > { %4860 = vmatpush2.bf16.msra.mxu0 %v6262_v39 }
 0x329   : > { %4919 = vmatprep.subr.bf16.mxu0 %v6271_v40 }
 0x32a   : > { %4901 = vmatpush2.bf16.msra.mxu1 %v6265_v41 }
 0x32b   : > { %v4617_v48 = vpop.f32.mrf.mxu0  ;;  %4862 = vmatmul.mubr.bf16.vlgmr.msra.gmra.mxu0 %v2398_v15  ;;  %5639 = vmatprep.subr.bf16.mxu1 %v6281_v0 }
 0x32c   : > { %v4618_v49 = vadd.f32 %v4617_v48, %v7604_v14  ;;  %4920 = vmatpush1.bf16.msra.mxu0 %v6269_v45  ;;  %4943 = vmatprep.mubr.bf16.mxu0 %v6323_v52 }
 0x32d   : > { %v4619_v10 = vpop.f32.mrf.mxu0  ;;  %v4658_v53 = vpop.f32.mrf.mxu1  ;;  %4903 = vmatmul.mubr.bf16.vlgmr.msra.gmra.mxu1 %v2414_v46  ;;  %4921 = vmatprep.subr.bf16.mxu0 %v6274_v20 }
 0x32e   : > { %v4620_v54 = vadd.f32 %v4619_v10, %v7608_v43  ;;  %v4659_v55 = vadd.f32 %v4658_v53, %v4618_v49  ;;  %v6278_v43 = vld [vmem:[%s7194_s18 + $0xc00] ss:$8 sps:$4 sm:$0xff]   ;;  %5640 = vmatpush3.bf16.msra.mxu1 %v6282_v1 }
 0x32f   : > { %v4621_v56 = vpop.f32.mrf.mxu0  ;;  %v4660_v14 = vpop.f32.mrf.mxu1  ;;  %5641 = vmatprep.subr.bf16.mxu1 %v6283_v2 }
 0x330   : > { %v4661_v58 = vadd.f32 %v4660_v14, %v4620_v54  ;;  %4922 = vmatpush1.bf16.msra.mxu0 %v6272_v50 }
 0x331   : > { %v4622_v60 = vpop.f32.mrf.mxu0  ;;  %4923 = vmatprep.subr.bf16.mxu0 %v6277_v38  ;;  %v4662_v62 = vpop.f32.mrf.mxu1 }
 0x332   : > { %5642 = vmatpush3.bf16.msra.mxu1 %v6284_v35 }
 0x333   : > { %v4663_v63 = vpop.f32.mrf.mxu1  ;;  %5643 = vmatprep.subr.bf16.mxu1 %v6285_v6 }
 0x334   : > { %4924 = vmatpush1.bf16.msra.mxu0 %v6275_v59 }
 0x335   : > { %4925 = vmatprep.subr.bf16.mxu0 %v6280_v61 }
 0x336   : > { %5644 = vmatpush3.bf16.msra.mxu1 %v6286_v7 }
 0x337   : > { %5645 = vmatprep.subr.bf16.mxu1 %v6287_v13 }
 0x338   : > { %4926 = vmatpush1.bf16.msra.mxu0 %v6278_v43  ;;  %v4954_v43 = vld [vmem:[#allocation2] sm:$0x3] }
 0x33a   : > { %5646 = vmatpush3.bf16.msra.mxu1 %v6288_v17 }
 0x33b   : > { %5617 = vmatmul.mubr.msk.bf16.vlgmr.msra.gmra.mxu0 %vm4415_vm0, %v2430_v4  ;;  %5647 = vmatprep.subr.bf16.mxu1 %v6289_v21 }
 0x33e   : > { %5648 = vmatpush3.bf16.msra.mxu1 %v6290_v22 }
 0x33f   : > { %5649 = vmatprep.subr.bf16.mxu1 %v6291_v24 }
 0x342   : > { %5650 = vmatpush3.bf16.msra.mxu1 %v6292_v25 }
 0x343   : > { %5651 = vmatprep.subr.bf16.mxu1 %v6293_v26 }
 0x346   : > { %5652 = vmatpush3.bf16.msra.mxu1 %v6294_v27 }
 0x347   : > { %5653 = vmatprep.subr.bf16.mxu1 %v6295_v28 }
 0x34a   : > { %5654 = vmatpush3.bf16.msra.mxu1 %v6296_v29 }
 0x36b   : > { %v4699_v5 = vpop.f32.mrf.mxu0 }
 0x36c   : > { %v4700_v51 = vadd.f32 %v4699_v5, %v4659_v55 }
 0x36d   : > { %v4701_v8 = vpop.f32.mrf.mxu0  ;;  %v4740_v9 = vpop.f32.mrf.mxu1 }
 0x36e   : > { %v4702_v11 = vadd.f32 %v4701_v8, %v4661_v58  ;;  %v4741_v42 = vadd.f32 %v4740_v9, %v4700_v51 }
 0x36f   : > { %v4703_v57 = vpop.f32.mrf.mxu0  ;;  %v4742_v12 = vpop.f32.mrf.mxu1 }
 0x370   : > { %v4743_v16 = vadd.f32 %v4742_v12, %v4702_v11 }
 0x371   : > { %v4704_v18 = vpop.f32.mrf.mxu0  ;;  %v4744_v19 = vpop.f32.mrf.mxu1 }
 0x373   : > { %v4745_v23 = vpop.f32.mrf.mxu1 }
 0x3ab   : > { %v4781_v30 = vpop.f32.mrf.mxu0 }
 0x3ac   : > { %v4782_v47 = vadd.f32 %v4781_v30, %v4741_v42 }
 0x3ad   : > { %v4783_v31 = vpop.f32.mrf.mxu0  ;;  %v4822_v32 = vpop.f32.mrf.mxu1 }
 0x3ae   : > { %v4784_v33 = vadd.f32 %v4783_v31, %v4743_v16  ;;  %v4823_v34 = vadd.f32 %v4822_v32, %v4782_v47 }
 0x3af   : > { %v4785_v36 = vpop.f32.mrf.mxu0  ;;  %v4824_v37 = vpop.f32.mrf.mxu1 }
 0x3b0   : > { %v4825_v39 = vadd.f32 %v4824_v37, %v4784_v33 }
 0x3b1   : > { %v4786_v15 = vpop.f32.mrf.mxu0  ;;  %v4826_v40 = vpop.f32.mrf.mxu1 }
 0x3b3   : > { %v4827_v41 = vpop.f32.mrf.mxu1 }
 0x3eb   : > { %v4863_v45 = vpop.f32.mrf.mxu0 }
 0x3ec   : > { %v4864_v53 = vadd.f32 %v4863_v45, %v4823_v34 }
 0x3ed   : > { %v4865_v46 = vpop.f32.mrf.mxu0  ;;  %v4904_v20 = vpop.f32.mrf.mxu1 }
 0x3ee   : > { %v4866_v38 = vadd.f32 %v4865_v46, %v4825_v39  ;;  %v4905_v54 = vadd.f32 %v4904_v20, %v4864_v53 }
 0x3ef   : > { %v4867_v48 = vpop.f32.mrf.mxu0  ;;  %v4906_v49 = vpop.f32.mrf.mxu1 }
 0x3f0   : > { %v4907_v56 = vadd.f32 %v4906_v49, %v4866_v38 }
 0x3f1   : > { %v4868_v50 = vpop.f32.mrf.mxu0  ;;  %v4908_v52 = vpop.f32.mrf.mxu1 }
 0x3f3   : > { %v4909_v10 = vpop.f32.mrf.mxu1 }
 0x3fb   : > { %v4945_v55 = vpop.f32.mrf.mxu0 }
 0x3fc   : > { %v4946_v14 = vadd.f32 %v4945_v55, %v4905_v54 }
 0x3fd   : > { %v4947_v58 = vpop.f32.mrf.mxu0 }
 0x3fe   : > { %v4948_v59 = vadd.f32 %v4947_v58, %v4907_v56  ;;  %v4952_v60 = vmax.f32 %v4946_v14, 0.0 }
 0x3ff   : > { %v4949_v61 = vpop.f32.mrf.mxu0 }
 0x400   : > { %v4953_v62 = vmax.f32 %v4948_v59, 0.0  ;;  %v4955_v1 = vpack.c.bf16 %v4952_v60, %v4952_v60 }
 0x401   : > { %v4950_v63 = vpop.f32.mrf.mxu0 }
 0x402   : > { %v4956_v0 = vpack.c.bf16 %v4953_v62, %v4953_v62 }
 0x404   : > { %5117 = vmatprep.mubr.bf16.mxu1 %v4956_v0 }
 0x405   : > { %5118 = vmatmul.mubr.bf16.vlgmr.msra.gmra.mxu1 %v4955_v1 }
 0x4c5   : > { %v5655_v2 = vpop.f32.mrf.mxu1 }
 0x4c7   : > { %v5656_v3 = vpop.f32.mrf.mxu1 }
 0x4c8   : > { %v5657_v35 = vadd.f32 %v5656_v3, %v5655_v2  ;;  %5130 = sbr.rel (%p5634_p11) target bundleno = 1387 (0x56b), region = 86 }
 0x4c9   : > { %v5658_v4 = vpop.f32.mrf.mxu1 }
 0x4ca   : > { %v5125_v5 = vadd.f32 %v5657_v35, %v4954_v43 }
 0x4cb   : > { %v5659_v6 = vpop.f32.mrf.mxu1 }
 0x4cc   : > { %5126 = vst [vmem:[#allocation2] sm:$0x3] %v5125_v5 }
 0x4cd   : > { %v5635_v7 = vld [vmem:[%s7718_s4] ss:$0 sm:$0xff]  ;;  %v5141_v8 = vand.u32 127, %v2256_v44  ;;  %vm5144_vm1 = vcmask 1041408  }
 0x4cf   : > { %vm5142_vm2 = vcmp.eq.s32.totalorder %v5141_v8, 0  ;;  %vm5148_vm3 = vcmp.ge.s32.totalorder %v5141_v8, 1  ;;  %vm5149_vm4 = vcmp.le.s32.totalorder %v5141_v8, 6 }
 0x4d0   : > { %vm5150_vm5 = vmand %vm5148_vm3, %vm5149_vm4 }
 0x4d3   : > { %v5131_v51 = vld [vmem:[#allocation2] sm:$0x3] }
 0x4d4   : > { %v5139_v9 = vadd.f32 %v5635_v7, %v5131_v51 }
 0x4d6   : > { %v5143_v11 = vsel %vm5142_vm2, %v5139_v9, 0.0  ;;  %v5151_v57 = vsel %vm5150_vm5, %v5139_v9, 0.0 }
 0x4d7   : > { %v5145_v42 = vsel %vm5144_vm1, %v5143_v11, 0.0  ;;  %v5152_v12 = vsel %vm5144_vm1, %v5151_v57, 0.0 }
 0x4d8   : > { %5146 = vadd.xlane.f32.xlu0 %v5145_v42 }
 0x4dc   : > { %5153 = vadd.xlane.f32.xlu0 %v5152_v12 }
 0x561   : > { %v5147_v13 = vpop.xlane.xlu0 %5146 }
 0x562   : > { %v5156_v17 = vadd.f32 %v5147_v13, %v5139_v9 }
 0x565   : > { %v5154_v16 = vpop.xlane.xlu0 %5153 }
 0x566   : > { %v5155_v18 = vmul.f32 0.16666667, %v5154_v16 }
 0x568   : > { %v5157_v19 = vsub.f32 %v5156_v17, %v5155_v18 }
 0x56a   : > { %5158 = vst [vmem:[%s7719_s5] sm:$0x3] %v5157_v19 }
 0x56b PF: > { %p12_p12 = scmp.ge.s32.totalorder %s6373_s22, 6   ;;  %s7720_s18 = smov %s6315_s19 }
 0x56c   : > { %s7721_s19 = smov %s6382_s25  ;;  %s7722_s20 = smov %s6373_s22 }
 0x56d   :  { %14 = sbr.rel (!%p12_p12) target bundleno = 2 (0x2), region = 123 }

</bundles_post_ra>
